<compile_context>
chip_gen: v5e
topology: v5e:2x2
jax: 0.10.0
libtpu: 0.0.40
codegen_flags: <defaults>
</compile_context>

<pallas_src>
import functools
import math

import jax
import jax.numpy as jnp
from jax.experimental import pallas as pl
from jax.experimental.pallas import tpu as pltpu

BN_EPS = 1e-5
CPAD = 128      # output-channel padding = lane width (lane-dense stores)
CMIN = 16       # input-channel padding minimum (bf16 packing), NOT 128
_MAX_TM = 512


def _round_up(x, m):
    return ((x + m - 1) // m) * m


def _ceil_div(a, b):
    return -(-a // b)


def _num_m_splits():
    """v7x has 2 TensorCores per chip -> give each TC its own M block."""
    try:
        kind = jax.devices()[0].device_kind.lower()
    except Exception:
        return 1
    return 2 if ("v7" in kind or "7x" in kind) else 1


_M_SPLITS = _num_m_splits()


def _choose_m_tiling(m):
    nb = 2 if (_M_SPLITS >= 2 and m >= 64) else 1
    nb = max(nb, _ceil_div(m, _MAX_TM))
    tm = _round_up(_ceil_div(m, nb), 8)
    return nb * tm, tm


# ---------------------------------------------------------------------------
# Pallas kernels
# ---------------------------------------------------------------------------
def _mm_bias_kernel(x_ref, w_ref, b_ref, o_ref, *, relu):
    """out = x @ w + bias (optionally ReLU).  Whole K in one block, f32 acc."""
    y = jnp.dot(x_ref[...], w_ref[...], preferred_element_type=jnp.float32)
    y = y + b_ref[...]
    if relu:
        y = jnp.maximum(y, 0.0)
    o_ref[...] = y.astype(o_ref.dtype)


def _mm_bias_res_relu_kernel(x_ref, w_ref, b_ref, r_ref, o_ref):
    """out = relu(x @ w + bias + residual): conv2+BN+add+ReLU of a basic block."""
    y = jnp.dot(x_ref[...], w_ref[...], preferred_element_type=jnp.float32)
    y = y + b_ref[...] + r_ref[...].astype(jnp.float32)
    o_ref[...] = jnp.maximum(y, 0.0).astype(o_ref.dtype)


def _mm_dual_kernel(x_ref, w_ref, b_ref, o1_ref, o2_ref):
    """One N=256 matmul: ReLU'd main path (first 128 lanes) + raw shortcut."""
    y = jnp.dot(x_ref[...], w_ref[...], preferred_element_type=jnp.float32)
    y = y + b_ref[...]
    nh = o1_ref.shape[-1]
    o1_ref[...] = jnp.maximum(y[:, :nh], 0.0).astype(o1_ref.dtype)
    o2_ref[...] = y[:, nh:].astype(o2_ref.dtype)


def _maxpool9_kernel(t_ref, o_ref):
    """Max over the 9 (kh, kw) taps; taps are pre-sliced at stride 2."""
    o_ref[...] = jnp.max(t_ref[...], axis=0)


def _avgpool_fc_kernel(x_ref, w_ref, b_ref, o_ref):
    """Global average pool over HW fused with the final FC matmul."""
    x = x_ref[...].astype(jnp.float32)                       # (N, HW, C)
    pooled = jnp.sum(x, axis=1) * (1.0 / x.shape[1])         # (N, C)
    y = jnp.dot(pooled, w_ref[...], preferred_element_type=jnp.float32)
    o_ref[...] = y + b_ref[...]


# ---------------------------------------------------------------------------
# Kernel wrappers
# ---------------------------------------------------------------------------
def fused_matmul(x, w, bias, *, relu, residual=None, out_dtype=jnp.bfloat16):
    """out = x @ w + bias [+ residual] [ReLU]; single-K-block tiled MXU matmul."""
    m, k = x.shape
    k2, n = w.shape
    assert k == k2 and bias.shape == (1, n)
    mp, tm = _choose_m_tiling(m)
    if mp != m:
        x = jnp.pad(x, ((0, mp - m), (0, 0)))
        if residual is not None:
            residual = jnp.pad(residual, ((0, mp - m), (0, 0)))

    in_specs = [
        pl.BlockSpec((tm, k), lambda i: (i, 0)),
        pl.BlockSpec((k, n), lambda i: (0, 0)),
        pl.BlockSpec((1, n), lambda i: (0, 0)),
    ]
    args = [x, w, bias]
    if residual is None:
        kernel = functools.partial(_mm_bias_kernel, relu=relu)
    else:
        kernel = _mm_bias_res_relu_kernel
        in_specs.append(pl.BlockSpec((tm, n), lambda i: (i, 0)))
        args.append(residual)

    out = pl.pallas_call(
        kernel,
        out_shape=jax.ShapeDtypeStruct((mp, n), out_dtype),
        grid_spec=pltpu.PrefetchScalarGridSpec(
            num_scalar_prefetch=0,
            grid=(mp // tm,),
            in_specs=in_specs,
            out_specs=pl.BlockSpec((tm, n), lambda i: (i, 0)),
        ),
        compiler_params=pltpu.CompilerParams(
            dimension_semantics=("parallel",)),
    )(*args)
    return out[:m] if mp != m else out


def fused_matmul_dual(x, w, bias, out_dtype=jnp.bfloat16):
    """Shared-patch matmul with N=2*128: (relu(main), shortcut) in one call."""
    m, k = x.shape
    _, n2 = w.shape
    nh = n2 // 2
    mp, tm = _choose_m_tiling(m)
    if mp != m:
        x = jnp.pad(x, ((0, mp - m), (0, 0)))
    y1, y2 = pl.pallas_call(
        _mm_dual_kernel,
        out_shape=(jax.ShapeDtypeStruct((mp, nh), out_dtype),
                   jax.ShapeDtypeStruct((mp, nh), out_dtype)),
        grid_spec=pltpu.PrefetchScalarGridSpec(
            num_scalar_prefetch=0,
            grid=(mp // tm,),
            in_specs=[pl.BlockSpec((tm, k), lambda i: (i, 0)),
                      pl.BlockSpec((k, n2), lambda i: (0, 0)),
                      pl.BlockSpec((1, n2), lambda i: (0, 0))],
            out_specs=(pl.BlockSpec((tm, nh), lambda i: (i, 0)),
                       pl.BlockSpec((tm, nh), lambda i: (i, 0))),
        ),
        compiler_params=pltpu.CompilerParams(
            dimension_semantics=("parallel",)),
    )(x, w, bias)
    if mp != m:
        y1, y2 = y1[:m], y2[:m]
    return y1, y2


def _im2col(x, kh, kw, cin, stride, k_total):
    """NHWC -> (N*OH*OW, k_total) patch matrix.

    TODO(synk): still XLA glue; fuse the tap loop into the matmul kernel.
    """
    n, h, w, _ = x.shape
    x = x[..., :cin]                                  # slice to real/packed Cin
    pad = (kh - 1) // 2
    oh = (h + 2 * pad - kh) // stride + 1
    ow = (w + 2 * pad - kw) // stride + 1
    if pad:
        x = jnp.pad(x, ((0, 0), (pad, pad), (pad, pad), (0, 0)))
    cols = [x[:, i:i + stride * oh:stride, j:j + stride * ow:stride, :]
            for i in range(kh) for j in range(kw)]
    patches = jnp.stack(cols, axis=3).reshape(n * oh * ow, kh * kw * cin)
    if k_total != kh * kw * cin:
        patches = jnp.pad(patches, ((0, 0), (0, k_total - kh * kw * cin)))
    return patches, n, oh, ow


def conv2d_bn(x, p, *, stride, relu, residual=None, pad_k_lanes=False):
    """Conv2d(no bias) + folded BN (+ReLU) (+fused residual add+ReLU)."""
    w4 = p["w"]                                        # (kh, kw, cin_p, 128) bf16
    kh, kw, cin, cout = w4.shape
    k = kh * kw * cin
    k_total = _round_up(k, 128) if pad_k_lanes else k
    patches, n, oh, ow = _im2col(x, kh, kw, cin, stride, k_total)
    wmat = w4.reshape(k, cout)
    if k_total != k:
        wmat = jnp.pad(wmat, ((0, k_total - k), (0, 0)))
    res2 = None if residual is None else residual.reshape(n * oh * ow, cout)
    y = fused_matmul(patches, wmat, p["b"], relu=relu, residual=res2)
    return y.reshape(n, oh, ow, cout)


def conv2d_bn_dual(x, p, *, stride):
    """First conv of a downsample block fused with the 1x1 shortcut conv."""
    w4 = p["w"]                                        # (3, 3, cin_p, 256) bf16
    kh, kw, cin, cout2 = w4.shape
    k = kh * kw * cin
    patches, n, oh, ow = _im2col(x, kh, kw, cin, stride, k)
    y1, y2 = fused_matmul_dual(patches, w4.reshape(k, cout2), p["b"])
    nh = cout2 // 2
    return y1.reshape(n, oh, ow, nh), y2.reshape(n, oh, ow, nh)


def max_pool_3x3_s2_p1(x):
    """F.max_pool2d(kernel=3, stride=2, padding=1) on NHWC, real channels only."""
    n, h, w, c = x.shape
    oh = (h - 1) // 2 + 1
    ow = (w - 1) // 2 + 1
    neg = float(jnp.finfo(x.dtype).min)
    xp = jnp.pad(x, ((0, 0), (1, 1), (1, 1), (0, 0)), constant_values=neg)
    taps = jnp.stack([xp[:, i:i + 2 * oh:2, j:j + 2 * ow:2, :]
                      for i in range(3) for j in range(3)], axis=0)
    m = n * oh * ow
    taps = taps.reshape(9, m, c)
    mp, tm = _choose_m_tiling(m)
    if mp != m:
        taps = jnp.pad(taps, ((0, 0), (0, mp - m), (0, 0)))
    out = pl.pallas_call(
        _maxpool9_kernel,
        out_shape=jax.ShapeDtypeStruct((mp, c), x.dtype),
        grid_spec=pltpu.PrefetchScalarGridSpec(
            num_scalar_prefetch=0,
            grid=(mp // tm,),
            in_specs=[pl.BlockSpec((9, tm, c), lambda i: (0, i, 0))],
            out_specs=pl.BlockSpec((tm, c), lambda i: (i, 0)),
        ),
        compiler_params=pltpu.CompilerParams(dimension_semantics=("parallel",)),
    )(taps)
    out = out[:m] if mp != m else out
    return out.reshape(n, oh, ow, c)


def avgpool_fc(x, fc):
    """Global average pool over HW fused with the final Linear layer."""
    n, h, w, c = x.shape
    x2 = x.reshape(n, h * w, c)
    npad = _round_up(n, 8)
    if npad != n:
        x2 = jnp.pad(x2, ((0, npad - n), (0, 0), (0, 0)))
    ncols = fc["w"].shape[1]
    out = pl.pallas_call(
        _avgpool_fc_kernel,
        out_shape=jax.ShapeDtypeStruct((npad, ncols), jnp.float32),
        grid_spec=pltpu.PrefetchScalarGridSpec(
            num_scalar_prefetch=0,
            grid=(1,),
            in_specs=[pl.BlockSpec((npad, h * w, c), lambda i: (0, 0, 0)),
                      pl.BlockSpec((c, ncols), lambda i: (0, 0)),
                      pl.BlockSpec((1, ncols), lambda i: (0, 0))],
            out_specs=pl.BlockSpec((npad, ncols), lambda i: (0, 0)),
        ),
    )(x2, fc["w"], fc["b"])
    return out[:n]


# ---------------------------------------------------------------------------
# Parameters (deterministic, matching the module's __init__ shapes/init)
# ---------------------------------------------------------------------------
def _conv_w(key, cout, cin, k):
    std = math.sqrt(2.0 / (k * k * cout))
    return jax.random.normal(key, (cout, cin, k, k), jnp.float32) * std


def _bn_params(c):
    return dict(gamma=jnp.ones((c,), jnp.float32),
                beta=jnp.zeros((c,), jnp.float32),
                mean=jnp.zeros((c,), jnp.float32),
                var=jnp.ones((c,), jnp.float32))


def build_model(key, section_reps=(1, 1), num_classes=10, nbf=8):
    """Basic-block ResNet (use_basic_block=True, downsample_start=True)."""
    expansion = 1
    keys = iter(jax.random.split(key, 64))
    params = {"conv1": _conv_w(next(keys), nbf, 3, 7), "bn1": _bn_params(nbf)}
    inplanes = nbf
    sections = []
    for i, rep in enumerate(section_reps):
        planes = nbf * 2 ** i
        sec_stride = (i != 0) + 1
        blocks = []
        for bidx in range(rep):
            needs_ds = (bidx == 0) and (sec_stride != 1
                                        or inplanes != planes * expansion)
            blk = {"conv1": _conv_w(next(keys), planes, inplanes, 3),
                   "bn1": _bn_params(planes),
                   "conv2": _conv_w(next(keys), planes, planes, 3),
                   "bn2": _bn_params(planes),
                   "downsample": None}
            if needs_ds:
                blk["downsample"] = {
                    "conv": _conv_w(next(keys), planes * expansion, inplanes, 1),
                    "bn": _bn_params(planes * expansion)}
            blocks.append(blk)
            inplanes = planes * expansion
        sections.append(blocks)
    params["sections"] = sections
    lin_inp = (nbf * int(2 ** (len(section_reps) - 1)) * expansion
               if len(sections) != 0 else nbf)
    params["fc_w"] = (jax.random.normal(next(keys), (num_classes, lin_inp),
                                        jnp.float32) * (1.0 / math.sqrt(lin_inp)))
    params["fc_b"] = jnp.zeros((num_classes,), jnp.float32)
    return params


def _prep_conv(w_oihw, bn, *, cin_pad=None):
    """Fold eval-mode BN scale into the weight; pad Cin to the bf16 packing
    minimum (NOT 128) and Cout to the lane width (128); keep as 4D bf16."""
    cout, cin, kh, kw = w_oihw.shape
    cin_p = _round_up(cin, CMIN) if cin_pad is None else cin_pad
    scale = bn["gamma"] / jnp.sqrt(bn["var"] + BN_EPS)
    shift = bn["beta"] - bn["mean"] * scale
    w = jnp.transpose(w_oihw, (2, 3, 1, 0)) * scale          # (kh, kw, cin, cout)
    w = jnp.pad(w, ((0, 0), (0, 0), (0, cin_p - cin), (0, CPAD - cout)))
    b = jnp.pad(shift, (0, CPAD - cout)).reshape(1, CPAD)
    return {"w": w.astype(jnp.bfloat16), "b": b.astype(jnp.float32)}


def prepare_params(params):
    # conv1 keeps Cin=3; its flattened K is lane-padded at call time (147->256).
    prep = {"conv1": _prep_conv(params["conv1"], params["bn1"],
                                cin_pad=params["conv1"].shape[1])}
    sections = []
    for section in params["sections"]:
        blocks = []
        for blk in section:
            p = {"conv2": _prep_conv(blk["conv2"], blk["bn2"])}
            c1 = _prep_conv(blk["conv1"], blk["bn1"])
            if blk["downsample"] is not None:
                # Embed the 1x1 shortcut conv as a centre-only 3x3 so it shares
                # the conv1 patch matrix; concat weights along N -> one N=256
                # matmul produces main path + shortcut (fills 256-wide MXU).
                ds_w33 = jnp.pad(blk["downsample"]["conv"],
                                 ((0, 0), (0, 0), (1, 1), (1, 1)))
                ds = _prep_conv(ds_w33, blk["downsample"]["bn"],
                                cin_pad=c1["w"].shape[2])
                p["dual"] = {"w": jnp.concatenate([c1["w"], ds["w"]], axis=3),
                             "b": jnp.concatenate([c1["b"], ds["b"]], axis=1)}
            else:
                p["conv1"] = c1
            blocks.append(p)
        sections.append(blocks)
    prep["sections"] = sections
    ncls, lin_inp = params["fc_w"].shape
    fcw = jnp.pad(params["fc_w"].T, ((0, CPAD - lin_inp), (0, CPAD - ncls)))
    fcb = jnp.pad(params["fc_b"], (0, CPAD - ncls)).reshape(1, CPAD)
    prep["fc"] = {"w": fcw.astype(jnp.float32), "b": fcb.astype(jnp.float32)}
    return prep


# ---------------------------------------------------------------------------
# Forward pass (mirrors PytorchResNet.forward, downsample_start=True)
# ---------------------------------------------------------------------------
def resnet_forward(prep, x_nchw, *, num_classes):
    x = jnp.transpose(x_nchw, (0, 2, 3, 1)).astype(jnp.bfloat16)   # NCHW -> NHWC

    x = conv2d_bn(x, prep["conv1"], stride=2, relu=True,
                  pad_k_lanes=True)                                # (N,16,16,128)

    # Max pool on the real (packed-to-16) channels only; pad back to 128 lanes.
    c_pool = CPAD
    if prep["sections"] and prep["sections"][0]:
        blk0 = prep["sections"][0][0]
        w0 = blk0["dual"]["w"] if "dual" in blk0 else blk0["conv1"]["w"]
        c_pool = min(CPAD, w0.shape[2])
    x = max_pool_3x3_s2_p1(x[..., :c_pool])
    x = jnp.pad(x, ((0, 0), (0, 0), (0, 0), (0, CPAD - x.shape[-1])))

    for si, section in enumerate(prep["sections"]):
        for bi, blk in enumerate(section):
            stride = ((si != 0) + 1) if bi == 0 else 1
            if "dual" in blk:
                # conv1+BN+ReLU and the 1x1 downsample in one N=256 matmul.
                y, shortcut = conv2d_bn_dual(x, blk["dual"], stride=stride)
            else:
                shortcut = x
                y = conv2d_bn(x, blk["conv1"], stride=stride, relu=True)
            # conv2 + BN + residual add + ReLU fused into one matmul epilogue.
            x = conv2d_bn(y, blk["conv2"], stride=1, relu=True,
                          residual=shortcut)

    logits = avgpool_fc(x, prep["fc"])                             # (N, 128) f32
    return logits[:, :num_classes]


if __name__ == "__main__":
    key = jax.random.PRNGKey(0)
    pkey, xkey = jax.random.split(key)
    params = build_model(pkey, section_reps=(1, 1), num_classes=10, nbf=8)
    prep = prepare_params(params)
    x = jax.random.normal(xkey, (2, 3, 32, 32), jnp.float32)  # NCHW like PyTorch
    fwd = jax.jit(functools.partial(resnet_forward, num_classes=10))
    out = jax.block_until_ready(fwd(prep, x))
    assert out.shape == (2, 10), out.shape
    assert bool(jnp.all(jnp.isfinite(out)))
    print("KERNEL_OK")
</pallas_src>

<mosaic_0001>
module attributes {stable_mosaic.version = 11 : i64} {
  func.func @_mm_bias_kernel(%arg0: i32, %arg1: memref<512x256xbf16, #tpu.memory_space<vmem>>, %arg2: memref<256x128xbf16, #tpu.memory_space<vmem>>, %arg3: memref<1x128xf32, #tpu.memory_space<vmem>>, %arg4: memref<512x128xbf16, #tpu.memory_space<vmem>>) attributes {dimension_semantics = [#tpu.dimension_semantics<parallel>], iteration_bounds = array<i64: 1>, scalar_prefetch = 0 : i64, scratch_operands = 0 : i64, tpu.core_type = #tpu.core_type<tc>, window_params = [{transform_indices = @transform_0, window_bounds = array<i64: 512, 256>}, {pipeline_mode = #tpu.pipeline_mode<synchronous>, transform_indices = @transform_1, window_bounds = array<i64: 256, 128>}, {pipeline_mode = #tpu.pipeline_mode<synchronous>, transform_indices = @transform_2, window_bounds = array<i64: 1, 128>}, {transform_indices = @transform_3, window_bounds = array<i64: 512, 128>}]} {
    %c0 = arith.constant 0 : index
    %c0_0 = arith.constant 0 : index
    %0 = vector.load %arg1[%c0, %c0_0] : memref<512x256xbf16, #tpu.memory_space<vmem>>, vector<512x256xbf16>
    %c0_1 = arith.constant 0 : index
    %c0_2 = arith.constant 0 : index
    %1 = vector.load %arg2[%c0_1, %c0_2] : memref<256x128xbf16, #tpu.memory_space<vmem>>, vector<256x128xbf16>
    %cst = arith.constant dense<0.000000e+00> : vector<512x128xf32>
    %2 = tpu.matmul %0, %1, %cst {dimension_numbers = #tpu.dot_dimension_numbers<[1], [0], [0], [1], [0, 0, 1, 1], [], []>} : vector<512x256xbf16>, vector<256x128xbf16>, vector<512x128xf32> -> vector<512x128xf32>
    %c0_3 = arith.constant 0 : index
    %c0_4 = arith.constant 0 : index
    %3 = vector.load %arg3[%c0_3, %c0_4] : memref<1x128xf32, #tpu.memory_space<vmem>>, vector<1x128xf32>
    %4 = vector.broadcast %3 : vector<1x128xf32> to vector<512x128xf32>
    %5 = arith.addf %2, %4 : vector<512x128xf32>
    %cst_5 = arith.constant 0.000000e+00 : f32
    %6 = vector.broadcast %cst_5 : f32 to vector<512x128xf32>
    %7 = arith.maximumf %5, %6 : vector<512x128xf32>
    %8 = arith.truncf %7 : vector<512x128xf32> to vector<512x128xbf16>
    %c0_6 = arith.constant 0 : index
    %c0_7 = arith.constant 0 : index
    %9 = vector.load %arg4[%c0_6, %c0_7] : memref<512x128xbf16, #tpu.memory_space<vmem>>, vector<512x128xbf16>
    tpu.vector_store %arg4[%c0_6, %c0_7], %8 {strides = array<i32>} : memref<512x128xbf16, #tpu.memory_space<vmem>>, vector<512x128xbf16>,
    return
  }
  func.func @transform_0(%arg0: i32) -> (i32, i32) {
    %c0_i32 = arith.constant 0 : i32
    %c0_i32_0 = arith.constant 0 : i32
    return %arg0, %c0_i32 : i32, i32
  }
  func.func @transform_1(%arg0: i32) -> (i32, i32) {
    %c0_i32 = arith.constant 0 : i32
    %c0_i32_0 = arith.constant 0 : i32
    %c0_i32_1 = arith.constant 0 : i32
    return %c0_i32, %c0_i32_0 : i32, i32
  }
  func.func @transform_2(%arg0: i32) -> (i32, i32) {
    %c0_i32 = arith.constant 0 : i32
    %c0_i32_0 = arith.constant 0 : i32
    %c0_i32_1 = arith.constant 0 : i32
    return %c0_i32, %c0_i32_0 : i32, i32
  }
  func.func @transform_3(%arg0: i32) -> (i32, i32) {
    %c0_i32 = arith.constant 0 : i32
    %c0_i32_0 = arith.constant 0 : i32
    return %arg0, %c0_i32 : i32, i32
  }
}

module attributes {stable_mosaic.version = 11 : i64} {
  func.func @_maxpool9_kernel(%arg0: i32, %arg1: memref<9x128x16xbf16, #tpu.memory_space<vmem>>, %arg2: memref<128x16xbf16, #tpu.memory_space<vmem>>) attributes {dimension_semantics = [#tpu.dimension_semantics<parallel>], iteration_bounds = array<i64: 1>, scalar_prefetch = 0 : i64, scratch_operands = 0 : i64, tpu.core_type = #tpu.core_type<tc>, window_params = [{transform_indices = @transform_0, window_bounds = array<i64: 9, 128, 16>}, {transform_indices = @transform_1, window_bounds = array<i64: 128, 16>}]} {
    %c0 = arith.constant 0 : index
    %c0_0 = arith.constant 0 : index
    %c0_1 = arith.constant 0 : index
    %0 = vector.load %arg1[%c0, %c0_0, %c0_1] : memref<9x128x16xbf16, #tpu.memory_space<vmem>>, vector<9x128x16xbf16>
    %cst = arith.constant dense<0xFF80> : vector<128x16xbf16>
    %1 = vector.multi_reduction <maximumf>, %0, %cst [0] : vector<9x128x16xbf16> to vector<128x16xbf16>
    %c0_2 = arith.constant 0 : index
    %c0_3 = arith.constant 0 : index
    %2 = vector.load %arg2[%c0_2, %c0_3] : memref<128x16xbf16, #tpu.memory_space<vmem>>, vector<128x16xbf16>
    tpu.vector_store %arg2[%c0_2, %c0_3], %1 {strides = array<i32>} : memref<128x16xbf16, #tpu.memory_space<vmem>>, vector<128x16xbf16>,
    return
  }
  func.func @transform_0(%arg0: i32) -> (i32, i32, i32) {
    %c0_i32 = arith.constant 0 : i32
    %c0_i32_0 = arith.constant 0 : i32
    %c0_i32_1 = arith.constant 0 : i32
    return %c0_i32, %arg0, %c0_i32_0 : i32, i32, i32
  }
  func.func @transform_1(%arg0: i32) -> (i32, i32) {
    %c0_i32 = arith.constant 0 : i32
    %c0_i32_0 = arith.constant 0 : i32
    return %arg0, %c0_i32 : i32, i32
  }
}

module attributes {stable_mosaic.version = 11 : i64} {
  func.func @_mm_bias_kernel(%arg0: i32, %arg1: memref<128x144xbf16, #tpu.memory_space<vmem>>, %arg2: memref<144x128xbf16, #tpu.memory_space<vmem>>, %arg3: memref<1x128xf32, #tpu.memory_space<vmem>>, %arg4: memref<128x128xbf16, #tpu.memory_space<vmem>>) attributes {dimension_semantics = [#tpu.dimension_semantics<parallel>], iteration_bounds = array<i64: 1>, scalar_prefetch = 0 : i64, scratch_operands = 0 : i64, tpu.core_type = #tpu.core_type<tc>, window_params = [{transform_indices = @transform_0, window_bounds = array<i64: 128, 144>}, {pipeline_mode = #tpu.pipeline_mode<synchronous>, transform_indices = @transform_1, window_bounds = array<i64: 144, 128>}, {pipeline_mode = #tpu.pipeline_mode<synchronous>, transform_indices = @transform_2, window_bounds = array<i64: 1, 128>}, {transform_indices = @transform_3, window_bounds = array<i64: 128, 128>}]} {
    %c0 = arith.constant 0 : index
    %c0_0 = arith.constant 0 : index
    %0 = vector.load %arg1[%c0, %c0_0] : memref<128x144xbf16, #tpu.memory_space<vmem>>, vector<128x144xbf16>
    %c0_1 = arith.constant 0 : index
    %c0_2 = arith.constant 0 : index
    %1 = vector.load %arg2[%c0_1, %c0_2] : memref<144x128xbf16, #tpu.memory_space<vmem>>, vector<144x128xbf16>
    %cst = arith.constant dense<0.000000e+00> : vector<128x128xf32>
    %2 = tpu.matmul %0, %1, %cst {dimension_numbers = #tpu.dot_dimension_numbers<[1], [0], [0], [1], [0, 0, 1, 1], [], []>} : vector<128x144xbf16>, vector<144x128xbf16>, vector<128x128xf32> -> vector<128x128xf32>
    %c0_3 = arith.constant 0 : index
    %c0_4 = arith.constant 0 : index
    %3 = vector.load %arg3[%c0_3, %c0_4] : memref<1x128xf32, #tpu.memory_space<vmem>>, vector<1x128xf32>
    %4 = vector.broadcast %3 : vector<1x128xf32> to vector<128x128xf32>
    %5 = arith.addf %2, %4 : vector<128x128xf32>
    %cst_5 = arith.constant 0.000000e+00 : f32
    %6 = vector.broadcast %cst_5 : f32 to vector<128x128xf32>
    %7 = arith.maximumf %5, %6 : vector<128x128xf32>
    %8 = arith.truncf %7 : vector<128x128xf32> to vector<128x128xbf16>
    %c0_6 = arith.constant 0 : index
    %c0_7 = arith.constant 0 : index
    %9 = vector.load %arg4[%c0_6, %c0_7] : memref<128x128xbf16, #tpu.memory_space<vmem>>, vector<128x128xbf16>
    tpu.vector_store %arg4[%c0_6, %c0_7], %8 {strides = array<i32>} : memref<128x128xbf16, #tpu.memory_space<vmem>>, vector<128x128xbf16>,
    return
  }
  func.func @transform_0(%arg0: i32) -> (i32, i32) {
    %c0_i32 = arith.constant 0 : i32
    %c0_i32_0 = arith.constant 0 : i32
    return %arg0, %c0_i32 : i32, i32
  }
  func.func @transform_1(%arg0: i32) -> (i32, i32) {
    %c0_i32 = arith.constant 0 : i32
    %c0_i32_0 = arith.constant 0 : i32
    %c0_i32_1 = arith.constant 0 : i32
    return %c0_i32, %c0_i32_0 : i32, i32
  }
  func.func @transform_2(%arg0: i32) -> (i32, i32) {
    %c0_i32 = arith.constant 0 : i32
    %c0_i32_0 = arith.constant 0 : i32
    %c0_i32_1 = arith.constant 0 : i32
    return %c0_i32, %c0_i32_0 : i32, i32
  }
  func.func @transform_3(%arg0: i32) -> (i32, i32) {
    %c0_i32 = arith.constant 0 : i32
    %c0_i32_0 = arith.constant 0 : i32
    return %arg0, %c0_i32 : i32, i32
  }
}

module attributes {stable_mosaic.version = 11 : i64} {
  func.func @_mm_bias_res_relu_kernel(%arg0: i32, %arg1: memref<128x144xbf16, #tpu.memory_space<vmem>>, %arg2: memref<144x128xbf16, #tpu.memory_space<vmem>>, %arg3: memref<1x128xf32, #tpu.memory_space<vmem>>, %arg4: memref<128x128xbf16, #tpu.memory_space<vmem>>, %arg5: memref<128x128xbf16, #tpu.memory_space<vmem>>) attributes {dimension_semantics = [#tpu.dimension_semantics<parallel>], iteration_bounds = array<i64: 1>, scalar_prefetch = 0 : i64, scratch_operands = 0 : i64, tpu.core_type = #tpu.core_type<tc>, window_params = [{transform_indices = @transform_0, window_bounds = array<i64: 128, 144>}, {pipeline_mode = #tpu.pipeline_mode<synchronous>, transform_indices = @transform_1, window_bounds = array<i64: 144, 128>}, {pipeline_mode = #tpu.pipeline_mode<synchronous>, transform_indices = @transform_2, window_bounds = array<i64: 1, 128>}, {transform_indices = @transform_3, window_bounds = array<i64: 128, 128>}, {transform_indices = @transform_4, window_bounds = array<i64: 128, 128>}]} {
    %c0 = arith.constant 0 : index
    %c0_0 = arith.constant 0 : index
    %0 = vector.load %arg1[%c0, %c0_0] : memref<128x144xbf16, #tpu.memory_space<vmem>>, vector<128x144xbf16>
    %c0_1 = arith.constant 0 : index
    %c0_2 = arith.constant 0 : index
    %1 = vector.load %arg2[%c0_1, %c0_2] : memref<144x128xbf16, #tpu.memory_space<vmem>>, vector<144x128xbf16>
    %cst = arith.constant dense<0.000000e+00> : vector<128x128xf32>
    %2 = tpu.matmul %0, %1, %cst {dimension_numbers = #tpu.dot_dimension_numbers<[1], [0], [0], [1], [0, 0, 1, 1], [], []>} : vector<128x144xbf16>, vector<144x128xbf16>, vector<128x128xf32> -> vector<128x128xf32>
    %c0_3 = arith.constant 0 : index
    %c0_4 = arith.constant 0 : index
    %3 = vector.load %arg3[%c0_3, %c0_4] : memref<1x128xf32, #tpu.memory_space<vmem>>, vector<1x128xf32>
    %4 = vector.broadcast %3 : vector<1x128xf32> to vector<128x128xf32>
    %5 = arith.addf %2, %4 : vector<128x128xf32>
    %c0_5 = arith.constant 0 : index
    %c0_6 = arith.constant 0 : index
    %6 = vector.load %arg4[%c0_5, %c0_6] : memref<128x128xbf16, #tpu.memory_space<vmem>>, vector<128x128xbf16>
    %7 = arith.extf %6 : vector<128x128xbf16> to vector<128x128xf32>
    %8 = arith.addf %5, %7 : vector<128x128xf32>
    %cst_7 = arith.constant 0.000000e+00 : f32
    %9 = vector.broadcast %cst_7 : f32 to vector<128x128xf32>
    %10 = arith.maximumf %8, %9 : vector<128x128xf32>
    %11 = arith.truncf %10 : vector<128x128xf32> to vector<128x128xbf16>
    %c0_8 = arith.constant 0 : index
    %c0_9 = arith.constant 0 : index
    %12 = vector.load %arg5[%c0_8, %c0_9] : memref<128x128xbf16, #tpu.memory_space<vmem>>, vector<128x128xbf16>
    tpu.vector_store %arg5[%c0_8, %c0_9], %11 {strides = array<i32>} : memref<128x128xbf16, #tpu.memory_space<vmem>>, vector<128x128xbf16>,
    return
  }
  func.func @transform_0(%arg0: i32) -> (i32, i32) {
    %c0_i32 = arith.constant 0 : i32
    %c0_i32_0 = arith.constant 0 : i32
    return %arg0, %c0_i32 : i32, i32
  }
  func.func @transform_1(%arg0: i32) -> (i32, i32) {
    %c0_i32 = arith.constant 0 : i32
    %c0_i32_0 = arith.constant 0 : i32
    %c0_i32_1 = arith.constant 0 : i32
    return %c0_i32, %c0_i32_0 : i32, i32
  }
  func.func @transform_2(%arg0: i32) -> (i32, i32) {
    %c0_i32 = arith.constant 0 : i32
    %c0_i32_0 = arith.constant 0 : i32
    %c0_i32_1 = arith.constant 0 : i32
    return %c0_i32, %c0_i32_0 : i32, i32
  }
  func.func @transform_3(%arg0: i32) -> (i32, i32) {
    %c0_i32 = arith.constant 0 : i32
    %c0_i32_0 = arith.constant 0 : i32
    return %arg0, %c0_i32 : i32, i32
  }
  func.func @transform_4(%arg0: i32) -> (i32, i32) {
    %c0_i32 = arith.constant 0 : i32
    %c0_i32_0 = arith.constant 0 : i32
    return %arg0, %c0_i32 : i32, i32
  }
}

module attributes {stable_mosaic.version = 11 : i64} {
  func.func @_mm_dual_kernel(%arg0: i32, %arg1: memref<32x144xbf16, #tpu.memory_space<vmem>>, %arg2: memref<144x256xbf16, #tpu.memory_space<vmem>>, %arg3: memref<1x256xf32, #tpu.memory_space<vmem>>, %arg4: memref<32x128xbf16, #tpu.memory_space<vmem>>, %arg5: memref<32x128xbf16, #tpu.memory_space<vmem>>) attributes {dimension_semantics = [#tpu.dimension_semantics<parallel>], iteration_bounds = array<i64: 1>, scalar_prefetch = 0 : i64, scratch_operands = 0 : i64, tpu.core_type = #tpu.core_type<tc>, window_params = [{transform_indices = @transform_0, window_bounds = array<i64: 32, 144>}, {pipeline_mode = #tpu.pipeline_mode<synchronous>, transform_indices = @transform_1, window_bounds = array<i64: 144, 256>}, {pipeline_mode = #tpu.pipeline_mode<synchronous>, transform_indices = @transform_2, window_bounds = array<i64: 1, 256>}, {transform_indices = @transform_3, window_bounds = array<i64: 32, 128>}, {transform_indices = @transform_4, window_bounds = array<i64: 32, 128>}]} {
    %c0 = arith.constant 0 : index
    %c0_0 = arith.constant 0 : index
    %0 = vector.load %arg1[%c0, %c0_0] : memref<32x144xbf16, #tpu.memory_space<vmem>>, vector<32x144xbf16>
    %c0_1 = arith.constant 0 : index
    %c0_2 = arith.constant 0 : index
    %1 = vector.load %arg2[%c0_1, %c0_2] : memref<144x256xbf16, #tpu.memory_space<vmem>>, vector<144x256xbf16>
    %cst = arith.constant dense<0.000000e+00> : vector<32x256xf32>
    %2 = tpu.matmul %0, %1, %cst {dimension_numbers = #tpu.dot_dimension_numbers<[1], [0], [0], [1], [0, 0, 1, 1], [], []>} : vector<32x144xbf16>, vector<144x256xbf16>, vector<32x256xf32> -> vector<32x256xf32>
    %c0_3 = arith.constant 0 : index
    %c0_4 = arith.constant 0 : index
    %3 = vector.load %arg3[%c0_3, %c0_4] : memref<1x256xf32, #tpu.memory_space<vmem>>, vector<1x256xf32>
    %4 = vector.broadcast %3 : vector<1x256xf32> to vector<32x256xf32>
    %5 = arith.addf %2, %4 : vector<32x256xf32>
    %6 = vector.extract_strided_slice %5 {offsets = [0, 0], sizes = [32, 128], strides = [1, 1]} : vector<32x256xf32> to vector<32x128xf32>
    %cst_5 = arith.constant 0.000000e+00 : f32
    %7 = vector.broadcast %cst_5 : f32 to vector<32x128xf32>
    %8 = arith.maximumf %6, %7 : vector<32x128xf32>
    %9 = arith.truncf %8 : vector<32x128xf32> to vector<32x128xbf16>
    %c0_6 = arith.constant 0 : index
    %c0_7 = arith.constant 0 : index
    %10 = vector.load %arg4[%c0_6, %c0_7] : memref<32x128xbf16, #tpu.memory_space<vmem>>, vector<32x128xbf16>
    tpu.vector_store %arg4[%c0_6, %c0_7], %9 {strides = array<i32>} : memref<32x128xbf16, #tpu.memory_space<vmem>>, vector<32x128xbf16>,
    %11 = vector.extract_strided_slice %5 {offsets = [0, 128], sizes = [32, 128], strides = [1, 1]} : vector<32x256xf32> to vector<32x128xf32>
    %12 = arith.truncf %11 : vector<32x128xf32> to vector<32x128xbf16>
    %c0_8 = arith.constant 0 : index
    %c0_9 = arith.constant 0 : index
    %13 = vector.load %arg5[%c0_8, %c0_9] : memref<32x128xbf16, #tpu.memory_space<vmem>>, vector<32x128xbf16>
    tpu.vector_store %arg5[%c0_8, %c0_9], %12 {strides = array<i32>} : memref<32x128xbf16, #tpu.memory_space<vmem>>, vector<32x128xbf16>,
    return
  }
  func.func @transform_0(%arg0: i32) -> (i32, i32) {
    %c0_i32 = arith.constant 0 : i32
    %c0_i32_0 = arith.constant 0 : i32
    return %arg0, %c0_i32 : i32, i32
  }
  func.func @transform_1(%arg0: i32) -> (i32, i32) {
    %c0_i32 = arith.constant 0 : i32
    %c0_i32_0 = arith.constant 0 : i32
    %c0_i32_1 = arith.constant 0 : i32
    return %c0_i32, %c0_i32_0 : i32, i32
  }
  func.func @transform_2(%arg0: i32) -> (i32, i32) {
    %c0_i32 = arith.constant 0 : i32
    %c0_i32_0 = arith.constant 0 : i32
    %c0_i32_1 = arith.constant 0 : i32
    return %c0_i32, %c0_i32_0 : i32, i32
  }
  func.func @transform_3(%arg0: i32) -> (i32, i32) {
    %c0_i32 = arith.constant 0 : i32
    %c0_i32_0 = arith.constant 0 : i32
    return %arg0, %c0_i32 : i32, i32
  }
  func.func @transform_4(%arg0: i32) -> (i32, i32) {
    %c0_i32 = arith.constant 0 : i32
    %c0_i32_0 = arith.constant 0 : i32
    return %arg0, %c0_i32 : i32, i32
  }
}

module attributes {stable_mosaic.version = 11 : i64} {
  func.func @_mm_bias_res_relu_kernel(%arg0: i32, %arg1: memref<32x144xbf16, #tpu.memory_space<vmem>>, %arg2: memref<144x128xbf16, #tpu.memory_space<vmem>>, %arg3: memref<1x128xf32, #tpu.memory_space<vmem>>, %arg4: memref<32x128xbf16, #tpu.memory_space<vmem>>, %arg5: memref<32x128xbf16, #tpu.memory_space<vmem>>) attributes {dimension_semantics = [#tpu.dimension_semantics<parallel>], iteration_bounds = array<i64: 1>, scalar_prefetch = 0 : i64, scratch_operands = 0 : i64, tpu.core_type = #tpu.core_type<tc>, window_params = [{transform_indices = @transform_0, window_bounds = array<i64: 32, 144>}, {pipeline_mode = #tpu.pipeline_mode<synchronous>, transform_indices = @transform_1, window_bounds = array<i64: 144, 128>}, {pipeline_mode = #tpu.pipeline_mode<synchronous>, transform_indices = @transform_2, window_bounds = array<i64: 1, 128>}, {transform_indices = @transform_3, window_bounds = array<i64: 32, 128>}, {transform_indices = @transform_4, window_bounds = array<i64: 32, 128>}]} {
    %c0 = arith.constant 0 : index
    %c0_0 = arith.constant 0 : index
    %0 = vector.load %arg1[%c0, %c0_0] : memref<32x144xbf16, #tpu.memory_space<vmem>>, vector<32x144xbf16>
    %c0_1 = arith.constant 0 : index
    %c0_2 = arith.constant 0 : index
    %1 = vector.load %arg2[%c0_1, %c0_2] : memref<144x128xbf16, #tpu.memory_space<vmem>>, vector<144x128xbf16>
    %cst = arith.constant dense<0.000000e+00> : vector<32x128xf32>
    %2 = tpu.matmul %0, %1, %cst {dimension_numbers = #tpu.dot_dimension_numbers<[1], [0], [0], [1], [0, 0, 1, 1], [], []>} : vector<32x144xbf16>, vector<144x128xbf16>, vector<32x128xf32> -> vector<32x128xf32>
    %c0_3 = arith.constant 0 : index
    %c0_4 = arith.constant 0 : index
    %3 = vector.load %arg3[%c0_3, %c0_4] : memref<1x128xf32, #tpu.memory_space<vmem>>, vector<1x128xf32>
    %4 = vector.broadcast %3 : vector<1x128xf32> to vector<32x128xf32>
    %5 = arith.addf %2, %4 : vector<32x128xf32>
    %c0_5 = arith.constant 0 : index
    %c0_6 = arith.constant 0 : index
    %6 = vector.load %arg4[%c0_5, %c0_6] : memref<32x128xbf16, #tpu.memory_space<vmem>>, vector<32x128xbf16>
    %7 = arith.extf %6 : vector<32x128xbf16> to vector<32x128xf32>
    %8 = arith.addf %5, %7 : vector<32x128xf32>
    %cst_7 = arith.constant 0.000000e+00 : f32
    %9 = vector.broadcast %cst_7 : f32 to vector<32x128xf32>
    %10 = arith.maximumf %8, %9 : vector<32x128xf32>
    %11 = arith.truncf %10 : vector<32x128xf32> to vector<32x128xbf16>
    %c0_8 = arith.constant 0 : index
    %c0_9 = arith.constant 0 : index
    %12 = vector.load %arg5[%c0_8, %c0_9] : memref<32x128xbf16, #tpu.memory_space<vmem>>, vector<32x128xbf16>
    tpu.vector_store %arg5[%c0_8, %c0_9], %11 {strides = array<i32>} : memref<32x128xbf16, #tpu.memory_space<vmem>>, vector<32x128xbf16>,
    return
  }
  func.func @transform_0(%arg0: i32) -> (i32, i32) {
    %c0_i32 = arith.constant 0 : i32
    %c0_i32_0 = arith.constant 0 : i32
    return %arg0, %c0_i32 : i32, i32
  }
  func.func @transform_1(%arg0: i32) -> (i32, i32) {
    %c0_i32 = arith.constant 0 : i32
    %c0_i32_0 = arith.constant 0 : i32
    %c0_i32_1 = arith.constant 0 : i32
    return %c0_i32, %c0_i32_0 : i32, i32
  }
  func.func @transform_2(%arg0: i32) -> (i32, i32) {
    %c0_i32 = arith.constant 0 : i32
    %c0_i32_0 = arith.constant 0 : i32
    %c0_i32_1 = arith.constant 0 : i32
    return %c0_i32, %c0_i32_0 : i32, i32
  }
  func.func @transform_3(%arg0: i32) -> (i32, i32) {
    %c0_i32 = arith.constant 0 : i32
    %c0_i32_0 = arith.constant 0 : i32
    return %arg0, %c0_i32 : i32, i32
  }
  func.func @transform_4(%arg0: i32) -> (i32, i32) {
    %c0_i32 = arith.constant 0 : i32
    %c0_i32_0 = arith.constant 0 : i32
    return %arg0, %c0_i32 : i32, i32
  }
}

module attributes {stable_mosaic.version = 11 : i64} {
  func.func @_avgpool_fc_kernel(%arg0: i32, %arg1: memref<8x16x128xbf16, #tpu.memory_space<vmem>>, %arg2: memref<128x128xf32, #tpu.memory_space<vmem>>, %arg3: memref<1x128xf32, #tpu.memory_space<vmem>>, %arg4: memref<8x128xf32, #tpu.memory_space<vmem>>) attributes {dimension_semantics = [#tpu.dimension_semantics<arbitrary>], iteration_bounds = array<i64: 1>, scalar_prefetch = 0 : i64, scratch_operands = 0 : i64, tpu.core_type = #tpu.core_type<tc>, window_params = [{pipeline_mode = #tpu.pipeline_mode<synchronous>, transform_indices = @transform_0, window_bounds = array<i64: 8, 16, 128>}, {pipeline_mode = #tpu.pipeline_mode<synchronous>, transform_indices = @transform_1, window_bounds = array<i64: 128, 128>}, {pipeline_mode = #tpu.pipeline_mode<synchronous>, transform_indices = @transform_2, window_bounds = array<i64: 1, 128>}, {pipeline_mode = #tpu.pipeline_mode<synchronous>, transform_indices = @transform_3, window_bounds = array<i64: 8, 128>}]} {
    %c0 = arith.constant 0 : index
    %c0_0 = arith.constant 0 : index
    %c0_1 = arith.constant 0 : index
    %0 = vector.load %arg1[%c0, %c0_0, %c0_1] : memref<8x16x128xbf16, #tpu.memory_space<vmem>>, vector<8x16x128xbf16>
    %1 = arith.extf %0 : vector<8x16x128xbf16> to vector<8x16x128xf32>
    %cst = arith.constant dense<0.000000e+00> : vector<8x128xf32>
    %2 = vector.multi_reduction <add>, %1, %cst [1] : vector<8x16x128xf32> to vector<8x128xf32>
    %cst_2 = arith.constant 6.250000e-02 : f32
    %3 = vector.broadcast %cst_2 : f32 to vector<8x128xf32>
    %4 = arith.mulf %2, %3 : vector<8x128xf32>
    %c0_3 = arith.constant 0 : index
    %c0_4 = arith.constant 0 : index
    %5 = vector.load %arg2[%c0_3, %c0_4] : memref<128x128xf32, #tpu.memory_space<vmem>>, vector<128x128xf32>
    %cst_5 = arith.constant dense<0.000000e+00> : vector<8x128xf32>
    %6 = tpu.matmul %4, %5, %cst_5 {dimension_numbers = #tpu.dot_dimension_numbers<[1], [0], [0], [1], [0, 0, 1, 1], [], []>} : vector<8x128xf32>, vector<128x128xf32>, vector<8x128xf32> -> vector<8x128xf32>
    %c0_6 = arith.constant 0 : index
    %c0_7 = arith.constant 0 : index
    %7 = vector.load %arg3[%c0_6, %c0_7] : memref<1x128xf32, #tpu.memory_space<vmem>>, vector<1x128xf32>
    %8 = vector.broadcast %7 : vector<1x128xf32> to vector<8x128xf32>
    %9 = arith.addf %6, %8 : vector<8x128xf32>
    %c0_8 = arith.constant 0 : index
    %c0_9 = arith.constant 0 : index
    %10 = vector.load %arg4[%c0_8, %c0_9] : memref<8x128xf32, #tpu.memory_space<vmem>>, vector<8x128xf32>
    tpu.vector_store %arg4[%c0_8, %c0_9], %9 {strides = array<i32>} : memref<8x128xf32, #tpu.memory_space<vmem>>, vector<8x128xf32>,
    return
  }
  func.func @transform_0(%arg0: i32) -> (i32, i32, i32) {
    %c0_i32 = arith.constant 0 : i32
    %c0_i32_0 = arith.constant 0 : i32
    %c0_i32_1 = arith.constant 0 : i32
    %c0_i32_2 = arith.constant 0 : i32
    return %c0_i32, %c0_i32_0, %c0_i32_1 : i32, i32, i32
  }
  func.func @transform_1(%arg0: i32) -> (i32, i32) {
    %c0_i32 = arith.constant 0 : i32
    %c0_i32_0 = arith.constant 0 : i32
    %c0_i32_1 = arith.constant 0 : i32
    return %c0_i32, %c0_i32_0 : i32, i32
  }
  func.func @transform_2(%arg0: i32) -> (i32, i32) {
    %c0_i32 = arith.constant 0 : i32
    %c0_i32_0 = arith.constant 0 : i32
    %c0_i32_1 = arith.constant 0 : i32
    return %c0_i32, %c0_i32_0 : i32, i32
  }
  func.func @transform_3(%arg0: i32) -> (i32, i32) {
    %c0_i32 = arith.constant 0 : i32
    %c0_i32_0 = arith.constant 0 : i32
    %c0_i32_1 = arith.constant 0 : i32
    return %c0_i32, %c0_i32_0 : i32, i32
  }
}

</mosaic_0001>

<bundles_post_ra>
// kernel: resnet_forward.7
= control target key start
LH: loop header
LB: loop body
LE: loop exit
PB: predicated region body
PF: predicated region fallthrough
CT: control target
= control target key end

     0   :  { %s2289_s1 = inlined_call_operand.vmem [shape: bf16[256,128], index: 1, kind: input, shape index: {}]   ;;  %s2290_s2 = inlined_call_operand.vmem [shape: f32[1,128], index: 2, kind: input, shape index: {}]   ;;  %s2291_s0 = inlined_call_operand.vmem [shape: bf16[512,256], index: 0, kind: input, shape index: {}]   ;;  %s2292_s3 = inlined_call_operand.vmem [shape: bf16[512,128], index: 3, kind: output, shape index: {}]  }
   0x1   :  { %v1455_v0 = vld [vmem:[%s2289_s1 + $0x38] sm:$0xff]  ;;  %v1454_v2 = vld [vmem:[%s2289_s1 + $0x30] sm:$0xff]  ;;  %v1453_v4 = vld [vmem:[%s2289_s1 + $0x28] sm:$0xff] }
   0x2   :  { %v1463_v1 = vld [vmem:[%s2289_s1 + $0x78] sm:$0xff]  ;;  %530 = vmatpush.bf16.msra.mxu0 %v1455_v0  ;;  %1655 = vmatpush.bf16.msra.mxu2 %v1455_v0  ;;  %v1462_v3 = vld [vmem:[%s2289_s1 + $0x70] sm:$0xff]  ;;  %v1461_v5 = vld [vmem:[%s2289_s1 + $0x68] sm:$0xff] }
   0x3   :  { %699 = vmatpush.bf16.msra.mxu1 %v1463_v1  ;;  %1663 = vmatpush.bf16.msra.mxu3 %v1463_v1  ;;  %v1452_v6 = vld [vmem:[%s2289_s1 + $0x20] sm:$0xff]  ;;  %v1451_v8 = vld [vmem:[%s2289_s1 + $0x18] sm:$0xff]  ;;  %v1450_v10 = vld [vmem:[%s2289_s1 + $0x10] sm:$0xff] }
   0x4   :  { %v1460_v7 = vld [vmem:[%s2289_s1 + $0x60] sm:$0xff]  ;;  %v1459_v9 = vld [vmem:[%s2289_s1 + $0x58] sm:$0xff]  ;;  %v1458_v11 = vld [vmem:[%s2289_s1 + $0x50] sm:$0xff] }
   0x5   :  { %v1449_v12 = vld [vmem:[%s2289_s1 + $0x8] sm:$0xff]  ;;  %v1448_v14 = vld [vmem:[%s2289_s1] sm:$0xff]  ;;  %v1074_v28 = vld [vmem:[%s2291_s0 + $0x10] sm:$0xf] }
   0x6   :  { %531 = vmatpush.bf16.msra.mxu0 %v1454_v2  ;;  %1656 = vmatpush.bf16.msra.mxu2 %v1454_v2  ;;  %v1457_v13 = vld [vmem:[%s2289_s1 + $0x48] sm:$0xff]  ;;  %v1456_v15 = vld [vmem:[%s2289_s1 + $0x40] sm:$0xff]  ;;  %v1387_v29 = vld [vmem:[%s2291_s0 + $0x14] sm:$0xf0] }
   0x7   :  { %700 = vmatpush.bf16.msra.mxu1 %v1462_v3  ;;  %1664 = vmatpush.bf16.msra.mxu3 %v1462_v3  ;;  %v1066_v16 = vld [vmem:[%s2291_s0] sm:$0xf]  ;;  %v1385_v17 = vld [vmem:[%s2291_s0 + $0x4] sm:$0xf0]  ;;  %v1384_v20 = vld [vmem:[%s2291_s0 + $0x4] sm:$0xf]  ;;  %v1075_v36 = vor.u32 %v1387_v29, %v1074_v28 }
   0x8   :  { %v1194_v18 = vld [vmem:[%s2291_s0 + $0x100] sm:$0xf]  ;;  %v1417_v19 = vld [vmem:[%s2291_s0 + $0x104] sm:$0xf0]  ;;  %v1068_v21 = vld [vmem:[%s2291_s0 + $0x8] sm:$0xf0]  ;;  %v1067_v24 = vor.u32 %v1385_v17, %v1066_v16 }
   0x9   :  { %v1416_v22 = vld [vmem:[%s2291_s0 + $0x104] sm:$0xf]  ;;  %v1196_v23 = vld [vmem:[%s2291_s0 + $0x108] sm:$0xf0]  ;;  %v1195_v25 = vor.u32 %v1417_v19, %v1194_v18  ;;  %v1071_v26 = vor.u32 %v1384_v20, %v1068_v21  ;;  %v1202_v30 = vld [vmem:[%s2291_s0 + $0x110] sm:$0xf] }
   0xa   :  { %532 = vmatpush.bf16.msra.mxu0 %v1453_v4  ;;  %1657 = vmatpush.bf16.msra.mxu2 %v1453_v4  ;;  %v1199_v27 = vor.u32 %v1416_v22, %v1196_v23  ;;  %v1419_v31 = vld [vmem:[%s2291_s0 + $0x114] sm:$0xf0]  ;;  %v1386_v32 = vld [vmem:[%s2291_s0 + $0x14] sm:$0xf]  ;;  %v1076_v33 = vld [vmem:[%s2291_s0 + $0x18] sm:$0xf0] }
   0xb   :  { %701 = vmatpush.bf16.msra.mxu1 %v1461_v5  ;;  %1665 = vmatpush.bf16.msra.mxu3 %v1461_v5  ;;  %v1418_v34 = vld [vmem:[%s2291_s0 + $0x114] sm:$0xf]  ;;  %v1204_v35 = vld [vmem:[%s2291_s0 + $0x118] sm:$0xf0]  ;;  %v1203_v37 = vor.u32 %v1419_v31, %v1202_v30  ;;  %v1079_v38 = vor.u32 %v1386_v32, %v1076_v33  ;;  %v1082_v40 = vld [vmem:[%s2291_s0 + $0x20] sm:$0xf] }
   0xc   :  { %v1207_v39 = vor.u32 %v1418_v34, %v1204_v35  ;;  %v1389_v41 = vld [vmem:[%s2291_s0 + $0x24] sm:$0xf0]  ;;  %v1210_v42 = vld [vmem:[%s2291_s0 + $0x120] sm:$0xf]  ;;  %v1388_v44 = vld [vmem:[%s2291_s0 + $0x24] sm:$0xf] }
   0xd   :  { %v1421_v43 = vld [vmem:[%s2291_s0 + $0x124] sm:$0xf0]  ;;  %v1084_v45 = vld [vmem:[%s2291_s0 + $0x28] sm:$0xf0]  ;;  %v1420_v46 = vld [vmem:[%s2291_s0 + $0x124] sm:$0xf]  ;;  %v1083_v48 = vor.u32 %v1389_v41, %v1082_v40 }
   0xe   :  { %533 = vmatpush.bf16.msra.mxu0 %v1452_v6  ;;  %1658 = vmatpush.bf16.msra.mxu2 %v1452_v6  ;;  %v1212_v47 = vld [vmem:[%s2291_s0 + $0x128] sm:$0xf0]  ;;  %v1211_v49 = vor.u32 %v1421_v43, %v1210_v42  ;;  %v1087_v50 = vor.u32 %v1388_v44, %v1084_v45  ;;  %v1090_v52 = vld [vmem:[%s2291_s0 + $0x30] sm:$0xf]  ;;  %v1391_v53 = vld [vmem:[%s2291_s0 + $0x34] sm:$0xf0] }
   0xf   :  { %702 = vmatpush.bf16.msra.mxu1 %v1460_v7  ;;  %1666 = vmatpush.bf16.msra.mxu3 %v1460_v7  ;;  %v1215_v51 = vor.u32 %v1420_v46, %v1212_v47  ;;  %v1218_v54 = vld [vmem:[%s2291_s0 + $0x130] sm:$0xf]  ;;  %v1423_v55 = vld [vmem:[%s2291_s0 + $0x134] sm:$0xf0]  ;;  %v1390_v56 = vld [vmem:[%s2291_s0 + $0x34] sm:$0xf]  ;;  %v1091_v60 = vor.u32 %v1391_v53, %v1090_v52 }
  0x10   :  { %v1092_v57 = vld [vmem:[%s2291_s0 + $0x38] sm:$0xf0]  ;;  %v1422_v58 = vld [vmem:[%s2291_s0 + $0x134] sm:$0xf]  ;;  %v1219_v61 = vor.u32 %v1423_v55, %v1218_v54  ;;  %v1098_v0 = vld [vmem:[%s2291_s0 + $0x40] sm:$0xf] }
  0x11   :  { %v1220_v59 = vld [vmem:[%s2291_s0 + $0x138] sm:$0xf0]  ;;  %v1095_v62 = vor.u32 %v1390_v56, %v1092_v57  ;;  %v1393_v1 = vld [vmem:[%s2291_s0 + $0x44] sm:$0xf0]  ;;  %v1226_v2 = vld [vmem:[%s2291_s0 + $0x140] sm:$0xf] }
  0x12   :  { %534 = vmatpush.bf16.msra.mxu0 %v1451_v8  ;;  %1659 = vmatpush.bf16.msra.mxu2 %v1451_v8  ;;  %v1223_v63 = vor.u32 %v1422_v58, %v1220_v59  ;;  %v1425_v3 = vld [vmem:[%s2291_s0 + $0x144] sm:$0xf0]  ;;  %v1392_v4 = vld [vmem:[%s2291_s0 + $0x44] sm:$0xf]  ;;  %v1100_v5 = vld [vmem:[%s2291_s0 + $0x48] sm:$0xf0]  ;;  %v1099_v8 = vor.u32 %v1393_v1, %v1098_v0 }
  0x13   :  { %703 = vmatpush.bf16.msra.mxu1 %v1459_v9  ;;  %1667 = vmatpush.bf16.msra.mxu3 %v1459_v9  ;;  %v1424_v6 = vld [vmem:[%s2291_s0 + $0x144] sm:$0xf]  ;;  %v1228_v7 = vld [vmem:[%s2291_s0 + $0x148] sm:$0xf0]  ;;  %v1227_v9 = vor.u32 %v1425_v3, %v1226_v2  ;;  %v1394_v16 = vld [vmem:[%s2291_s0 + $0x54] sm:$0xf] }
  0x14   :  { %v1108_v17 = vld [vmem:[%s2291_s0 + $0x58] sm:$0xf0]  ;;  %v1426_v18 = vld [vmem:[%s2291_s0 + $0x154] sm:$0xf]  ;;  %v1396_v28 = vld [vmem:[%s2291_s0 + $0x64] sm:$0xf] }
  0x15   :  { %v1236_v19 = vld [vmem:[%s2291_s0 + $0x158] sm:$0xf0]  ;;  %v1111_v22 = vor.u32 %v1394_v16, %v1108_v17  ;;  %v1116_v29 = vld [vmem:[%s2291_s0 + $0x68] sm:$0xf0]  ;;  %v1428_v30 = vld [vmem:[%s2291_s0 + $0x164] sm:$0xf] }
  0x16   :  { %535 = vmatpush.bf16.msra.mxu0 %v1450_v10  ;;  %1660 = vmatpush.bf16.msra.mxu2 %v1450_v10  ;;  %v1103_v10 = vor.u32 %v1392_v4, %v1100_v5  ;;  %v1239_v23 = vor.u32 %v1426_v18, %v1236_v19  ;;  %v1244_v31 = vld [vmem:[%s2291_s0 + $0x168] sm:$0xf0]  ;;  %v1119_v34 = vor.u32 %v1396_v28, %v1116_v29  ;;  %v1398_v40 = vld [vmem:[%s2291_s0 + $0x74] sm:$0xf]  ;;  %v1124_v41 = vld [vmem:[%s2291_s0 + $0x78] sm:$0xf0] }
  0x17   :  { %704 = vmatpush.bf16.msra.mxu1 %v1458_v11  ;;  %1668 = vmatpush.bf16.msra.mxu3 %v1458_v11  ;;  %v1231_v11 = vor.u32 %v1424_v6, %v1228_v7  ;;  %v1247_v35 = vor.u32 %v1428_v30, %v1244_v31  ;;  %v1430_v42 = vld [vmem:[%s2291_s0 + $0x174] sm:$0xf]  ;;  %v1252_v43 = vld [vmem:[%s2291_s0 + $0x178] sm:$0xf0]  ;;  %v1127_v46 = vor.u32 %v1398_v40, %v1124_v41  ;;  %v1400_v52 = vld [vmem:[%s2291_s0 + $0x84] sm:$0xf] }
  0x18   :  { %v1255_v47 = vor.u32 %v1430_v42, %v1252_v43  ;;  %v1132_v53 = vld [vmem:[%s2291_s0 + $0x88] sm:$0xf0]  ;;  %v1432_v54 = vld [vmem:[%s2291_s0 + $0x184] sm:$0xf]  ;;  %v1434_v16 = vld [vmem:[%s2291_s0 + $0x194] sm:$0xf] }
  0x19   :  { %v1260_v55 = vld [vmem:[%s2291_s0 + $0x188] sm:$0xf0]  ;;  %v1135_v59 = vor.u32 %v1400_v52, %v1132_v53  ;;  %v1268_v17 = vld [vmem:[%s2291_s0 + $0x198] sm:$0xf0]  ;;  %v1146_v42 = vld [vmem:[%s2291_s0 + $0xa0] sm:$0xf] }
  0x1a   :  { %536 = vmatpush.bf16.msra.mxu0 %v1449_v12  ;;  %1661 = vmatpush.bf16.msra.mxu2 %v1449_v12  ;;  %v1106_v12 = vld [vmem:[%s2291_s0 + $0x50] sm:$0xf]  ;;  %v1405_v43 = vld [vmem:[%s2291_s0 + $0xa4] sm:$0xf0] }
  0x1b   :  { %705 = vmatpush.bf16.msra.mxu1 %v1457_v13  ;;  %1669 = vmatpush.bf16.msra.mxu3 %v1457_v13  ;;  %v1395_v13 = vld [vmem:[%s2291_s0 + $0x54] sm:$0xf0]  ;;  %v1147_v53 = vor.u32 %v1405_v43, %v1146_v42 }
  0x1c   :  { %v1107_v20 = vor.u32 %v1395_v13, %v1106_v12  ;;  %v1402_v12 = vld [vmem:[%s2291_s0 + $0x94] sm:$0xf]  ;;  %v1140_v13 = vld [vmem:[%s2291_s0 + $0x98] sm:$0xf0] }
  0x1e   :  { %537 = vmatpush.bf16.msra.mxu0 %v1448_v14  ;;  %1662 = vmatpush.bf16.msra.mxu2 %v1448_v14  ;;  %v1234_v14 = vld [vmem:[%s2291_s0 + $0x150] sm:$0xf] }
  0x1f   :  { %706 = vmatpush.bf16.msra.mxu1 %v1456_v15  ;;  %1670 = vmatpush.bf16.msra.mxu3 %v1456_v15  ;;  %v1427_v15 = vld [vmem:[%s2291_s0 + $0x154] sm:$0xf0] }
  0x20   :  { %v1235_v21 = vor.u32 %v1427_v15, %v1234_v14 }
  0x21   :  { %538 = vmatmul.bf16.vlgmr.msra.gmra.mxu0 %v1067_v24  ;;  %618 = vmatmul.bf16.vlgmr.msra.gmra.mxu2 %v1195_v25  ;;  %v1114_v24 = vld [vmem:[%s2291_s0 + $0x60] sm:$0xf]  ;;  %v1397_v25 = vld [vmem:[%s2291_s0 + $0x64] sm:$0xf0] }
  0x22   :  { %707 = vmatmul.bf16.vlgmr.msra.gmra.mxu1 %v1071_v26  ;;  %787 = vmatmul.bf16.vlgmr.msra.gmra.mxu3 %v1199_v27  ;;  %v1242_v26 = vld [vmem:[%s2291_s0 + $0x160] sm:$0xf]  ;;  %v1429_v27 = vld [vmem:[%s2291_s0 + $0x164] sm:$0xf0]  ;;  %v1115_v32 = vor.u32 %v1397_v25, %v1114_v24 }
  0x23   :  { %v1243_v33 = vor.u32 %v1429_v27, %v1242_v26  ;;  %v1143_v26 = vor.u32 %v1402_v12, %v1140_v13  ;;  %v1271_v27 = vor.u32 %v1434_v16, %v1268_v17  ;;  %v1154_v13 = vld [vmem:[%s2291_s0 + $0xb0] sm:$0xf]  ;;  %v1439_v16 = vld [vmem:[%s2291_s0 + $0x1b4] sm:$0xf0]  ;;  %v1406_v17 = vld [vmem:[%s2291_s0 + $0xb4] sm:$0xf] }
  0x31   :  { %543 = vmatmul.bf16.gmra.mxu0 %v1075_v36  ;;  %623 = vmatmul.bf16.gmra.mxu2 %v1203_v37  ;;  %v1122_v36 = vld [vmem:[%s2291_s0 + $0x70] sm:$0xf]  ;;  %v1399_v37 = vld [vmem:[%s2291_s0 + $0x74] sm:$0xf0] }
  0x32   :  { %712 = vmatmul.bf16.gmra.mxu1 %v1079_v38  ;;  %792 = vmatmul.bf16.gmra.mxu3 %v1207_v39  ;;  %v1250_v38 = vld [vmem:[%s2291_s0 + $0x170] sm:$0xf]  ;;  %v1431_v39 = vld [vmem:[%s2291_s0 + $0x174] sm:$0xf0]  ;;  %v1123_v44 = vor.u32 %v1399_v37, %v1122_v36 }
  0x33   :  { %v1251_v45 = vor.u32 %v1431_v39, %v1250_v38 }
  0x41   :  { %548 = vmatmul.bf16.gmra.mxu0 %v1083_v48  ;;  %628 = vmatmul.bf16.gmra.mxu2 %v1211_v49  ;;  %v1130_v48 = vld [vmem:[%s2291_s0 + $0x80] sm:$0xf]  ;;  %v1401_v49 = vld [vmem:[%s2291_s0 + $0x84] sm:$0xf0] }
  0x42   :  { %717 = vmatmul.bf16.gmra.mxu1 %v1087_v50  ;;  %797 = vmatmul.bf16.gmra.mxu3 %v1215_v51  ;;  %v1258_v50 = vld [vmem:[%s2291_s0 + $0x180] sm:$0xf]  ;;  %v1433_v51 = vld [vmem:[%s2291_s0 + $0x184] sm:$0xf0]  ;;  %v1131_v56 = vor.u32 %v1401_v49, %v1130_v48 }
  0x43   :  { %v1259_v57 = vor.u32 %v1433_v51, %v1258_v50  ;;  %v1436_v50 = vld [vmem:[%s2291_s0 + $0x1a4] sm:$0xf]  ;;  %v1276_v51 = vld [vmem:[%s2291_s0 + $0x1a8] sm:$0xf0] }
  0x51   :  { %553 = vmatmul.bf16.gmra.mxu0 %v1091_v60  ;;  %633 = vmatmul.bf16.gmra.mxu2 %v1219_v61  ;;  %v1263_v60 = vor.u32 %v1432_v54, %v1260_v55  ;;  %v1959_v61 = vld [vmem:[%s2290_s2] ss:$0 sm:$0xff] }
  0x52   :  { %722 = vmatmul.bf16.gmra.mxu1 %v1095_v62  ;;  %802 = vmatmul.bf16.gmra.mxu3 %v1223_v63 }
  0x61   :  { %558 = vmatmul.bf16.gmra.mxu0 %v1099_v8  ;;  %638 = vmatmul.bf16.gmra.mxu2 %v1227_v9  ;;  %v1138_v8 = vld [vmem:[%s2291_s0 + $0x90] sm:$0xf]  ;;  %v1403_v9 = vld [vmem:[%s2291_s0 + $0x94] sm:$0xf0] }
  0x62   :  { %727 = vmatmul.bf16.gmra.mxu1 %v1103_v10  ;;  %807 = vmatmul.bf16.gmra.mxu3 %v1231_v11  ;;  %v1266_v10 = vld [vmem:[%s2291_s0 + $0x190] sm:$0xf]  ;;  %v1435_v11 = vld [vmem:[%s2291_s0 + $0x194] sm:$0xf0]  ;;  %v1139_v19 = vor.u32 %v1403_v9, %v1138_v8 }
  0x63   :  { %v1267_v24 = vor.u32 %v1435_v11, %v1266_v10 }
  0x71   :  { %563 = vmatmul.bf16.gmra.mxu0 %v1107_v20  ;;  %643 = vmatmul.bf16.gmra.mxu2 %v1235_v21 }
  0x72   :  { %732 = vmatmul.bf16.gmra.mxu1 %v1111_v22  ;;  %812 = vmatmul.bf16.gmra.mxu3 %v1239_v23 }
  0x81   :  { %568 = vmatmul.bf16.gmra.mxu0 %v1115_v32  ;;  %648 = vmatmul.bf16.gmra.mxu2 %v1243_v33 }
  0x82   :  { %737 = vmatmul.bf16.gmra.mxu1 %v1119_v34  ;;  %817 = vmatmul.bf16.gmra.mxu3 %v1247_v35 }
  0x91   :  { %573 = vmatmul.bf16.gmra.mxu0 %v1123_v44  ;;  %653 = vmatmul.bf16.gmra.mxu2 %v1251_v45  ;;  %v1274_v44 = vld [vmem:[%s2291_s0 + $0x1a0] sm:$0xf]  ;;  %v1437_v45 = vld [vmem:[%s2291_s0 + $0x1a4] sm:$0xf0] }
  0x92   :  { %742 = vmatmul.bf16.gmra.mxu1 %v1127_v46  ;;  %822 = vmatmul.bf16.gmra.mxu3 %v1255_v47  ;;  %v1404_v46 = vld [vmem:[%s2291_s0 + $0xa4] sm:$0xf]  ;;  %v1148_v47 = vld [vmem:[%s2291_s0 + $0xa8] sm:$0xf0] }
  0x9e   :  { %v539_v58 = vpop.f32.mrf.mxu0 }
  0x9f   :  { %v708_v62 = vpop.f32.mrf.mxu1  ;;  %v540_v63 = vadd.f32 %v1959_v61, %v539_v58  ;;  %v1275_v58 = vor.u32 %v1437_v45, %v1274_v44 }
  0xa1   :  { %578 = vmatmul.bf16.gmra.mxu0 %v1131_v56  ;;  %658 = vmatmul.bf16.gmra.mxu2 %v1259_v57  ;;  %v709_v3 = vadd.f32 %v708_v62, %v540_v63  ;;  %v1279_v62 = vor.u32 %v1436_v50, %v1276_v51  ;;  %v1441_v50 = vld [vmem:[%s2291_s0 + $0x1c4] sm:$0xf0]  ;;  %v1408_v51 = vld [vmem:[%s2291_s0 + $0xc4] sm:$0xf] }
  0xa2   :  { %747 = vmatmul.bf16.gmra.mxu1 %v1135_v59  ;;  %827 = vmatmul.bf16.gmra.mxu3 %v1263_v60  ;;  %v1151_v60 = vor.u32 %v1404_v46, %v1148_v47  ;;  %v1162_v47 = vld [vmem:[%s2291_s0 + $0xc0] sm:$0xf] }
  0xa3   :  { %v868_v14 = vmax.f32 %v709_v3, 0.0 }
  0xa4   :  { %v619_v0 = vpop.f32.mrf.mxu2 }
  0xa5   :  { %v788_v1 = vpop.f32.mrf.mxu3  ;;  %v620_v6 = vadd.f32 %v1959_v61, %v619_v0 }
  0xa6   :  { %v541_v2 = vpop.f32.mrf.mxu0 }
  0xa7   :  { %v542_v4 = vadd.f32 %v1959_v61, %v541_v2  ;;  %v710_v5 = vpop.f32.mrf.mxu1  ;;  %v789_v20 = vadd.f32 %v788_v1, %v620_v6 }
  0xa9   :  { %v711_v7 = vadd.f32 %v710_v5, %v542_v4  ;;  %v900_v30 = vmax.f32 %v789_v20, 0.0 }
  0xab   :  { %v869_v15 = vmax.f32 %v711_v7, 0.0 }
  0xac   :  { %v621_v18 = vpop.f32.mrf.mxu2 }
  0xad   :  { %v1467_v21 = vpack.c.bf16 %v869_v15, %v868_v14  ;;  %v622_v22 = vadd.f32 %v1959_v61, %v621_v18  ;;  %v790_v23 = vpop.f32.mrf.mxu3  ;;  %v1407_v14 = vld [vmem:[%s2291_s0 + $0xb4] sm:$0xf0]  ;;  %v1282_v15 = vld [vmem:[%s2291_s0 + $0x1b0] sm:$0xf]  ;;  %v1156_v18 = vld [vmem:[%s2291_s0 + $0xb8] sm:$0xf0] }
  0xae   :  { %v544_v25 = vpop.f32.mrf.mxu0 }
  0xaf   :  { %1468 = vst [vmem:[%s2292_s3] sm:$0xff] %v1467_v21   ;;  %v791_v28 = vadd.f32 %v790_v23, %v622_v22  ;;  %v713_v29 = vpop.f32.mrf.mxu1  ;;  %v545_v33 = vadd.f32 %v1959_v61, %v544_v25  ;;  %v1438_v21 = vld [vmem:[%s2291_s0 + $0x1b4] sm:$0xf]  ;;  %v1284_v22 = vld [vmem:[%s2291_s0 + $0x1b8] sm:$0xf0] }
  0xb1   :  { %v901_v31 = vmax.f32 %v791_v28, 0.0  ;;  %583 = vmatmul.bf16.gmra.mxu0 %v1139_v19  ;;  %663 = vmatmul.bf16.gmra.mxu2 %v1267_v24  ;;  %v714_v37 = vadd.f32 %v713_v29, %v545_v33  ;;  %v1155_v24 = vor.u32 %v1407_v14, %v1154_v13  ;;  %v1283_v29 = vor.u32 %v1439_v16, %v1282_v15 }
  0xb2   :  { %752 = vmatmul.bf16.gmra.mxu1 %v1143_v26  ;;  %832 = vmatmul.bf16.gmra.mxu3 %v1271_v27 }
  0xb3   :  { %v1547_v32 = vpack.c.bf16 %v901_v31, %v900_v30  ;;  %v870_v48 = vmax.f32 %v714_v37, 0.0  ;;  %v1159_v31 = vor.u32 %v1406_v17, %v1156_v18  ;;  %v1170_v18 = vld [vmem:[%s2291_s0 + $0xd0] sm:$0xf] }
  0xb4   :  { %v624_v34 = vpop.f32.mrf.mxu2 }
  0xb5   :  { %1639 = vst [vmem:[%s2292_s3 + $0x80] sm:$0xff] %v1547_v32   ;;  %v793_v35 = vpop.f32.mrf.mxu3  ;;  %v625_v40 = vadd.f32 %v1959_v61, %v624_v34  ;;  %v1287_v32 = vor.u32 %v1438_v21, %v1284_v22  ;;  %v1443_v21 = vld [vmem:[%s2291_s0 + $0x1d4] sm:$0xf0]  ;;  %v1410_v22 = vld [vmem:[%s2291_s0 + $0xd4] sm:$0xf] }
  0xb6   :  { %v546_v36 = vpop.f32.mrf.mxu0 }
  0xb7   :  { %v547_v38 = vadd.f32 %v1959_v61, %v546_v36  ;;  %v715_v39 = vpop.f32.mrf.mxu1  ;;  %v794_v54 = vadd.f32 %v793_v35, %v625_v40 }
  0xb9   :  { %v716_v41 = vadd.f32 %v715_v39, %v547_v38  ;;  %v902_v1 = vmax.f32 %v794_v54, 0.0 }
  0xbb   :  { %v871_v49 = vmax.f32 %v716_v41, 0.0 }
  0xbc   :  { %v626_v52 = vpop.f32.mrf.mxu2 }
  0xbd   :  { %v1472_v55 = vpack.c.bf16 %v871_v49, %v870_v48  ;;  %v627_v56 = vadd.f32 %v1959_v61, %v626_v52  ;;  %v795_v57 = vpop.f32.mrf.mxu3  ;;  %v1409_v48 = vld [vmem:[%s2291_s0 + $0xc4] sm:$0xf0]  ;;  %v1290_v49 = vld [vmem:[%s2291_s0 + $0x1c0] sm:$0xf]  ;;  %v1164_v52 = vld [vmem:[%s2291_s0 + $0xc8] sm:$0xf0] }
  0xbe   :  { %v549_v59 = vpop.f32.mrf.mxu0 }
  0xbf   :  { %1624 = vst [vmem:[%s2292_s3 + $0x8] sm:$0xff] %v1472_v55   ;;  %v796_v63 = vadd.f32 %v795_v57, %v627_v56  ;;  %v718_v0 = vpop.f32.mrf.mxu1  ;;  %v550_v4 = vadd.f32 %v1959_v61, %v549_v59  ;;  %v1440_v55 = vld [vmem:[%s2291_s0 + $0x1c4] sm:$0xf]  ;;  %v1292_v56 = vld [vmem:[%s2291_s0 + $0x1c8] sm:$0xf0] }
  0xc1   :  { %v903_v2 = vmax.f32 %v796_v63, 0.0  ;;  %588 = vmatmul.bf16.gmra.mxu0 %v1147_v53  ;;  %668 = vmatmul.bf16.gmra.mxu2 %v1275_v58  ;;  %v719_v8 = vadd.f32 %v718_v0, %v550_v4  ;;  %v1163_v58 = vor.u32 %v1409_v48, %v1162_v47  ;;  %v1291_v0 = vor.u32 %v1441_v50, %v1290_v49 }
  0xc2   :  { %757 = vmatmul.bf16.gmra.mxu1 %v1151_v60  ;;  %837 = vmatmul.bf16.gmra.mxu3 %v1279_v62 }
  0xc3   :  { %v1552_v3 = vpack.c.bf16 %v903_v2, %v902_v1  ;;  %v872_v19 = vmax.f32 %v719_v8, 0.0  ;;  %v1167_v2 = vor.u32 %v1408_v51, %v1164_v52  ;;  %v1178_v52 = vld [vmem:[%s2291_s0 + $0xe0] sm:$0xf] }
  0xc4   :  { %v629_v5 = vpop.f32.mrf.mxu2 }
  0xc5   :  { %1640 = vst [vmem:[%s2292_s3 + $0x88] sm:$0xff] %v1552_v3   ;;  %v798_v6 = vpop.f32.mrf.mxu3  ;;  %v630_v11 = vadd.f32 %v1959_v61, %v629_v5  ;;  %v1295_v3 = vor.u32 %v1440_v55, %v1292_v56  ;;  %v1445_v55 = vld [vmem:[%s2291_s0 + $0x1e4] sm:$0xf0]  ;;  %v1412_v56 = vld [vmem:[%s2291_s0 + $0xe4] sm:$0xf] }
  0xc6   :  { %v551_v7 = vpop.f32.mrf.mxu0 }
  0xc7   :  { %v552_v9 = vadd.f32 %v1959_v61, %v551_v7  ;;  %v720_v10 = vpop.f32.mrf.mxu1  ;;  %v799_v25 = vadd.f32 %v798_v6, %v630_v11 }
  0xc9   :  { %v721_v12 = vadd.f32 %v720_v10, %v552_v9  ;;  %v904_v35 = vmax.f32 %v799_v25, 0.0 }
  0xcb   :  { %v873_v20 = vmax.f32 %v721_v12, 0.0 }
  0xcc   :  { %v631_v23 = vpop.f32.mrf.mxu2 }
  0xcd   :  { %v1477_v26 = vpack.c.bf16 %v873_v20, %v872_v19  ;;  %v632_v27 = vadd.f32 %v1959_v61, %v631_v23  ;;  %v800_v28 = vpop.f32.mrf.mxu3  ;;  %v1411_v19 = vld [vmem:[%s2291_s0 + $0xd4] sm:$0xf0]  ;;  %v1298_v20 = vld [vmem:[%s2291_s0 + $0x1d0] sm:$0xf]  ;;  %v1172_v23 = vld [vmem:[%s2291_s0 + $0xd8] sm:$0xf0] }
  0xce   :  { %v554_v30 = vpop.f32.mrf.mxu0 }
  0xcf   :  { %1625 = vst [vmem:[%s2292_s3 + $0x10] sm:$0xff] %v1477_v26   ;;  %v801_v33 = vadd.f32 %v800_v28, %v632_v27  ;;  %v723_v34 = vpop.f32.mrf.mxu1  ;;  %v555_v38 = vadd.f32 %v1959_v61, %v554_v30  ;;  %v1442_v26 = vld [vmem:[%s2291_s0 + $0x1d4] sm:$0xf]  ;;  %v1300_v27 = vld [vmem:[%s2291_s0 + $0x1d8] sm:$0xf0] }
  0xd1   :  { %v905_v36 = vmax.f32 %v801_v33, 0.0  ;;  %593 = vmatmul.bf16.gmra.mxu0 %v1155_v24  ;;  %673 = vmatmul.bf16.gmra.mxu2 %v1283_v29  ;;  %v724_v42 = vadd.f32 %v723_v34, %v555_v38  ;;  %v1171_v29 = vor.u32 %v1411_v19, %v1170_v18  ;;  %v1299_v34 = vor.u32 %v1443_v21, %v1298_v20 }
  0xd2   :  { %762 = vmatmul.bf16.gmra.mxu1 %v1159_v31  ;;  %842 = vmatmul.bf16.gmra.mxu3 %v1287_v32 }
  0xd3   :  { %v1557_v37 = vpack.c.bf16 %v905_v36, %v904_v35  ;;  %v874_v53 = vmax.f32 %v724_v42, 0.0  ;;  %v1175_v36 = vor.u32 %v1410_v22, %v1172_v23  ;;  %v1186_v23 = vld [vmem:[%s2291_s0 + $0xf0] sm:$0xf] }
  0xd4   :  { %v634_v39 = vpop.f32.mrf.mxu2 }
  0xd5   :  { %1641 = vst [vmem:[%s2292_s3 + $0x90] sm:$0xff] %v1557_v37   ;;  %v803_v40 = vpop.f32.mrf.mxu3  ;;  %v635_v45 = vadd.f32 %v1959_v61, %v634_v39  ;;  %v1303_v37 = vor.u32 %v1442_v26, %v1300_v27  ;;  %v1447_v26 = vld [vmem:[%s2291_s0 + $0x1f4] sm:$0xf0]  ;;  %v1414_v27 = vld [vmem:[%s2291_s0 + $0xf4] sm:$0xf] }
  0xd6   :  { %v556_v41 = vpop.f32.mrf.mxu0 }
  0xd7   :  { %v557_v43 = vadd.f32 %v1959_v61, %v556_v41  ;;  %v725_v44 = vpop.f32.mrf.mxu1  ;;  %v804_v59 = vadd.f32 %v803_v40, %v635_v45 }
  0xd9   :  { %v726_v46 = vadd.f32 %v725_v44, %v557_v43  ;;  %v906_v6 = vmax.f32 %v804_v59, 0.0 }
  0xdb   :  { %v875_v54 = vmax.f32 %v726_v46, 0.0 }
  0xdc   :  { %v636_v57 = vpop.f32.mrf.mxu2 }
  0xdd   :  { %v1482_v60 = vpack.c.bf16 %v875_v54, %v874_v53  ;;  %v637_v62 = vadd.f32 %v1959_v61, %v636_v57  ;;  %v805_v63 = vpop.f32.mrf.mxu3  ;;  %v1413_v53 = vld [vmem:[%s2291_s0 + $0xe4] sm:$0xf0]  ;;  %v1306_v54 = vld [vmem:[%s2291_s0 + $0x1e0] sm:$0xf]  ;;  %v1180_v57 = vld [vmem:[%s2291_s0 + $0xe8] sm:$0xf0] }
  0xde   :  { %v559_v1 = vpop.f32.mrf.mxu0 }
  0xdf   :  { %1626 = vst [vmem:[%s2292_s3 + $0x18] sm:$0xff] %v1482_v60   ;;  %v806_v4 = vadd.f32 %v805_v63, %v637_v62  ;;  %v728_v5 = vpop.f32.mrf.mxu1  ;;  %v560_v9 = vadd.f32 %v1959_v61, %v559_v1  ;;  %v1444_v60 = vld [vmem:[%s2291_s0 + $0x1e4] sm:$0xf]  ;;  %v1308_v62 = vld [vmem:[%s2291_s0 + $0x1e8] sm:$0xf0] }
  0xe1   :  { %v907_v7 = vmax.f32 %v806_v4, 0.0  ;;  %598 = vmatmul.bf16.gmra.mxu0 %v1163_v58  ;;  %678 = vmatmul.bf16.gmra.mxu2 %v1291_v0  ;;  %v729_v13 = vadd.f32 %v728_v5, %v560_v9  ;;  %v1179_v0 = vor.u32 %v1413_v53, %v1178_v52  ;;  %v1307_v5 = vor.u32 %v1445_v55, %v1306_v54 }
  0xe2   :  { %767 = vmatmul.bf16.gmra.mxu1 %v1167_v2  ;;  %847 = vmatmul.bf16.gmra.mxu3 %v1295_v3 }
  0xe3   :  { %v1562_v8 = vpack.c.bf16 %v907_v7, %v906_v6  ;;  %v876_v24 = vmax.f32 %v729_v13, 0.0  ;;  %v1183_v7 = vor.u32 %v1412_v56, %v1180_v57 }
  0xe4   :  { %v639_v10 = vpop.f32.mrf.mxu2 }
  0xe5   :  { %1642 = vst [vmem:[%s2292_s3 + $0x98] sm:$0xff] %v1562_v8   ;;  %v808_v11 = vpop.f32.mrf.mxu3  ;;  %v640_v16 = vadd.f32 %v1959_v61, %v639_v10  ;;  %v1311_v8 = vor.u32 %v1444_v60, %v1308_v62 }
  0xe6   :  { %v561_v12 = vpop.f32.mrf.mxu0 }
  0xe7   :  { %v562_v14 = vadd.f32 %v1959_v61, %v561_v12  ;;  %v730_v15 = vpop.f32.mrf.mxu1  ;;  %v809_v30 = vadd.f32 %v808_v11, %v640_v16 }
  0xe9   :  { %v731_v17 = vadd.f32 %v730_v15, %v562_v14  ;;  %v908_v40 = vmax.f32 %v809_v30, 0.0 }
  0xeb   :  { %v877_v25 = vmax.f32 %v731_v17, 0.0 }
  0xec   :  { %v641_v28 = vpop.f32.mrf.mxu2 }
  0xed   :  { %v1487_v31 = vpack.c.bf16 %v877_v25, %v876_v24  ;;  %v642_v32 = vadd.f32 %v1959_v61, %v641_v28  ;;  %v810_v33 = vpop.f32.mrf.mxu3  ;;  %v1415_v24 = vld [vmem:[%s2291_s0 + $0xf4] sm:$0xf0]  ;;  %v1314_v25 = vld [vmem:[%s2291_s0 + $0x1f0] sm:$0xf]  ;;  %v1188_v28 = vld [vmem:[%s2291_s0 + $0xf8] sm:$0xf0] }
  0xee   :  { %v564_v35 = vpop.f32.mrf.mxu0 }
  0xef   :  { %1627 = vst [vmem:[%s2292_s3 + $0x20] sm:$0xff] %v1487_v31   ;;  %v811_v38 = vadd.f32 %v810_v33, %v642_v32  ;;  %v733_v39 = vpop.f32.mrf.mxu1  ;;  %v565_v43 = vadd.f32 %v1959_v61, %v564_v35  ;;  %v1446_v31 = vld [vmem:[%s2291_s0 + $0x1f4] sm:$0xf]  ;;  %v1316_v32 = vld [vmem:[%s2291_s0 + $0x1f8] sm:$0xf0] }
  0xf1   :  { %v909_v41 = vmax.f32 %v811_v38, 0.0  ;;  %603 = vmatmul.bf16.gmra.mxu0 %v1171_v29  ;;  %683 = vmatmul.bf16.gmra.mxu2 %v1299_v34  ;;  %v734_v47 = vadd.f32 %v733_v39, %v565_v43  ;;  %v1187_v34 = vor.u32 %v1415_v24, %v1186_v23  ;;  %v1315_v39 = vor.u32 %v1447_v26, %v1314_v25 }
  0xf2   :  { %772 = vmatmul.bf16.gmra.mxu1 %v1175_v36  ;;  %852 = vmatmul.bf16.gmra.mxu3 %v1303_v37 }
  0xf3   :  { %v1567_v42 = vpack.c.bf16 %v909_v41, %v908_v40  ;;  %v878_v58 = vmax.f32 %v734_v47, 0.0  ;;  %v1191_v41 = vor.u32 %v1414_v27, %v1188_v28 }
  0xf4   :  { %v644_v44 = vpop.f32.mrf.mxu2 }
  0xf5   :  { %1643 = vst [vmem:[%s2292_s3 + $0xa0] sm:$0xff] %v1567_v42   ;;  %v813_v45 = vpop.f32.mrf.mxu3  ;;  %v645_v50 = vadd.f32 %v1959_v61, %v644_v44  ;;  %v1319_v42 = vor.u32 %v1446_v31, %v1316_v32 }
  0xf6   :  { %v566_v46 = vpop.f32.mrf.mxu0 }
  0xf7   :  { %v567_v48 = vadd.f32 %v1959_v61, %v566_v46  ;;  %v735_v49 = vpop.f32.mrf.mxu1  ;;  %v814_v1 = vadd.f32 %v813_v45, %v645_v50 }
  0xf9   :  { %v736_v51 = vadd.f32 %v735_v49, %v567_v48  ;;  %v910_v11 = vmax.f32 %v814_v1, 0.0 }
  0xfb   :  { %v879_v59 = vmax.f32 %v736_v51, 0.0 }
  0xfc   :  { %v646_v63 = vpop.f32.mrf.mxu2 }
  0xfd   :  { %v1492_v2 = vpack.c.bf16 %v879_v59, %v878_v58  ;;  %v647_v3 = vadd.f32 %v1959_v61, %v646_v63  ;;  %v815_v4 = vpop.f32.mrf.mxu3 }
  0xfe   :  { %v569_v6 = vpop.f32.mrf.mxu0 }
  0xff   :  { %1628 = vst [vmem:[%s2292_s3 + $0x28] sm:$0xff] %v1492_v2   ;;  %v816_v9 = vadd.f32 %v815_v4, %v647_v3  ;;  %v738_v10 = vpop.f32.mrf.mxu1  ;;  %v570_v14 = vadd.f32 %v1959_v61, %v569_v6 }
 0x101   :  { %v911_v12 = vmax.f32 %v816_v9, 0.0  ;;  %608 = vmatmul.bf16.gmra.mxu0 %v1179_v0  ;;  %688 = vmatmul.bf16.gmra.mxu2 %v1307_v5  ;;  %v739_v18 = vadd.f32 %v738_v10, %v570_v14 }
 0x102   :  { %777 = vmatmul.bf16.gmra.mxu1 %v1183_v7  ;;  %857 = vmatmul.bf16.gmra.mxu3 %v1311_v8 }
 0x103   :  { %v1572_v13 = vpack.c.bf16 %v911_v12, %v910_v11  ;;  %v880_v29 = vmax.f32 %v739_v18, 0.0 }
 0x104   :  { %v649_v15 = vpop.f32.mrf.mxu2 }
 0x105   :  { %1644 = vst [vmem:[%s2292_s3 + $0xa8] sm:$0xff] %v1572_v13   ;;  %v818_v16 = vpop.f32.mrf.mxu3  ;;  %v650_v21 = vadd.f32 %v1959_v61, %v649_v15 }
 0x106   :  { %v571_v17 = vpop.f32.mrf.mxu0 }
 0x107   :  { %v572_v19 = vadd.f32 %v1959_v61, %v571_v17  ;;  %v740_v20 = vpop.f32.mrf.mxu1  ;;  %v819_v35 = vadd.f32 %v818_v16, %v650_v21 }
 0x109   :  { %v741_v22 = vadd.f32 %v740_v20, %v572_v19  ;;  %v912_v45 = vmax.f32 %v819_v35, 0.0 }
 0x10b   :  { %v881_v30 = vmax.f32 %v741_v22, 0.0 }
 0x10c   :  { %v651_v33 = vpop.f32.mrf.mxu2 }
 0x10d   :  { %v1497_v36 = vpack.c.bf16 %v881_v30, %v880_v29  ;;  %v652_v37 = vadd.f32 %v1959_v61, %v651_v33  ;;  %v820_v38 = vpop.f32.mrf.mxu3 }
 0x10e   :  { %v574_v40 = vpop.f32.mrf.mxu0 }
 0x10f   :  { %1629 = vst [vmem:[%s2292_s3 + $0x30] sm:$0xff] %v1497_v36   ;;  %v821_v43 = vadd.f32 %v820_v38, %v652_v37  ;;  %v743_v44 = vpop.f32.mrf.mxu1  ;;  %v575_v48 = vadd.f32 %v1959_v61, %v574_v40 }
 0x111   :  { %v913_v46 = vmax.f32 %v821_v43, 0.0  ;;  %613 = vmatmul.bf16.gmra.mxu0 %v1187_v34  ;;  %693 = vmatmul.bf16.gmra.mxu2 %v1315_v39  ;;  %v744_v52 = vadd.f32 %v743_v44, %v575_v48 }
 0x112   :  { %782 = vmatmul.bf16.gmra.mxu1 %v1191_v41  ;;  %862 = vmatmul.bf16.gmra.mxu3 %v1319_v42 }
 0x113   :  { %v1577_v47 = vpack.c.bf16 %v913_v46, %v912_v45  ;;  %v882_v57 = vmax.f32 %v744_v52, 0.0 }
 0x114   :  { %v654_v49 = vpop.f32.mrf.mxu2 }
 0x115   :  { %1645 = vst [vmem:[%s2292_s3 + $0xb0] sm:$0xff] %v1577_v47   ;;  %v823_v50 = vpop.f32.mrf.mxu3  ;;  %v655_v55 = vadd.f32 %v1959_v61, %v654_v49 }
 0x116   :  { %v576_v51 = vpop.f32.mrf.mxu0 }
 0x117   :  { %v577_v53 = vadd.f32 %v1959_v61, %v576_v51  ;;  %v745_v54 = vpop.f32.mrf.mxu1  ;;  %v824_v60 = vadd.f32 %v823_v50, %v655_v55 }
 0x119   :  { %v746_v56 = vadd.f32 %v745_v54, %v577_v53  ;;  %v914_v4 = vmax.f32 %v824_v60, 0.0 }
 0x11b   :  { %v883_v58 = vmax.f32 %v746_v56, 0.0 }
 0x11c   :  { %v656_v59 = vpop.f32.mrf.mxu2 }
 0x11d   :  { %v1502_v62 = vpack.c.bf16 %v883_v58, %v882_v57  ;;  %v657_v63 = vadd.f32 %v1959_v61, %v656_v59  ;;  %v825_v0 = vpop.f32.mrf.mxu3 }
 0x11e   :  { %v579_v1 = vpop.f32.mrf.mxu0 }
 0x11f   :  { %1630 = vst [vmem:[%s2292_s3 + $0x38] sm:$0xff] %v1502_v62   ;;  %v826_v2 = vadd.f32 %v825_v0, %v657_v63  ;;  %v748_v3 = vpop.f32.mrf.mxu1  ;;  %v580_v7 = vadd.f32 %v1959_v61, %v579_v1 }
 0x121   :  { %v915_v5 = vmax.f32 %v826_v2, 0.0  ;;  %v749_v11 = vadd.f32 %v748_v3, %v580_v7 }
 0x123   :  { %v1582_v6 = vpack.c.bf16 %v915_v5, %v914_v4  ;;  %v884_v16 = vmax.f32 %v749_v11, 0.0 }
 0x124   :  { %v659_v8 = vpop.f32.mrf.mxu2 }
 0x125   :  { %1646 = vst [vmem:[%s2292_s3 + $0xb8] sm:$0xff] %v1582_v6   ;;  %v828_v9 = vpop.f32.mrf.mxu3  ;;  %v660_v14 = vadd.f32 %v1959_v61, %v659_v8 }
 0x126   :  { %v581_v10 = vpop.f32.mrf.mxu0 }
 0x127   :  { %v582_v12 = vadd.f32 %v1959_v61, %v581_v10  ;;  %v750_v13 = vpop.f32.mrf.mxu1  ;;  %v829_v19 = vadd.f32 %v828_v9, %v660_v14 }
 0x129   :  { %v751_v15 = vadd.f32 %v750_v13, %v582_v12  ;;  %v916_v26 = vmax.f32 %v829_v19, 0.0 }
 0x12b   :  { %v885_v17 = vmax.f32 %v751_v15, 0.0 }
 0x12c   :  { %v661_v18 = vpop.f32.mrf.mxu2 }
 0x12d   :  { %v1507_v20 = vpack.c.bf16 %v885_v17, %v884_v16  ;;  %v662_v21 = vadd.f32 %v1959_v61, %v661_v18  ;;  %v830_v22 = vpop.f32.mrf.mxu3 }
 0x12e   :  { %v584_v23 = vpop.f32.mrf.mxu0 }
 0x12f   :  { %1631 = vst [vmem:[%s2292_s3 + $0x40] sm:$0xff] %v1507_v20   ;;  %v831_v24 = vadd.f32 %v830_v22, %v662_v21  ;;  %v753_v25 = vpop.f32.mrf.mxu1  ;;  %v585_v29 = vadd.f32 %v1959_v61, %v584_v23 }
 0x131   :  { %v917_v27 = vmax.f32 %v831_v24, 0.0  ;;  %v754_v33 = vadd.f32 %v753_v25, %v585_v29 }
 0x133   :  { %v1587_v28 = vpack.c.bf16 %v917_v27, %v916_v26  ;;  %v886_v38 = vmax.f32 %v754_v33, 0.0 }
 0x134   :  { %v664_v30 = vpop.f32.mrf.mxu2 }
 0x135   :  { %1647 = vst [vmem:[%s2292_s3 + $0xc0] sm:$0xff] %v1587_v28   ;;  %v833_v31 = vpop.f32.mrf.mxu3  ;;  %v665_v36 = vadd.f32 %v1959_v61, %v664_v30 }
 0x136   :  { %v586_v32 = vpop.f32.mrf.mxu0 }
 0x137   :  { %v587_v34 = vadd.f32 %v1959_v61, %v586_v32  ;;  %v755_v35 = vpop.f32.mrf.mxu1  ;;  %v834_v41 = vadd.f32 %v833_v31, %v665_v36 }
 0x139   :  { %v756_v37 = vadd.f32 %v755_v35, %v587_v34  ;;  %v918_v48 = vmax.f32 %v834_v41, 0.0 }
 0x13b   :  { %v887_v39 = vmax.f32 %v756_v37, 0.0 }
 0x13c   :  { %v666_v40 = vpop.f32.mrf.mxu2 }
 0x13d   :  { %v1512_v42 = vpack.c.bf16 %v887_v39, %v886_v38  ;;  %v667_v43 = vadd.f32 %v1959_v61, %v666_v40  ;;  %v835_v44 = vpop.f32.mrf.mxu3 }
 0x13e   :  { %v589_v45 = vpop.f32.mrf.mxu0 }
 0x13f   :  { %1632 = vst [vmem:[%s2292_s3 + $0x48] sm:$0xff] %v1512_v42   ;;  %v836_v46 = vadd.f32 %v835_v44, %v667_v43  ;;  %v758_v47 = vpop.f32.mrf.mxu1  ;;  %v590_v51 = vadd.f32 %v1959_v61, %v589_v45 }
 0x141   :  { %v919_v49 = vmax.f32 %v836_v46, 0.0  ;;  %v759_v55 = vadd.f32 %v758_v47, %v590_v51 }
 0x143   :  { %v1592_v50 = vpack.c.bf16 %v919_v49, %v918_v48  ;;  %v888_v60 = vmax.f32 %v759_v55, 0.0 }
 0x144   :  { %v669_v52 = vpop.f32.mrf.mxu2 }
 0x145   :  { %1648 = vst [vmem:[%s2292_s3 + $0xc8] sm:$0xff] %v1592_v50   ;;  %v838_v53 = vpop.f32.mrf.mxu3  ;;  %v670_v58 = vadd.f32 %v1959_v61, %v669_v52 }
 0x146   :  { %v591_v54 = vpop.f32.mrf.mxu0 }
 0x147   :  { %v592_v56 = vadd.f32 %v1959_v61, %v591_v54  ;;  %v760_v57 = vpop.f32.mrf.mxu1  ;;  %v839_v0 = vadd.f32 %v838_v53, %v670_v58 }
 0x149   :  { %v761_v59 = vadd.f32 %v760_v57, %v592_v56  ;;  %v920_v7 = vmax.f32 %v839_v0, 0.0 }
 0x14b   :  { %v889_v62 = vmax.f32 %v761_v59, 0.0 }
 0x14c   :  { %v671_v63 = vpop.f32.mrf.mxu2 }
 0x14d   :  { %v1517_v1 = vpack.c.bf16 %v889_v62, %v888_v60  ;;  %v672_v2 = vadd.f32 %v1959_v61, %v671_v63  ;;  %v840_v3 = vpop.f32.mrf.mxu3 }
 0x14e   :  { %v594_v4 = vpop.f32.mrf.mxu0 }
 0x14f   :  { %1633 = vst [vmem:[%s2292_s3 + $0x50] sm:$0xff] %v1517_v1   ;;  %v841_v5 = vadd.f32 %v840_v3, %v672_v2  ;;  %v763_v6 = vpop.f32.mrf.mxu1  ;;  %v595_v10 = vadd.f32 %v1959_v61, %v594_v4 }
 0x151   :  { %v921_v8 = vmax.f32 %v841_v5, 0.0  ;;  %v764_v14 = vadd.f32 %v763_v6, %v595_v10 }
 0x153   :  { %v1597_v9 = vpack.c.bf16 %v921_v8, %v920_v7  ;;  %v890_v19 = vmax.f32 %v764_v14, 0.0 }
 0x154   :  { %v674_v11 = vpop.f32.mrf.mxu2 }
 0x155   :  { %1649 = vst [vmem:[%s2292_s3 + $0xd0] sm:$0xff] %v1597_v9   ;;  %v843_v12 = vpop.f32.mrf.mxu3  ;;  %v675_v17 = vadd.f32 %v1959_v61, %v674_v11 }
 0x156   :  { %v596_v13 = vpop.f32.mrf.mxu0 }
 0x157   :  { %v597_v15 = vadd.f32 %v1959_v61, %v596_v13  ;;  %v765_v16 = vpop.f32.mrf.mxu1  ;;  %v844_v22 = vadd.f32 %v843_v12, %v675_v17 }
 0x159   :  { %v766_v18 = vadd.f32 %v765_v16, %v597_v15  ;;  %v922_v29 = vmax.f32 %v844_v22, 0.0 }
 0x15b   :  { %v891_v20 = vmax.f32 %v766_v18, 0.0 }
 0x15c   :  { %v676_v21 = vpop.f32.mrf.mxu2 }
 0x15d   :  { %v1522_v23 = vpack.c.bf16 %v891_v20, %v890_v19  ;;  %v677_v24 = vadd.f32 %v1959_v61, %v676_v21  ;;  %v845_v25 = vpop.f32.mrf.mxu3 }
 0x15e   :  { %v599_v26 = vpop.f32.mrf.mxu0 }
 0x15f   :  { %1634 = vst [vmem:[%s2292_s3 + $0x58] sm:$0xff] %v1522_v23   ;;  %v846_v27 = vadd.f32 %v845_v25, %v677_v24  ;;  %v768_v28 = vpop.f32.mrf.mxu1  ;;  %v600_v32 = vadd.f32 %v1959_v61, %v599_v26 }
 0x161   :  { %v923_v30 = vmax.f32 %v846_v27, 0.0  ;;  %v769_v36 = vadd.f32 %v768_v28, %v600_v32 }
 0x163   :  { %v1602_v31 = vpack.c.bf16 %v923_v30, %v922_v29  ;;  %v892_v41 = vmax.f32 %v769_v36, 0.0 }
 0x164   :  { %v679_v33 = vpop.f32.mrf.mxu2 }
 0x165   :  { %1650 = vst [vmem:[%s2292_s3 + $0xd8] sm:$0xff] %v1602_v31   ;;  %v848_v34 = vpop.f32.mrf.mxu3  ;;  %v680_v39 = vadd.f32 %v1959_v61, %v679_v33 }
 0x166   :  { %v601_v35 = vpop.f32.mrf.mxu0 }
 0x167   :  { %v602_v37 = vadd.f32 %v1959_v61, %v601_v35  ;;  %v770_v38 = vpop.f32.mrf.mxu1  ;;  %v849_v44 = vadd.f32 %v848_v34, %v680_v39 }
 0x169   :  { %v771_v40 = vadd.f32 %v770_v38, %v602_v37  ;;  %v924_v51 = vmax.f32 %v849_v44, 0.0 }
 0x16b   :  { %v893_v42 = vmax.f32 %v771_v40, 0.0 }
 0x16c   :  { %v681_v43 = vpop.f32.mrf.mxu2 }
 0x16d   :  { %v1527_v45 = vpack.c.bf16 %v893_v42, %v892_v41  ;;  %v682_v46 = vadd.f32 %v1959_v61, %v681_v43  ;;  %v850_v47 = vpop.f32.mrf.mxu3 }
 0x16e   :  { %v604_v48 = vpop.f32.mrf.mxu0 }
 0x16f   :  { %1635 = vst [vmem:[%s2292_s3 + $0x60] sm:$0xff] %v1527_v45   ;;  %v851_v49 = vadd.f32 %v850_v47, %v682_v46  ;;  %v773_v50 = vpop.f32.mrf.mxu1  ;;  %v605_v54 = vadd.f32 %v1959_v61, %v604_v48 }
 0x171   :  { %v925_v52 = vmax.f32 %v851_v49, 0.0  ;;  %v774_v58 = vadd.f32 %v773_v50, %v605_v54 }
 0x173   :  { %v1607_v53 = vpack.c.bf16 %v925_v52, %v924_v51  ;;  %v894_v0 = vmax.f32 %v774_v58, 0.0 }
 0x174   :  { %v684_v55 = vpop.f32.mrf.mxu2 }
 0x175   :  { %1651 = vst [vmem:[%s2292_s3 + $0xe0] sm:$0xff] %v1607_v53   ;;  %v853_v56 = vpop.f32.mrf.mxu3  ;;  %v685_v62 = vadd.f32 %v1959_v61, %v684_v55 }
 0x176   :  { %v606_v57 = vpop.f32.mrf.mxu0 }
 0x177   :  { %v607_v59 = vadd.f32 %v1959_v61, %v606_v57  ;;  %v775_v60 = vpop.f32.mrf.mxu1  ;;  %v854_v3 = vadd.f32 %v853_v56, %v685_v62 }
 0x179   :  { %v776_v63 = vadd.f32 %v775_v60, %v607_v59  ;;  %v926_v10 = vmax.f32 %v854_v3, 0.0 }
 0x17b   :  { %v895_v1 = vmax.f32 %v776_v63, 0.0 }
 0x17c   :  { %v686_v2 = vpop.f32.mrf.mxu2 }
 0x17d   :  { %v1532_v4 = vpack.c.bf16 %v895_v1, %v894_v0  ;;  %v687_v5 = vadd.f32 %v1959_v61, %v686_v2  ;;  %v855_v6 = vpop.f32.mrf.mxu3 }
 0x17e   :  { %v609_v7 = vpop.f32.mrf.mxu0 }
 0x17f   :  { %1636 = vst [vmem:[%s2292_s3 + $0x68] sm:$0xff] %v1532_v4   ;;  %v856_v8 = vadd.f32 %v855_v6, %v687_v5  ;;  %v778_v9 = vpop.f32.mrf.mxu1  ;;  %v610_v13 = vadd.f32 %v1959_v61, %v609_v7 }
 0x181   :  { %v927_v11 = vmax.f32 %v856_v8, 0.0  ;;  %v779_v17 = vadd.f32 %v778_v9, %v610_v13 }
 0x183   :  { %v1612_v12 = vpack.c.bf16 %v927_v11, %v926_v10  ;;  %v896_v22 = vmax.f32 %v779_v17, 0.0 }
 0x184   :  { %v689_v14 = vpop.f32.mrf.mxu2 }
 0x185   :  { %1652 = vst [vmem:[%s2292_s3 + $0xe8] sm:$0xff] %v1612_v12   ;;  %v858_v15 = vpop.f32.mrf.mxu3  ;;  %v690_v20 = vadd.f32 %v1959_v61, %v689_v14 }
 0x186   :  { %v611_v16 = vpop.f32.mrf.mxu0 }
 0x187   :  { %v612_v18 = vadd.f32 %v1959_v61, %v611_v16  ;;  %v780_v19 = vpop.f32.mrf.mxu1  ;;  %v859_v25 = vadd.f32 %v858_v15, %v690_v20 }
 0x189   :  { %v781_v21 = vadd.f32 %v780_v19, %v612_v18  ;;  %v928_v32 = vmax.f32 %v859_v25, 0.0 }
 0x18b   :  { %v897_v23 = vmax.f32 %v781_v21, 0.0 }
 0x18c   :  { %v691_v24 = vpop.f32.mrf.mxu2 }
 0x18d   :  { %v1537_v26 = vpack.c.bf16 %v897_v23, %v896_v22  ;;  %v692_v27 = vadd.f32 %v1959_v61, %v691_v24  ;;  %v860_v28 = vpop.f32.mrf.mxu3 }
 0x18e   :  { %v614_v29 = vpop.f32.mrf.mxu0 }
 0x18f   :  { %1637 = vst [vmem:[%s2292_s3 + $0x70] sm:$0xff] %v1537_v26   ;;  %v861_v30 = vadd.f32 %v860_v28, %v692_v27  ;;  %v783_v31 = vpop.f32.mrf.mxu1  ;;  %v615_v35 = vadd.f32 %v1959_v61, %v614_v29 }
 0x191   :  { %v929_v33 = vmax.f32 %v861_v30, 0.0  ;;  %v784_v39 = vadd.f32 %v783_v31, %v615_v35 }
 0x193   :  { %v1617_v34 = vpack.c.bf16 %v929_v33, %v928_v32  ;;  %v898_v44 = vmax.f32 %v784_v39, 0.0 }
 0x194   :  { %v694_v36 = vpop.f32.mrf.mxu2 }
 0x195   :  { %1653 = vst [vmem:[%s2292_s3 + $0xf0] sm:$0xff] %v1617_v34   ;;  %v863_v37 = vpop.f32.mrf.mxu3  ;;  %v695_v42 = vadd.f32 %v1959_v61, %v694_v36 }
 0x196   :  { %v616_v38 = vpop.f32.mrf.mxu0 }
 0x197   :  { %v617_v40 = vadd.f32 %v1959_v61, %v616_v38  ;;  %v785_v41 = vpop.f32.mrf.mxu1  ;;  %v864_v47 = vadd.f32 %v863_v37, %v695_v42 }
 0x199   :  { %v786_v43 = vadd.f32 %v785_v41, %v617_v40  ;;  %v930_v52 = vmax.f32 %v864_v47, 0.0 }
 0x19b   :  { %v899_v45 = vmax.f32 %v786_v43, 0.0 }
 0x19c   :  { %v696_v46 = vpop.f32.mrf.mxu2 }
 0x19d   :  { %v1542_v48 = vpack.c.bf16 %v899_v45, %v898_v44  ;;  %v697_v49 = vadd.f32 %v1959_v61, %v696_v46  ;;  %v865_v50 = vpop.f32.mrf.mxu3 }
 0x19f   :  { %1638 = vst [vmem:[%s2292_s3 + $0x78] sm:$0xff] %v1542_v48   ;;  %v866_v51 = vadd.f32 %v865_v50, %v697_v49 }
 0x1a1   :  { %v931_v53 = vmax.f32 %v866_v51, 0.0 }
 0x1a3   :  { %v1622_v54 = vpack.c.bf16 %v931_v53, %v930_v52 }
 0x1a5   :  { %1654 = vst [vmem:[%s2292_s3 + $0xf8] sm:$0xff] %v1622_v54  }

// kernel: resnet_forward.8
= control target key start
LH: loop header
LB: loop body
LE: loop exit
PB: predicated region body
PF: predicated region fallthrough
CT: control target
= control target key end

     0   :  { %vm296_vm0 = vcmask 130048   ;;  %vm585_vm1 = vcmask 125952   ;;  %s1539_s0 = inlined_call_operand.vmem [shape: bf16[9,128,16], index: 0, kind: input, shape index: {}]   ;;  %s1540_s1 = inlined_call_operand.vmem [shape: bf16[128,16], index: 1, kind: output, shape index: {}]  }
   0x1   :  { %v607_v0 = vld [vmem:[%s1539_s0] sm:$0xff]   ;;  %v1018_v35 = vld [vmem:[%s1539_s0 + $0x8] sm:$0xff]  }
   0x2   :  { %v901_v1 = vld [vmem:[%s1539_s0 + $0x40] sm:$0xff]   ;;  %v608_v3 = vunpack.c.l.bf16 %v607_v0  ;;  %v609_v19 = vunpack.c.h.bf16 %v607_v0  ;;  %v1023_v36 = vld [vmem:[%s1539_s0 + $0x48] sm:$0xff]   ;;  %v612_v49 = vunpack.c.l.bf16 %v1018_v35 }
   0x3   :  { %v909_v2 = vld [vmem:[%s1539_s0 + $0x80] sm:$0xff]   ;;  %v640_v4 = vunpack.c.l.bf16 %v901_v1  ;;  %v641_v20 = vunpack.c.h.bf16 %v901_v1  ;;  %v910_v41 = vld [vmem:[%s1539_s0 + $0x88] sm:$0xff]   ;;  %v644_v50 = vunpack.c.l.bf16 %v1023_v36 }
   0x4   :  { %v672_v5 = vunpack.c.l.bf16 %v909_v2  ;;  %v917_v6 = vld [vmem:[%s1539_s0 + $0xc0] sm:$0xff]   ;;  %v297_v16 = vsel %vm296_vm0, %v608_v3, -inf  ;;  %v673_v25 = vunpack.c.h.bf16 %v909_v2  ;;  %v314_v32 = vsel %vm296_vm0, %v609_v19, -inf  ;;  %v1031_v42 = vld [vmem:[%s1539_s0 + $0xc8] sm:$0xff]  }
   0x5   :  { %v925_v7 = vld [vmem:[%s1539_s0 + $0x100] sm:$0xff]   ;;  %v704_v9 = vunpack.c.l.bf16 %v917_v6  ;;  %v298_v17 = vsel %vm296_vm0, %v640_v4, -inf  ;;  %v705_v26 = vunpack.c.h.bf16 %v917_v6  ;;  %v315_v33 = vsel %vm296_vm0, %v641_v20, -inf  ;;  %v1041_v51 = vld [vmem:[%s1539_s0 + $0x108] sm:$0xff]  }
   0x6   :  { %v933_v8 = vld [vmem:[%s1539_s0 + $0x140] sm:$0xff]   ;;  %v736_v12 = vunpack.c.l.bf16 %v925_v7  ;;  %v300_v18 = vsel %vm296_vm0, %v672_v5, -inf  ;;  %v299_v22 = vmax.f32 %v297_v16, %v298_v17  ;;  %v737_v31 = vunpack.c.h.bf16 %v925_v7  ;;  %v1051_v60 = vld [vmem:[%s1539_s0 + $0x148] sm:$0xff]  }
   0x7   :  { %v941_v10 = vld [vmem:[%s1539_s0 + $0x180] sm:$0xff]   ;;  %v768_v13 = vunpack.c.l.bf16 %v933_v8  ;;  %v302_v24 = vsel %vm296_vm0, %v704_v9, -inf  ;;  %v317_v34 = vsel %vm296_vm0, %v673_v25, -inf  ;;  %v769_v38 = vunpack.c.h.bf16 %v933_v8  ;;  %v1056_v61 = vld [vmem:[%s1539_s0 + $0x188] sm:$0xff]  }
   0x8   :  { %v949_v11 = vld [vmem:[%s1539_s0 + $0x1c0] sm:$0xff]   ;;  %v800_v14 = vunpack.c.l.bf16 %v941_v10  ;;  %v301_v27 = vmax.f32 %v299_v22, %v300_v18  ;;  %v304_v28 = vsel %vm296_vm0, %v736_v12, -inf  ;;  %v801_v39 = vunpack.c.h.bf16 %v941_v10  ;;  %v1061_v62 = vld [vmem:[%s1539_s0 + $0x1c8] sm:$0xff]  }
   0x9   :  { %v1002_v15 = vld [vmem:[%s1539_s0 + $0x200] sm:$0xff]   ;;  %v832_v21 = vunpack.c.l.bf16 %v949_v11  ;;  %v306_v29 = vsel %vm296_vm0, %v768_v13, -inf  ;;  %v316_v40 = vmax.f32 %v314_v32, %v315_v33  ;;  %v833_v45 = vunpack.c.h.bf16 %v949_v11  ;;  %v1074_v10 = vld [vmem:[%s1539_s0 + $0x208] sm:$0xff]   ;;  %v1090_v32 = vld [vmem:[%s1539_s0 + $0x10] sm:$0xff]  }
   0xa   :  { %v864_v23 = vunpack.c.l.bf16 %v1002_v15  ;;  %v308_v30 = vsel %vm296_vm0, %v800_v14, -inf  ;;  %v303_v37 = vmax.f32 %v301_v27, %v302_v24  ;;  %v319_v46 = vsel %vm296_vm0, %v705_v26, -inf }
   0xb   :  { %v310_v43 = vsel %vm296_vm0, %v832_v21, -inf  ;;  %v318_v48 = vmax.f32 %v316_v40, %v317_v34  ;;  %v865_v52 = vunpack.c.h.bf16 %v1002_v15  ;;  %v321_v53 = vsel %vm296_vm0, %v737_v31, -inf }
   0xc   :  { %v312_v44 = vsel %vm296_vm0, %v864_v23, -inf  ;;  %v305_v47 = vmax.f32 %v303_v37, %v304_v28  ;;  %v676_v54 = vunpack.c.l.bf16 %v910_v41  ;;  %v708_v55 = vunpack.c.l.bf16 %v1031_v42  ;;  %v903_v37 = vld [vmem:[%s1539_s0 + $0x50] sm:$0xff]  }
   0xd   :  { %v320_v57 = vmax.f32 %v318_v48, %v319_v46  ;;  %v323_v58 = vsel %vm296_vm0, %v769_v38, -inf  ;;  %v325_v59 = vsel %vm296_vm0, %v801_v39, -inf  ;;  %v740_v63 = vunpack.c.l.bf16 %v1041_v51 }
   0xe   :  { %v307_v56 = vmax.f32 %v305_v47, %v306_v29  ;;  %v331_v0 = vsel %vm296_vm0, %v612_v49, -inf  ;;  %v332_v1 = vsel %vm296_vm0, %v644_v50, -inf  ;;  %v334_v2 = vsel %vm296_vm0, %v676_v54, -inf }
   0xf   :  { %v322_v4 = vmax.f32 %v320_v57, %v321_v53  ;;  %v327_v5 = vsel %vm296_vm0, %v833_v45, -inf  ;;  %v333_v6 = vmax.f32 %v331_v0, %v332_v1  ;;  %v772_v7 = vunpack.c.l.bf16 %v1051_v60  ;;  %v1142_v0 = vld [vmem:[%s1539_s0 + $0x1d0] sm:$0xff]  }
  0x10   :  { %v309_v3 = vmax.f32 %v307_v56, %v308_v30  ;;  %v804_v8 = vunpack.c.l.bf16 %v1056_v61  ;;  %v836_v9 = vunpack.c.l.bf16 %v1061_v62  ;;  %v336_v11 = vsel %vm296_vm0, %v708_v55, -inf }
  0x11   :  { %v324_v13 = vmax.f32 %v322_v4, %v323_v58  ;;  %v329_v14 = vsel %vm296_vm0, %v865_v52, -inf  ;;  %v335_v15 = vmax.f32 %v333_v6, %v334_v2  ;;  %v338_v16 = vsel %vm296_vm0, %v740_v63, -inf  ;;  %v1119_v52 = vld [vmem:[%s1539_s0 + $0x110] sm:$0xff]  }
  0x12   :  { %v311_v12 = vmax.f32 %v309_v3, %v310_v43  ;;  %v613_v17 = vunpack.c.h.bf16 %v1018_v35  ;;  %v645_v18 = vunpack.c.h.bf16 %v1023_v36  ;;  %v677_v19 = vunpack.c.h.bf16 %v910_v41  ;;  %v1110_v43 = vld [vmem:[%s1539_s0 + $0xd0] sm:$0xff]  }
  0x13   :  { %v326_v21 = vmax.f32 %v324_v13, %v325_v59  ;;  %v868_v22 = vunpack.c.l.bf16 %v1074_v10  ;;  %v337_v23 = vmax.f32 %v335_v15, %v336_v11  ;;  %v340_v24 = vsel %vm296_vm0, %v772_v7, -inf  ;;  %v959_v11 = vld [vmem:[%s1539_s0 + $0x210] sm:$0xff]  }
  0x14   :  { %v313_v20 = vmax.f32 %v311_v12, %v312_v44  ;;  %v342_v25 = vsel %vm296_vm0, %v804_v8, -inf  ;;  %v344_v26 = vsel %vm296_vm0, %v836_v9, -inf  ;;  %v709_v27 = vunpack.c.h.bf16 %v1031_v42  ;;  %v911_v42 = vld [vmem:[%s1539_s0 + $0x90] sm:$0xff]  }
  0x15   :  { %v328_v29 = vmax.f32 %v326_v21, %v327_v5  ;;  %v339_v30 = vmax.f32 %v337_v23, %v338_v16  ;;  %v348_v31 = vsel %vm296_vm0, %v613_v17, -inf  ;;  %v741_v33 = vunpack.c.h.bf16 %v1041_v51 }
  0x16   :  { %v569_v28 = vpack.c.bf16 %v313_v20, %v313_v20  ;;  %v773_v34 = vunpack.c.h.bf16 %v1051_v60  ;;  %v349_v35 = vsel %vm296_vm0, %v645_v18, -inf  ;;  %v351_v36 = vsel %vm296_vm0, %v677_v19, -inf }
  0x17   :  { %v330_v38 = vmax.f32 %v328_v29, %v329_v14  ;;  %v341_v39 = vmax.f32 %v339_v30, %v340_v24  ;;  %v805_v40 = vunpack.c.h.bf16 %v1056_v61  ;;  %v350_v41 = vmax.f32 %v348_v31, %v349_v35  ;;  %v935_v61 = vld [vmem:[%s1539_s0 + $0x150] sm:$0xff]  }
  0x18   :  { %586 = vst.msk [vmem:[%s1540_s1] sm:$0xf] %vm585_vm1, %v569_v28  ;;  %v346_v44 = vsel %vm296_vm0, %v868_v22, -inf  ;;  %v837_v45 = vunpack.c.h.bf16 %v1061_v62  ;;  %v353_v46 = vsel %vm296_vm0, %v709_v27, -inf  ;;  %v616_v47 = vunpack.c.l.bf16 %v1090_v32  ;;  %v1136_v62 = vld [vmem:[%s1539_s0 + $0x190] sm:$0xff]  }
  0x19   :  { %v570_v48 = vpack.c.bf16 %v330_v38, %v330_v38  ;;  %v343_v49 = vmax.f32 %v341_v39, %v342_v25  ;;  %v352_v50 = vmax.f32 %v350_v41, %v351_v36  ;;  %v648_v51 = vunpack.c.l.bf16 %v903_v37  ;;  %v912_v39 = vld [vmem:[%s1539_s0 + $0x98] sm:$0xff]  }
  0x1a   :  { %v869_v53 = vunpack.c.h.bf16 %v1074_v10  ;;  %v355_v54 = vsel %vm296_vm0, %v741_v33, -inf  ;;  %v680_v55 = vunpack.c.l.bf16 %v911_v42  ;;  %v712_v56 = vunpack.c.l.bf16 %v1110_v43  ;;  %v896_v33 = vld [vmem:[%s1539_s0 + $0x18] sm:$0xff]  }
  0x1b   :  { %587 = vst.msk [vmem:[%s1540_s1 + $0x4] sm:$0xf] %vm585_vm1, %v570_v48  ;;  %v345_v57 = vmax.f32 %v343_v49, %v344_v26  ;;  %v354_v58 = vmax.f32 %v352_v50, %v353_v46  ;;  %v357_v59 = vsel %vm296_vm0, %v773_v34, -inf  ;;  %v359_v60 = vsel %vm296_vm0, %v805_v40, -inf  ;;  %v904_v34 = vld [vmem:[%s1539_s0 + $0x58] sm:$0xff]  }
  0x1c   :  { %v744_v63 = vunpack.c.l.bf16 %v1119_v52  ;;  %v365_v1 = vsel %vm296_vm0, %v616_v47, -inf  ;;  %v366_v2 = vsel %vm296_vm0, %v648_v51, -inf  ;;  %v368_v3 = vsel %vm296_vm0, %v680_v55, -inf }
  0x1d   :  { %v347_v4 = vmax.f32 %v345_v57, %v346_v44  ;;  %v356_v5 = vmax.f32 %v354_v58, %v355_v54  ;;  %v361_v6 = vsel %vm296_vm0, %v837_v45, -inf  ;;  %v367_v7 = vmax.f32 %v365_v1, %v366_v2  ;;  %v1184_v44 = vld [vmem:[%s1539_s0 + $0xd8] sm:$0xff]  }
  0x1e   :  { %v363_v8 = vsel %vm296_vm0, %v869_v53, -inf  ;;  %v776_v9 = vunpack.c.l.bf16 %v935_v61  ;;  %v808_v10 = vunpack.c.l.bf16 %v1136_v62  ;;  %v370_v12 = vsel %vm296_vm0, %v712_v56, -inf  ;;  %v928_v53 = vld [vmem:[%s1539_s0 + $0x118] sm:$0xff]  }
  0x1f   :  { %v571_v13 = vpack.c.bf16 %v347_v4, %v347_v4  ;;  %v358_v14 = vmax.f32 %v356_v5, %v357_v59  ;;  %v840_v15 = vunpack.c.l.bf16 %v1142_v0  ;;  %v369_v16 = vmax.f32 %v367_v7, %v368_v3  ;;  %v1196_v58 = vld [vmem:[%s1539_s0 + $0x158] sm:$0xff]  }
  0x20   :  { %v372_v17 = vsel %vm296_vm0, %v744_v63, -inf  ;;  %v617_v18 = vunpack.c.h.bf16 %v1090_v32  ;;  %v649_v19 = vunpack.c.h.bf16 %v903_v37  ;;  %v681_v20 = vunpack.c.h.bf16 %v911_v42  ;;  %v1201_v59 = vld [vmem:[%s1539_s0 + $0x198] sm:$0xff]  }
  0x21   :  { %588 = vst.msk [vmem:[%s1540_s1 + $0x8] sm:$0xf] %vm585_vm1, %v571_v13  ;;  %v360_v21 = vmax.f32 %v358_v14, %v359_v60  ;;  %v872_v22 = vunpack.c.l.bf16 %v959_v11  ;;  %v371_v23 = vmax.f32 %v369_v16, %v370_v12  ;;  %v713_v24 = vunpack.c.h.bf16 %v1110_v43  ;;  %v1212_v63 = vld [vmem:[%s1539_s0 + $0x1d8] sm:$0xff]  }
  0x22   :  { %v374_v25 = vsel %vm296_vm0, %v776_v9, -inf  ;;  %v376_v26 = vsel %vm296_vm0, %v808_v10, -inf  ;;  %v745_v27 = vunpack.c.h.bf16 %v1119_v52  ;;  %v382_v28 = vsel %vm296_vm0, %v617_v18, -inf  ;;  %v1224_v12 = vld [vmem:[%s1539_s0 + $0x218] sm:$0xff]  }
  0x23   :  { %v362_v29 = vmax.f32 %v360_v21, %v361_v6  ;;  %v373_v30 = vmax.f32 %v371_v23, %v372_v17  ;;  %v383_v31 = vsel %vm296_vm0, %v649_v19, -inf  ;;  %v385_v32 = vsel %vm296_vm0, %v681_v20, -inf }
  0x24   :  { %v378_v35 = vsel %vm296_vm0, %v840_v15, -inf  ;;  %v777_v36 = vunpack.c.h.bf16 %v935_v61  ;;  %v809_v37 = vunpack.c.h.bf16 %v1136_v62  ;;  %v384_v38 = vmax.f32 %v382_v28, %v383_v31 }
  0x25   :  { %v364_v40 = vmax.f32 %v362_v29, %v363_v8  ;;  %v375_v41 = vmax.f32 %v373_v30, %v374_v25  ;;  %v841_v42 = vunpack.c.h.bf16 %v1142_v0  ;;  %v387_v43 = vsel %vm296_vm0, %v713_v24, -inf }
  0x26   :  { %v873_v45 = vunpack.c.h.bf16 %v959_v11  ;;  %v386_v46 = vmax.f32 %v384_v38, %v385_v32  ;;  %v620_v47 = vunpack.c.l.bf16 %v896_v33  ;;  %v652_v48 = vunpack.c.l.bf16 %v904_v34 }
  0x27   :  { %v572_v49 = vpack.c.bf16 %v364_v40, %v364_v40  ;;  %v377_v50 = vmax.f32 %v375_v41, %v376_v26  ;;  %v389_v51 = vsel %vm296_vm0, %v745_v27, -inf  ;;  %v684_v52 = vunpack.c.l.bf16 %v912_v39  ;;  %v1255_v41 = vld [vmem:[%s1539_s0 + $0xe0] sm:$0xff]  }
  0x28   :  { %v380_v54 = vsel %vm296_vm0, %v872_v22, -inf  ;;  %v388_v55 = vmax.f32 %v386_v46, %v387_v43  ;;  %v391_v56 = vsel %vm296_vm0, %v777_v36, -inf  ;;  %v716_v57 = vunpack.c.l.bf16 %v1184_v44  ;;  %v913_v36 = vld [vmem:[%s1539_s0 + $0xa0] sm:$0xff]  }
  0x29   :  { %589 = vst.msk [vmem:[%s1540_s1 + $0xc] sm:$0xf] %vm585_vm1, %v572_v49  ;;  %v379_v60 = vmax.f32 %v377_v50, %v378_v35  ;;  %v393_v61 = vsel %vm296_vm0, %v809_v37, -inf  ;;  %v395_v62 = vsel %vm296_vm0, %v841_v42, -inf  ;;  %v399_v0 = vsel %vm296_vm0, %v620_v47, -inf  ;;  %v905_v35 = vld [vmem:[%s1539_s0 + $0x60] sm:$0xff]  }
  0x2a   :  { %v390_v1 = vmax.f32 %v388_v55, %v389_v51  ;;  %v748_v2 = vunpack.c.l.bf16 %v928_v53  ;;  %v400_v3 = vsel %vm296_vm0, %v652_v48, -inf  ;;  %v402_v4 = vsel %vm296_vm0, %v684_v52, -inf  ;;  %v1262_v46 = vld [vmem:[%s1539_s0 + $0x120] sm:$0xff]  }
  0x2b   :  { %v381_v5 = vmax.f32 %v379_v60, %v380_v54  ;;  %v397_v6 = vsel %vm296_vm0, %v873_v45, -inf  ;;  %v780_v7 = vunpack.c.l.bf16 %v1196_v58  ;;  %v401_v8 = vmax.f32 %v399_v0, %v400_v3  ;;  %v1269_v55 = vld [vmem:[%s1539_s0 + $0x160] sm:$0xff]  }
  0x2c   :  { %v392_v9 = vmax.f32 %v390_v1, %v391_v56  ;;  %v812_v10 = vunpack.c.l.bf16 %v1201_v59  ;;  %v844_v11 = vunpack.c.l.bf16 %v1212_v63  ;;  %v404_v13 = vsel %vm296_vm0, %v716_v57, -inf  ;;  %v1282_v60 = vld [vmem:[%s1539_s0 + $0x1a0] sm:$0xff]  }
  0x2d   :  { %v573_v14 = vpack.c.bf16 %v381_v5, %v381_v5  ;;  %v403_v15 = vmax.f32 %v401_v8, %v402_v4  ;;  %v621_v16 = vunpack.c.h.bf16 %v896_v33  ;;  %v653_v17 = vunpack.c.h.bf16 %v904_v34  ;;  %v897_v34 = vld [vmem:[%s1539_s0 + $0x20] sm:$0xff]  }
  0x2e   :  { %v394_v18 = vmax.f32 %v392_v9, %v393_v61  ;;  %v406_v19 = vsel %vm296_vm0, %v748_v2, -inf  ;;  %v685_v20 = vunpack.c.h.bf16 %v912_v39  ;;  %v717_v21 = vunpack.c.h.bf16 %v1184_v44  ;;  %v961_v9 = vld [vmem:[%s1539_s0 + $0x220] sm:$0xff]  }
  0x2f   :  { %590 = vst.msk [vmem:[%s1540_s1 + $0x10] sm:$0xf] %vm585_vm1, %v573_v14  ;;  %v876_v22 = vunpack.c.l.bf16 %v1224_v12  ;;  %v405_v23 = vmax.f32 %v403_v15, %v404_v13  ;;  %v408_v24 = vsel %vm296_vm0, %v780_v7, -inf  ;;  %v749_v25 = vunpack.c.h.bf16 %v928_v53 }
  0x30   :  { %v396_v26 = vmax.f32 %v394_v18, %v395_v62  ;;  %v410_v27 = vsel %vm296_vm0, %v812_v10, -inf  ;;  %v416_v28 = vsel %vm296_vm0, %v621_v16, -inf  ;;  %v417_v29 = vsel %vm296_vm0, %v653_v17, -inf }
  0x31   :  { %v407_v30 = vmax.f32 %v405_v23, %v406_v19  ;;  %v412_v31 = vsel %vm296_vm0, %v844_v11, -inf  ;;  %v418_v32 = vmax.f32 %v416_v28, %v417_v29  ;;  %v419_v33 = vsel %vm296_vm0, %v685_v20, -inf }
  0x32   :  { %v398_v37 = vmax.f32 %v396_v26, %v397_v6  ;;  %v781_v38 = vunpack.c.h.bf16 %v1196_v58  ;;  %v813_v39 = vunpack.c.h.bf16 %v1201_v59  ;;  %v421_v40 = vsel %vm296_vm0, %v717_v21, -inf }
  0x33   :  { %v409_v42 = vmax.f32 %v407_v30, %v408_v24  ;;  %v845_v43 = vunpack.c.h.bf16 %v1212_v63  ;;  %v420_v44 = vmax.f32 %v418_v32, %v419_v33  ;;  %v423_v45 = vsel %vm296_vm0, %v749_v25, -inf  ;;  %v1287_v63 = vld [vmem:[%s1539_s0 + $0x1e0] sm:$0xff]  }
  0x34   :  { %v574_v47 = vpack.c.bf16 %v398_v37, %v398_v37  ;;  %v624_v48 = vunpack.c.l.bf16 %v897_v34  ;;  %v656_v49 = vunpack.c.l.bf16 %v905_v35  ;;  %v688_v50 = vunpack.c.l.bf16 %v913_v36  ;;  %v914_v37 = vld [vmem:[%s1539_s0 + $0xa8] sm:$0xff]  }
  0x35   :  { %v411_v51 = vmax.f32 %v409_v42, %v410_v27  ;;  %v414_v52 = vsel %vm296_vm0, %v876_v22, -inf  ;;  %v422_v53 = vmax.f32 %v420_v44, %v421_v40  ;;  %v720_v54 = vunpack.c.l.bf16 %v1255_v41  ;;  %v1330_v42 = vld [vmem:[%s1539_s0 + $0xe8] sm:$0xff]  }
  0x36   :  { %591 = vst.msk [vmem:[%s1540_s1 + $0x14] sm:$0xf] %vm585_vm1, %v574_v47  ;;  %v877_v56 = vunpack.c.h.bf16 %v1224_v12  ;;  %v425_v57 = vsel %vm296_vm0, %v781_v38, -inf  ;;  %v427_v58 = vsel %vm296_vm0, %v813_v39, -inf  ;;  %v752_v59 = vunpack.c.l.bf16 %v1262_v46 }
  0x37   :  { %v413_v61 = vmax.f32 %v411_v51, %v412_v31  ;;  %v424_v62 = vmax.f32 %v422_v53, %v423_v45  ;;  %v433_v0 = vsel %vm296_vm0, %v624_v48, -inf  ;;  %v434_v1 = vsel %vm296_vm0, %v656_v49, -inf  ;;  %v898_v31 = vld [vmem:[%s1539_s0 + $0x28] sm:$0xff]  }
  0x38   :  { %v429_v2 = vsel %vm296_vm0, %v845_v43, -inf  ;;  %v784_v3 = vunpack.c.l.bf16 %v1269_v55  ;;  %v435_v4 = vmax.f32 %v433_v0, %v434_v1  ;;  %v436_v5 = vsel %vm296_vm0, %v688_v50, -inf  ;;  %v930_v51 = vld [vmem:[%s1539_s0 + $0x128] sm:$0xff]  }
  0x39   :  { %v415_v6 = vmax.f32 %v413_v61, %v414_v52  ;;  %v426_v7 = vmax.f32 %v424_v62, %v425_v57  ;;  %v816_v8 = vunpack.c.l.bf16 %v1282_v60  ;;  %v438_v10 = vsel %vm296_vm0, %v720_v54, -inf  ;;  %v1358_v61 = vld [vmem:[%s1539_s0 + $0x1e8] sm:$0xff]  }
  0x3a   :  { %v848_v11 = vunpack.c.l.bf16 %v1287_v63  ;;  %v437_v12 = vmax.f32 %v435_v4, %v436_v5  ;;  %v440_v13 = vsel %vm296_vm0, %v752_v59, -inf  ;;  %v625_v14 = vunpack.c.h.bf16 %v897_v34 }
  0x3b   :  { %v575_v15 = vpack.c.bf16 %v415_v6, %v415_v6  ;;  %v428_v16 = vmax.f32 %v426_v7, %v427_v58  ;;  %v657_v17 = vunpack.c.h.bf16 %v905_v35  ;;  %v689_v18 = vunpack.c.h.bf16 %v913_v36  ;;  %v906_v36 = vld [vmem:[%s1539_s0 + $0x68] sm:$0xff]  }
  0x3c   :  { %v431_v19 = vsel %vm296_vm0, %v877_v56, -inf  ;;  %v880_v20 = vunpack.c.l.bf16 %v961_v9  ;;  %v439_v21 = vmax.f32 %v437_v12, %v438_v10  ;;  %v721_v22 = vunpack.c.h.bf16 %v1255_v41  ;;  %v1346_v56 = vld [vmem:[%s1539_s0 + $0x168] sm:$0xff]  }
  0x3d   :  { %592 = vst.msk [vmem:[%s1540_s1 + $0x18] sm:$0xf] %vm585_vm1, %v575_v15  ;;  %v430_v23 = vmax.f32 %v428_v16, %v429_v2  ;;  %v442_v24 = vsel %vm296_vm0, %v784_v3, -inf  ;;  %v444_v25 = vsel %vm296_vm0, %v816_v8, -inf  ;;  %v753_v26 = vunpack.c.h.bf16 %v1262_v46  ;;  %v1370_v10 = vld [vmem:[%s1539_s0 + $0x228] sm:$0xff]  }
  0x3e   :  { %v441_v27 = vmax.f32 %v439_v21, %v440_v13  ;;  %v450_v28 = vsel %vm296_vm0, %v625_v14, -inf  ;;  %v451_v29 = vsel %vm296_vm0, %v657_v17, -inf  ;;  %v453_v30 = vsel %vm296_vm0, %v689_v18, -inf }
  0x3f   :  { %v432_v32 = vmax.f32 %v430_v23, %v431_v19  ;;  %v446_v33 = vsel %vm296_vm0, %v848_v11, -inf  ;;  %v785_v34 = vunpack.c.h.bf16 %v1269_v55  ;;  %v452_v35 = vmax.f32 %v450_v28, %v451_v29 }
  0x40   :  { %v443_v38 = vmax.f32 %v441_v27, %v442_v24  ;;  %v817_v39 = vunpack.c.h.bf16 %v1282_v60  ;;  %v849_v40 = vunpack.c.h.bf16 %v1287_v63  ;;  %v455_v41 = vsel %vm296_vm0, %v721_v22, -inf  ;;  %v1353_v60 = vld [vmem:[%s1539_s0 + $0x1a8] sm:$0xff]  }
  0x41   :  { %v576_v43 = vpack.c.bf16 %v432_v32, %v432_v32  ;;  %v881_v44 = vunpack.c.h.bf16 %v961_v9  ;;  %v454_v45 = vmax.f32 %v452_v35, %v453_v30  ;;  %v628_v46 = vunpack.c.l.bf16 %v898_v31  ;;  %v899_v32 = vld [vmem:[%s1539_s0 + $0x30] sm:$0xff]  }
  0x42   :  { %v445_v47 = vmax.f32 %v443_v38, %v444_v25  ;;  %v457_v48 = vsel %vm296_vm0, %v753_v26, -inf  ;;  %v660_v49 = vunpack.c.l.bf16 %v906_v36  ;;  %v692_v50 = vunpack.c.l.bf16 %v914_v37 }
  0x43   :  { %593 = vst.msk [vmem:[%s1540_s1 + $0x1c] sm:$0xf] %vm585_vm1, %v576_v43  ;;  %v448_v52 = vsel %vm296_vm0, %v880_v20, -inf  ;;  %v456_v53 = vmax.f32 %v454_v45, %v455_v41  ;;  %v459_v54 = vsel %vm296_vm0, %v785_v34, -inf  ;;  %v724_v55 = vunpack.c.l.bf16 %v1330_v42  ;;  %v915_v34 = vld [vmem:[%s1539_s0 + $0xb0] sm:$0xff]  }
  0x44   :  { %v447_v57 = vmax.f32 %v445_v47, %v446_v33  ;;  %v461_v58 = vsel %vm296_vm0, %v817_v39, -inf  ;;  %v463_v59 = vsel %vm296_vm0, %v849_v40, -inf  ;;  %v467_v62 = vsel %vm296_vm0, %v628_v46, -inf  ;;  %v907_v33 = vld [vmem:[%s1539_s0 + $0x70] sm:$0xff]  }
  0x45   :  { %v458_v63 = vmax.f32 %v456_v53, %v457_v48  ;;  %v756_v0 = vunpack.c.l.bf16 %v930_v51  ;;  %v468_v1 = vsel %vm296_vm0, %v660_v49, -inf  ;;  %v470_v2 = vsel %vm296_vm0, %v692_v50, -inf  ;;  %v1401_v39 = vld [vmem:[%s1539_s0 + $0xf0] sm:$0xff]  }
  0x46   :  { %v449_v3 = vmax.f32 %v447_v57, %v448_v52  ;;  %v465_v4 = vsel %vm296_vm0, %v881_v44, -inf  ;;  %v788_v5 = vunpack.c.l.bf16 %v1346_v56  ;;  %v469_v6 = vmax.f32 %v467_v62, %v468_v1  ;;  %v1408_v44 = vld [vmem:[%s1539_s0 + $0x130] sm:$0xff]  }
  0x47   :  { %v460_v7 = vmax.f32 %v458_v63, %v459_v54  ;;  %v820_v8 = vunpack.c.l.bf16 %v1353_v60  ;;  %v852_v9 = vunpack.c.l.bf16 %v1358_v61  ;;  %v472_v11 = vsel %vm296_vm0, %v724_v55, -inf }
  0x48   :  { %v577_v12 = vpack.c.bf16 %v449_v3, %v449_v3  ;;  %v471_v13 = vmax.f32 %v469_v6, %v470_v2  ;;  %v629_v14 = vunpack.c.h.bf16 %v898_v31  ;;  %v661_v15 = vunpack.c.h.bf16 %v906_v36 }
  0x49   :  { %v462_v16 = vmax.f32 %v460_v7, %v461_v58  ;;  %v474_v17 = vsel %vm296_vm0, %v756_v0, -inf  ;;  %v693_v18 = vunpack.c.h.bf16 %v914_v37  ;;  %v725_v19 = vunpack.c.h.bf16 %v1330_v42 }
  0x4a   :  { %594 = vst.msk [vmem:[%s1540_s1 + $0x20] sm:$0xf] %vm585_vm1, %v577_v12  ;;  %v884_v20 = vunpack.c.l.bf16 %v1370_v10  ;;  %v473_v21 = vmax.f32 %v471_v13, %v472_v11  ;;  %v476_v22 = vsel %vm296_vm0, %v788_v5, -inf  ;;  %v757_v23 = vunpack.c.h.bf16 %v930_v51  ;;  %v1438_v5 = vld [vmem:[%s1539_s0 + $0x1f0] sm:$0xff]  }
  0x4b   :  { %v464_v24 = vmax.f32 %v462_v16, %v463_v59  ;;  %v478_v25 = vsel %vm296_vm0, %v820_v8, -inf  ;;  %v484_v26 = vsel %vm296_vm0, %v629_v14, -inf  ;;  %v485_v27 = vsel %vm296_vm0, %v661_v15, -inf  ;;  %v1427_v59 = vld [vmem:[%s1539_s0 + $0x1b0] sm:$0xff]  }
  0x4c   :  { %v475_v28 = vmax.f32 %v473_v21, %v474_v17  ;;  %v480_v29 = vsel %vm296_vm0, %v852_v9, -inf  ;;  %v486_v30 = vmax.f32 %v484_v26, %v485_v27  ;;  %v487_v31 = vsel %vm296_vm0, %v693_v18, -inf  ;;  %v1448_v17 = vld [vmem:[%s1539_s0 + $0x230] sm:$0xff]   ;;  %v900_v27 = vld [vmem:[%s1539_s0 + $0x38] sm:$0xff]  }
  0x4d   :  { %v466_v35 = vmax.f32 %v464_v24, %v465_v4  ;;  %v789_v36 = vunpack.c.h.bf16 %v1346_v56  ;;  %v821_v37 = vunpack.c.h.bf16 %v1353_v60  ;;  %v489_v38 = vsel %vm296_vm0, %v725_v19, -inf  ;;  %v1422_v56 = vld [vmem:[%s1539_s0 + $0x170] sm:$0xff]  }
  0x4e   :  { %v477_v40 = vmax.f32 %v475_v28, %v476_v22  ;;  %v853_v41 = vunpack.c.h.bf16 %v1358_v61  ;;  %v488_v42 = vmax.f32 %v486_v30, %v487_v31  ;;  %v491_v43 = vsel %vm296_vm0, %v757_v23, -inf }
  0x4f   :  { %v578_v45 = vpack.c.bf16 %v466_v35, %v466_v35  ;;  %v632_v46 = vunpack.c.l.bf16 %v899_v32  ;;  %v664_v47 = vunpack.c.l.bf16 %v907_v33  ;;  %v696_v48 = vunpack.c.l.bf16 %v915_v34 }
  0x50   :  { %v479_v49 = vmax.f32 %v477_v40, %v478_v25  ;;  %v490_v50 = vmax.f32 %v488_v42, %v489_v38  ;;  %v728_v51 = vunpack.c.l.bf16 %v1401_v39  ;;  %v482_v52 = vsel %vm296_vm0, %v884_v20, -inf  ;;  %v924_v38 = vld [vmem:[%s1539_s0 + $0xf8] sm:$0xff]  }
  0x51   :  { %595 = vst.msk [vmem:[%s1540_s1 + $0x24] sm:$0xf] %vm585_vm1, %v578_v45  ;;  %v885_v53 = vunpack.c.h.bf16 %v1370_v10  ;;  %v493_v54 = vsel %vm296_vm0, %v789_v36, -inf  ;;  %v760_v55 = vunpack.c.l.bf16 %v1408_v44  ;;  %v501_v60 = vsel %vm296_vm0, %v632_v46, -inf }
  0x52   :  { %v481_v57 = vmax.f32 %v479_v49, %v480_v29  ;;  %v492_v58 = vmax.f32 %v490_v50, %v491_v43  ;;  %v502_v61 = vsel %vm296_vm0, %v664_v47, -inf  ;;  %v495_v62 = vsel %vm296_vm0, %v821_v37, -inf  ;;  %v932_v47 = vld [vmem:[%s1539_s0 + $0x138] sm:$0xff]  }
  0x53   :  { %v497_v63 = vsel %vm296_vm0, %v853_v41, -inf  ;;  %v503_v0 = vmax.f32 %v501_v60, %v502_v61  ;;  %v504_v1 = vsel %vm296_vm0, %v696_v48, -inf  ;;  %v792_v4 = vunpack.c.l.bf16 %v1422_v56 }
  0x54   :  { %v483_v2 = vmax.f32 %v481_v57, %v482_v52  ;;  %v494_v3 = vmax.f32 %v492_v58, %v493_v54  ;;  %v506_v6 = vsel %vm296_vm0, %v728_v51, -inf  ;;  %v824_v7 = vunpack.c.l.bf16 %v1427_v59  ;;  %v940_v52 = vld [vmem:[%s1539_s0 + $0x178] sm:$0xff]  }
  0x55   :  { %v505_v8 = vmax.f32 %v503_v0, %v504_v1  ;;  %v508_v9 = vsel %vm296_vm0, %v760_v55, -inf  ;;  %v633_v10 = vunpack.c.h.bf16 %v899_v32  ;;  %v665_v13 = vunpack.c.h.bf16 %v907_v33  ;;  %v908_v32 = vld [vmem:[%s1539_s0 + $0x78] sm:$0xff]  }
  0x56   :  { %v579_v11 = vpack.c.bf16 %v483_v2, %v483_v2  ;;  %v496_v12 = vmax.f32 %v494_v3, %v495_v62  ;;  %v697_v14 = vunpack.c.h.bf16 %v915_v34  ;;  %v499_v15 = vsel %vm296_vm0, %v885_v53, -inf  ;;  %v916_v33 = vld [vmem:[%s1539_s0 + $0xb8] sm:$0xff]  }
  0x57   :  { %v856_v16 = vunpack.c.l.bf16 %v1438_v5  ;;  %v507_v18 = vmax.f32 %v505_v8, %v506_v6  ;;  %v729_v19 = vunpack.c.h.bf16 %v1401_v39  ;;  %v510_v21 = vsel %vm296_vm0, %v792_v4, -inf }
  0x58   :  { %596 = vst.msk [vmem:[%s1540_s1 + $0x28] sm:$0xf] %vm585_vm1, %v579_v11  ;;  %v498_v20 = vmax.f32 %v496_v12, %v497_v63  ;;  %v761_v22 = vunpack.c.h.bf16 %v1408_v44  ;;  %v518_v24 = vsel %vm296_vm0, %v633_v10, -inf  ;;  %v519_v25 = vsel %vm296_vm0, %v665_v13, -inf  ;;  %v964_v12 = vld [vmem:[%s1539_s0 + $0x238] sm:$0xff]  }
  0x59   :  { %v509_v23 = vmax.f32 %v507_v18, %v508_v9  ;;  %v521_v26 = vsel %vm296_vm0, %v697_v14, -inf  ;;  %v888_v29 = vunpack.c.l.bf16 %v1448_v17  ;;  %v512_v30 = vsel %vm296_vm0, %v824_v7, -inf }
  0x5a   :  { %v500_v28 = vmax.f32 %v498_v20, %v499_v15  ;;  %v520_v31 = vmax.f32 %v518_v24, %v519_v25  ;;  %v514_v35 = vsel %vm296_vm0, %v856_v16, -inf  ;;  %v793_v36 = vunpack.c.h.bf16 %v1422_v56  ;;  %v948_v56 = vld [vmem:[%s1539_s0 + $0x1b8] sm:$0xff]  }
  0x5b   :  { %v511_v34 = vmax.f32 %v509_v23, %v510_v21  ;;  %v523_v37 = vsel %vm296_vm0, %v729_v19, -inf  ;;  %v825_v40 = vunpack.c.h.bf16 %v1427_v59  ;;  %v636_v42 = vunpack.c.l.bf16 %v900_v27 }
  0x5c   :  { %v580_v39 = vpack.c.bf16 %v500_v28, %v500_v28  ;;  %v522_v41 = vmax.f32 %v520_v31, %v521_v26  ;;  %v525_v44 = vsel %vm296_vm0, %v761_v22, -inf  ;;  %v668_v45 = vunpack.c.l.bf16 %v908_v32 }
  0x5d   :  { %v513_v43 = vmax.f32 %v511_v34, %v512_v30  ;;  %v700_v46 = vunpack.c.l.bf16 %v916_v33  ;;  %v516_v48 = vsel %vm296_vm0, %v888_v29, -inf  ;;  %v857_v49 = vunpack.c.h.bf16 %v1438_v5  ;;  %v956_v5 = vld [vmem:[%s1539_s0 + $0x1f8] sm:$0xff]  }
  0x5e   :  { %597 = vst.msk [vmem:[%s1540_s1 + $0x2c] sm:$0xf] %vm585_vm1, %v580_v39  ;;  %v524_v50 = vmax.f32 %v522_v41, %v523_v37  ;;  %v732_v51 = vunpack.c.l.bf16 %v924_v38  ;;  %v889_v54 = vunpack.c.h.bf16 %v1448_v17  ;;  %v527_v55 = vsel %vm296_vm0, %v793_v36, -inf }
  0x5f   :  { %v515_v53 = vmax.f32 %v513_v43, %v514_v35  ;;  %v535_v57 = vsel %vm296_vm0, %v636_v42, -inf  ;;  %v764_v59 = vunpack.c.l.bf16 %v932_v47  ;;  %v536_v60 = vsel %vm296_vm0, %v668_v45, -inf }
  0x60   :  { %v526_v58 = vmax.f32 %v524_v50, %v525_v44  ;;  %v538_v61 = vsel %vm296_vm0, %v700_v46, -inf  ;;  %v529_v63 = vsel %vm296_vm0, %v825_v40, -inf  ;;  %v796_v0 = vunpack.c.l.bf16 %v940_v52 }
  0x61   :  { %v517_v62 = vmax.f32 %v515_v53, %v516_v48  ;;  %v537_v1 = vmax.f32 %v535_v57, %v536_v60  ;;  %v531_v3 = vsel %vm296_vm0, %v857_v49, -inf  ;;  %v828_v4 = vunpack.c.l.bf16 %v948_v56 }
  0x62   :  { %v528_v2 = vmax.f32 %v526_v58, %v527_v55  ;;  %v540_v6 = vsel %vm296_vm0, %v732_v51, -inf  ;;  %v637_v9 = vunpack.c.h.bf16 %v900_v27  ;;  %v669_v10 = vunpack.c.h.bf16 %v908_v32 }
  0x63   :  { %v581_v7 = vpack.c.bf16 %v517_v62, %v517_v62  ;;  %v539_v8 = vmax.f32 %v537_v1, %v538_v61  ;;  %v542_v13 = vsel %vm296_vm0, %v764_v59, -inf  ;;  %v701_v14 = vunpack.c.h.bf16 %v916_v33 }
  0x64   :  { %v530_v11 = vmax.f32 %v528_v2, %v529_v63  ;;  %v733_v15 = vunpack.c.h.bf16 %v924_v38  ;;  %v533_v16 = vsel %vm296_vm0, %v889_v54, -inf  ;;  %v860_v17 = vunpack.c.l.bf16 %v956_v5 }
  0x65   :  { %598 = vst.msk [vmem:[%s1540_s1 + $0x30] sm:$0xf] %vm585_vm1, %v581_v7  ;;  %v541_v18 = vmax.f32 %v539_v8, %v540_v6  ;;  %v544_v19 = vsel %vm296_vm0, %v796_v0, -inf  ;;  %v765_v21 = vunpack.c.h.bf16 %v932_v47  ;;  %v552_v22 = vsel %vm296_vm0, %v637_v9, -inf }
  0x66   :  { %v532_v20 = vmax.f32 %v530_v11, %v531_v3  ;;  %v553_v23 = vsel %vm296_vm0, %v669_v10, -inf  ;;  %v892_v24 = vunpack.c.l.bf16 %v964_v12  ;;  %v555_v27 = vsel %vm296_vm0, %v701_v14, -inf }
  0x67   :  { %v543_v25 = vmax.f32 %v541_v18, %v542_v13  ;;  %v554_v26 = vmax.f32 %v552_v22, %v553_v23  ;;  %v546_v29 = vsel %vm296_vm0, %v828_v4, -inf  ;;  %v797_v30 = vunpack.c.h.bf16 %v940_v52 }
  0x68   :  { %v534_v28 = vmax.f32 %v532_v20, %v533_v16  ;;  %v557_v31 = vsel %vm296_vm0, %v733_v15, -inf  ;;  %v548_v35 = vsel %vm296_vm0, %v860_v17, -inf  ;;  %v829_v36 = vunpack.c.h.bf16 %v948_v56 }
  0x69   :  { %v545_v32 = vmax.f32 %v543_v25, %v544_v19  ;;  %v556_v33 = vmax.f32 %v554_v26, %v555_v27  ;;  %v559_v37 = vsel %vm296_vm0, %v765_v21, -inf  ;;  %v550_v40 = vsel %vm296_vm0, %v892_v24, -inf }
  0x6a   :  { %v582_v34 = vpack.c.bf16 %v534_v28, %v534_v28  ;;  %v861_v41 = vunpack.c.h.bf16 %v956_v5  ;;  %v561_v42 = vsel %vm296_vm0, %v797_v30, -inf  ;;  %v893_v45 = vunpack.c.h.bf16 %v964_v12 }
  0x6b   :  { %v547_v38 = vmax.f32 %v545_v32, %v546_v29  ;;  %v558_v39 = vmax.f32 %v556_v33, %v557_v31  ;;  %v563_v46 = vsel %vm296_vm0, %v829_v36, -inf }
  0x6c   :  { %599 = vst.msk [vmem:[%s1540_s1 + $0x34] sm:$0xf] %vm585_vm1, %v582_v34  ;;  %v565_v49 = vsel %vm296_vm0, %v861_v41, -inf  ;;  %v567_v52 = vsel %vm296_vm0, %v893_v45, -inf }
  0x6d   :  { %v549_v43 = vmax.f32 %v547_v38, %v548_v35  ;;  %v560_v44 = vmax.f32 %v558_v39, %v559_v37 }
  0x6f   :  { %v551_v47 = vmax.f32 %v549_v43, %v550_v40  ;;  %v562_v48 = vmax.f32 %v560_v44, %v561_v42 }
  0x71   :  { %v583_v50 = vpack.c.bf16 %v551_v47, %v551_v47  ;;  %v564_v51 = vmax.f32 %v562_v48, %v563_v46 }
  0x73   :  { %600 = vst.msk [vmem:[%s1540_s1 + $0x38] sm:$0xf] %vm585_vm1, %v583_v50  ;;  %v566_v53 = vmax.f32 %v564_v51, %v565_v49 }
  0x75   :  { %v568_v54 = vmax.f32 %v566_v53, %v567_v52 }
  0x77   :  { %v584_v55 = vpack.c.bf16 %v568_v54, %v568_v54 }
  0x79   :  { %601 = vst.msk [vmem:[%s1540_s1 + $0x3c] sm:$0xf] %vm585_vm1, %v584_v55 }

// kernel: resnet_forward.9
= control target key start
LH: loop header
LB: loop body
LE: loop exit
PB: predicated region body
PF: predicated region fallthrough
CT: control target
= control target key end

     0   :  { %vm179_vm0 = vcmask 130048   ;;  %s740_s1 = inlined_call_operand.vmem [shape: bf16[144,128], index: 1, kind: input, shape index: {}]   ;;  %s741_s0 = inlined_call_operand.vmem [shape: bf16[128,144], index: 0, kind: input, shape index: {}]   ;;  %s742_s2 = inlined_call_operand.vmem [shape: f32[1,128], index: 2, kind: input, shape index: {}]   ;;  %s743_s3 = inlined_call_operand.vmem [shape: bf16[128,128], index: 3, kind: output, shape index: {}]  }
   0x1   :  { %v485_v0 = vld [vmem:[%s740_s1 + $0x38] sm:$0xff]  ;;  %v486_v1 = vld [vmem:[%s740_s1 + $0x40] sm:$0xff]  ;;  %v358_v3 = vld [vmem:[%s741_s0 + $0x8] sm:$0xf0] }
   0x2   :  { %v462_v2 = vld [vmem:[%s741_s0 + $0x4] sm:$0xf]  ;;  %204 = vmatpush.bf16.msra.mxu0 %v485_v0  ;;  %534 = vmatpush.bf16.msra.mxu2 %v485_v0  ;;  %v484_v5 = vld [vmem:[%s740_s1 + $0x30] sm:$0xff]  ;;  %v483_v6 = vld [vmem:[%s740_s1 + $0x28] sm:$0xff] }
   0x3   :  { %v361_v4 = vor.u32 %v462_v2, %v358_v3  ;;  %260 = vmatpush.bf16.msra.mxu1 %v486_v1  ;;  %542 = vmatpush.bf16.msra.mxu3 %v486_v1  ;;  %v472_v7 = vld [vmem:[%s741_s0 + $0x54] sm:$0xf]  ;;  %v398_v8 = vld [vmem:[%s741_s0 + $0x58] sm:$0xf0]  ;;  %v482_v10 = vld [vmem:[%s740_s1 + $0x20] sm:$0xff] }
   0x4   :  { %v401_v9 = vor.u32 %v472_v7, %v398_v8  ;;  %v481_v11 = vld [vmem:[%s740_s1 + $0x18] sm:$0xff]  ;;  %v464_v12 = vld [vmem:[%s741_s0 + $0x14] sm:$0xf]  ;;  %v479_v16 = vld [vmem:[%s740_s1 + $0x8] sm:$0xff] }
   0x5   :  { %v366_v13 = vld [vmem:[%s741_s0 + $0x18] sm:$0xf0]  ;;  %v480_v15 = vld [vmem:[%s740_s1 + $0x10] sm:$0xff]  ;;  %v474_v17 = vld [vmem:[%s741_s0 + $0x64] sm:$0xf] }
   0x6   :  { %454 = vmatmul.msk.bf16.vlgmr.msra.gmra.mxu1 %vm179_vm0, %v361_v4  ;;  %205 = vmatpush.bf16.msra.mxu0 %v484_v5  ;;  %v369_v14 = vor.u32 %v464_v12, %v366_v13  ;;  %v406_v18 = vld [vmem:[%s741_s0 + $0x68] sm:$0xf0]  ;;  %v478_v20 = vld [vmem:[%s740_s1] sm:$0xff]  ;;  %v463_v22 = vld [vmem:[%s741_s0 + $0x4] sm:$0xf0] }
   0x7   :  { %535 = vmatpush.bf16.msra.mxu2 %v484_v5  ;;  %459 = vmatmul.msk.bf16.vlgmr.msra.gmra.mxu3 %vm179_vm0, %v401_v9  ;;  %v409_v19 = vor.u32 %v474_v17, %v406_v18  ;;  %v356_v21 = vld [vmem:[%s741_s0] sm:$0xf]  ;;  %v471_v24 = vld [vmem:[%s741_s0 + $0x44] sm:$0xf0]  ;;  %v466_v27 = vld [vmem:[%s741_s0 + $0x24] sm:$0xf] }
   0x8   :  { %v388_v23 = vld [vmem:[%s741_s0 + $0x40] sm:$0xf]  ;;  %v357_v25 = vor.u32 %v463_v22, %v356_v21  ;;  %v374_v28 = vld [vmem:[%s741_s0 + $0x28] sm:$0xf0]  ;;  %v476_v30 = vld [vmem:[%s741_s0 + $0x74] sm:$0xf] }
   0x9   :  { %v389_v26 = vor.u32 %v471_v24, %v388_v23  ;;  %v377_v29 = vor.u32 %v466_v27, %v374_v28  ;;  %v414_v31 = vld [vmem:[%s741_s0 + $0x78] sm:$0xf0]  ;;  %v364_v33 = vld [vmem:[%s741_s0 + $0x10] sm:$0xf]  ;;  %v465_v34 = vld [vmem:[%s741_s0 + $0x14] sm:$0xf0] }
   0xa   :  { %206 = vmatpush.bf16.msra.mxu0 %v483_v6  ;;  %v417_v32 = vor.u32 %v476_v30, %v414_v31  ;;  %v396_v35 = vld [vmem:[%s741_s0 + $0x50] sm:$0xf]  ;;  %v473_v36 = vld [vmem:[%s741_s0 + $0x54] sm:$0xf0]  ;;  %v365_v37 = vor.u32 %v465_v34, %v364_v33  ;;  %v468_v39 = vld [vmem:[%s741_s0 + $0x34] sm:$0xf] }
   0xb   :  { %536 = vmatpush.bf16.msra.mxu2 %v483_v6  ;;  %v397_v38 = vor.u32 %v473_v36, %v396_v35  ;;  %v382_v40 = vld [vmem:[%s741_s0 + $0x38] sm:$0xf0]  ;;  %v372_v42 = vld [vmem:[%s741_s0 + $0x20] sm:$0xf]  ;;  %v467_v43 = vld [vmem:[%s741_s0 + $0x24] sm:$0xf0] }
   0xc   :  { %v385_v41 = vor.u32 %v468_v39, %v382_v40  ;;  %v404_v44 = vld [vmem:[%s741_s0 + $0x60] sm:$0xf]  ;;  %v475_v45 = vld [vmem:[%s741_s0 + $0x64] sm:$0xf0]  ;;  %v373_v46 = vor.u32 %v467_v43, %v372_v42  ;;  %v470_v48 = vld [vmem:[%s741_s0 + $0x44] sm:$0xf] }
   0xd   :  { %v405_v47 = vor.u32 %v475_v45, %v404_v44  ;;  %v390_v49 = vld [vmem:[%s741_s0 + $0x48] sm:$0xf0]  ;;  %v380_v51 = vld [vmem:[%s741_s0 + $0x30] sm:$0xf]  ;;  %v469_v52 = vld [vmem:[%s741_s0 + $0x34] sm:$0xf0] }
   0xe   :  { %207 = vmatpush.bf16.msra.mxu0 %v482_v10  ;;  %v393_v50 = vor.u32 %v470_v48, %v390_v49  ;;  %v412_v53 = vld [vmem:[%s741_s0 + $0x70] sm:$0xf]  ;;  %v477_v54 = vld [vmem:[%s741_s0 + $0x74] sm:$0xf0]  ;;  %v381_v55 = vor.u32 %v469_v52, %v380_v51  ;;  %v698_v62 = vld [vmem:[%s742_s2] ss:$0 sm:$0xff] }
   0xf   :  { %537 = vmatpush.bf16.msra.mxu2 %v482_v10  ;;  %v413_v56 = vor.u32 %v477_v54, %v412_v53 }
  0x12   :  { %208 = vmatpush.bf16.msra.mxu0 %v481_v11 }
  0x13   :  { %538 = vmatpush.bf16.msra.mxu2 %v481_v11 }
  0x16   :  { %455 = vmatmul.msk.bf16.gmra.mxu1 %vm179_vm0, %v369_v14  ;;  %209 = vmatpush.bf16.msra.mxu0 %v480_v15 }
  0x17   :  { %539 = vmatpush.bf16.msra.mxu2 %v480_v15  ;;  %460 = vmatmul.msk.bf16.gmra.mxu3 %vm179_vm0, %v409_v19 }
  0x1a   :  { %210 = vmatpush.bf16.msra.mxu0 %v479_v16 }
  0x1b   :  { %540 = vmatpush.bf16.msra.mxu2 %v479_v16 }
  0x1e   :  { %211 = vmatpush.bf16.msra.mxu0 %v478_v20 }
  0x1f   :  { %541 = vmatpush.bf16.msra.mxu2 %v478_v20 }
  0x21   :  { %212 = vmatmul.bf16.vlgmr.msra.gmra.mxu0 %v357_v25 }
  0x22   :  { %232 = vmatmul.bf16.vlgmr.msra.gmra.mxu2 %v389_v26 }
  0x26   :  { %456 = vmatmul.msk.bf16.gmra.mxu1 %vm179_vm0, %v377_v29 }
  0x27   :  { %461 = vmatmul.msk.bf16.gmra.mxu3 %vm179_vm0, %v417_v32 }
  0x31   :  { %217 = vmatmul.bf16.gmra.mxu0 %v365_v37 }
  0x32   :  { %237 = vmatmul.bf16.gmra.mxu2 %v397_v38 }
  0x36   :  { %457 = vmatmul.msk.bf16.gmra.mxu1 %vm179_vm0, %v385_v41 }
  0x41   :  { %222 = vmatmul.bf16.gmra.mxu0 %v373_v46 }
  0x42   :  { %242 = vmatmul.bf16.gmra.mxu2 %v405_v47 }
  0x46   :  { %458 = vmatmul.msk.bf16.gmra.mxu1 %vm179_vm0, %v393_v50 }
  0x51   :  { %227 = vmatmul.bf16.gmra.mxu0 %v381_v55 }
  0x52   :  { %247 = vmatmul.bf16.gmra.mxu2 %v413_v56 }
  0x83   :  { %v262_v57 = vpop.f32.mrf.mxu1 }
  0x8a   :  { %v287_v11 = vpop.f32.mrf.mxu3 }
  0x8b   :  { %v264_v58 = vpop.f32.mrf.mxu1 }
  0x92   :  { %v289_v19 = vpop.f32.mrf.mxu3 }
  0x93   :  { %v267_v59 = vpop.f32.mrf.mxu1 }
  0x9a   :  { %v292_v31 = vpop.f32.mrf.mxu3 }
  0x9b   :  { %v269_v60 = vpop.f32.mrf.mxu1 }
  0x9e   :  { %v213_v61 = vpop.f32.mrf.mxu0 }
  0x9f   :  { %v214_v63 = vadd.f32 %v698_v62, %v213_v61 }
  0xa1   :  { %v263_v3 = vadd.f32 %v262_v57, %v214_v63 }
  0xa2   :  { %v294_v48 = vpop.f32.mrf.mxu3 }
  0xa3   :  { %v272_v0 = vpop.f32.mrf.mxu1  ;;  %v302_v6 = vmax.f32 %v263_v3, 0.0 }
  0xa5   :  { %v233_v1 = vpop.f32.mrf.mxu2 }
  0xa6   :  { %v215_v2 = vpop.f32.mrf.mxu0  ;;  %v234_v41 = vadd.f32 %v698_v62, %v233_v1 }
  0xa7   :  { %v216_v4 = vadd.f32 %v698_v62, %v215_v2 }
  0xa9   :  { %v265_v5 = vadd.f32 %v264_v58, %v216_v4 }
  0xaa   :  { %v297_v1 = vpop.f32.mrf.mxu3 }
  0xab   :  { %v303_v7 = vmax.f32 %v265_v5, 0.0  ;;  %v274_v8 = vpop.f32.mrf.mxu1 }
  0xad   :  { %v490_v9 = vpack.c.bf16 %v303_v7, %v302_v6  ;;  %v235_v10 = vpop.f32.mrf.mxu2 }
  0xae   :  { %v218_v12 = vpop.f32.mrf.mxu0  ;;  %v236_v43 = vadd.f32 %v698_v62, %v235_v10 }
  0xaf   :  { %491 = vst [vmem:[%s743_s3] sm:$0xff] %v490_v9   ;;  %v219_v13 = vadd.f32 %v698_v62, %v218_v12 }
  0xb1   :  { %v268_v17 = vadd.f32 %v267_v59, %v219_v13 }
  0xb3   :  { %v277_v14 = vpop.f32.mrf.mxu1  ;;  %v304_v22 = vmax.f32 %v268_v17, 0.0 }
  0xb5   :  { %v238_v15 = vpop.f32.mrf.mxu2 }
  0xb6   :  { %v220_v16 = vpop.f32.mrf.mxu0  ;;  %v239_v21 = vadd.f32 %v698_v62, %v238_v15  ;;  %v299_v15 = vpop.f32.mrf.mxu3 }
  0xb7   :  { %v221_v18 = vadd.f32 %v698_v62, %v220_v16 }
  0xb8   :  { %v288_v27 = vadd.f32 %v287_v11, %v239_v21 }
  0xb9   :  { %v270_v20 = vadd.f32 %v269_v60, %v221_v18 }
  0xba   :  { %v312_v32 = vmax.f32 %v288_v27, 0.0 }
  0xbb   :  { %v305_v23 = vmax.f32 %v270_v20, 0.0  ;;  %v279_v24 = vpop.f32.mrf.mxu1 }
  0xbd   :  { %v495_v25 = vpack.c.bf16 %v305_v23, %v304_v22  ;;  %v240_v26 = vpop.f32.mrf.mxu2 }
  0xbe   :  { %v241_v28 = vadd.f32 %v698_v62, %v240_v26  ;;  %v223_v29 = vpop.f32.mrf.mxu0 }
  0xbf   :  { %527 = vst [vmem:[%s743_s3 + $0x8] sm:$0xff] %v495_v25   ;;  %v224_v34 = vadd.f32 %v698_v62, %v223_v29 }
  0xc0   :  { %v290_v30 = vadd.f32 %v289_v19, %v241_v28 }
  0xc1   :  { %v273_v39 = vadd.f32 %v272_v0, %v224_v34 }
  0xc2   :  { %v313_v33 = vmax.f32 %v290_v30, 0.0 }
  0xc3   :  { %v282_v35 = vpop.f32.mrf.mxu1  ;;  %v306_v46 = vmax.f32 %v273_v39, 0.0 }
  0xc4   :  { %v515_v36 = vpack.c.bf16 %v313_v33, %v312_v32  ;;  %v283_v44 = vadd.f32 %v282_v35, %v234_v41 }
  0xc5   :  { %v243_v37 = vpop.f32.mrf.mxu2 }
  0xc6   :  { %531 = vst [vmem:[%s743_s3 + $0x28] sm:$0xff] %v515_v36   ;;  %v225_v38 = vpop.f32.mrf.mxu0  ;;  %v244_v45 = vadd.f32 %v698_v62, %v243_v37  ;;  %v310_v53 = vmax.f32 %v283_v44, 0.0 }
  0xc7   :  { %v226_v40 = vadd.f32 %v698_v62, %v225_v38 }
  0xc8   :  { %v293_v54 = vadd.f32 %v292_v31, %v244_v45 }
  0xc9   :  { %v275_v42 = vadd.f32 %v274_v8, %v226_v40 }
  0xca   :  { %v314_v60 = vmax.f32 %v293_v54, 0.0 }
  0xcb   :  { %v307_v47 = vmax.f32 %v275_v42, 0.0  ;;  %v284_v49 = vpop.f32.mrf.mxu1 }
  0xcc   :  { %v285_v50 = vadd.f32 %v284_v49, %v236_v43 }
  0xcd   :  { %v500_v51 = vpack.c.bf16 %v307_v47, %v306_v46  ;;  %v245_v52 = vpop.f32.mrf.mxu2 }
  0xce   :  { %v311_v55 = vmax.f32 %v285_v50, 0.0  ;;  %v246_v56 = vadd.f32 %v698_v62, %v245_v52  ;;  %v228_v57 = vpop.f32.mrf.mxu0 }
  0xcf   :  { %528 = vst [vmem:[%s743_s3 + $0x10] sm:$0xff] %v500_v51   ;;  %v229_v63 = vadd.f32 %v698_v62, %v228_v57 }
  0xd0   :  { %v510_v58 = vpack.c.bf16 %v311_v55, %v310_v53  ;;  %v295_v59 = vadd.f32 %v294_v48, %v246_v56 }
  0xd1   :  { %v278_v4 = vadd.f32 %v277_v14, %v229_v63 }
  0xd2   :  { %530 = vst [vmem:[%s743_s3 + $0x20] sm:$0xff] %v510_v58   ;;  %v315_v61 = vmax.f32 %v295_v59, 0.0 }
  0xd3   :  { %v308_v8 = vmax.f32 %v278_v4, 0.0 }
  0xd4   :  { %v520_v0 = vpack.c.bf16 %v315_v61, %v314_v60 }
  0xd5   :  { %v248_v2 = vpop.f32.mrf.mxu2 }
  0xd6   :  { %532 = vst [vmem:[%s743_s3 + $0x30] sm:$0xff] %v520_v0   ;;  %v230_v3 = vpop.f32.mrf.mxu0  ;;  %v249_v7 = vadd.f32 %v698_v62, %v248_v2 }
  0xd7   :  { %v231_v5 = vadd.f32 %v698_v62, %v230_v3 }
  0xd8   :  { %v298_v12 = vadd.f32 %v297_v1, %v249_v7 }
  0xd9   :  { %v280_v6 = vadd.f32 %v279_v24, %v231_v5 }
  0xda   :  { %v316_v17 = vmax.f32 %v298_v12, 0.0 }
  0xdb   :  { %v309_v9 = vmax.f32 %v280_v6, 0.0 }
  0xdd   :  { %v505_v10 = vpack.c.bf16 %v309_v9, %v308_v8  ;;  %v250_v11 = vpop.f32.mrf.mxu2 }
  0xde   :  { %v251_v13 = vadd.f32 %v698_v62, %v250_v11 }
  0xdf   :  { %529 = vst [vmem:[%s743_s3 + $0x18] sm:$0xff] %v505_v10  }
  0xe0   :  { %v300_v16 = vadd.f32 %v299_v15, %v251_v13 }
  0xe2   :  { %v317_v14 = vmax.f32 %v300_v16, 0.0 }
  0xe4   :  { %v525_v18 = vpack.c.bf16 %v317_v14, %v316_v17 }
  0xe6   :  { %533 = vst [vmem:[%s743_s3 + $0x38] sm:$0xff] %v525_v18  }

// kernel: resnet_forward.10
= control target key start
LH: loop header
LB: loop body
LE: loop exit
PB: predicated region body
PF: predicated region fallthrough
CT: control target
= control target key end

     0   :  { %vm182_vm0 = vcmask 130048   ;;  %s865_s1 = inlined_call_operand.vmem [shape: bf16[144,128], index: 1, kind: input, shape index: {}]   ;;  %s866_s0 = inlined_call_operand.vmem [shape: bf16[128,144], index: 0, kind: input, shape index: {}]   ;;  %s867_s2 = inlined_call_operand.vmem [shape: f32[1,128], index: 2, kind: input, shape index: {}]   ;;  %s868_s3 = inlined_call_operand.vmem [shape: bf16[128,128], index: 3, kind: input, shape index: {}]   ;;  %s869_s4 = inlined_call_operand.vmem [shape: bf16[128,128], index: 4, kind: output, shape index: {}]  }
   0x1   :  { %v536_v0 = vld [vmem:[%s865_s1 + $0x38] sm:$0xff]  ;;  %v537_v1 = vld [vmem:[%s865_s1 + $0x40] sm:$0xff]  ;;  %v409_v3 = vld [vmem:[%s866_s0 + $0x8] sm:$0xf0] }
   0x2   :  { %v513_v2 = vld [vmem:[%s866_s0 + $0x4] sm:$0xf]  ;;  %207 = vmatpush.bf16.msra.mxu0 %v536_v0  ;;  %624 = vmatpush.bf16.msra.mxu2 %v536_v0  ;;  %v535_v5 = vld [vmem:[%s865_s1 + $0x30] sm:$0xff]  ;;  %v534_v6 = vld [vmem:[%s865_s1 + $0x28] sm:$0xff] }
   0x3   :  { %v412_v4 = vor.u32 %v513_v2, %v409_v3  ;;  %263 = vmatpush.bf16.msra.mxu1 %v537_v1  ;;  %632 = vmatpush.bf16.msra.mxu3 %v537_v1  ;;  %v523_v7 = vld [vmem:[%s866_s0 + $0x54] sm:$0xf]  ;;  %v449_v8 = vld [vmem:[%s866_s0 + $0x58] sm:$0xf0]  ;;  %v533_v10 = vld [vmem:[%s865_s1 + $0x20] sm:$0xff] }
   0x4   :  { %v452_v9 = vor.u32 %v523_v7, %v449_v8  ;;  %v532_v11 = vld [vmem:[%s865_s1 + $0x18] sm:$0xff]  ;;  %v515_v12 = vld [vmem:[%s866_s0 + $0x14] sm:$0xf]  ;;  %v530_v16 = vld [vmem:[%s865_s1 + $0x8] sm:$0xff] }
   0x5   :  { %v417_v13 = vld [vmem:[%s866_s0 + $0x18] sm:$0xf0]  ;;  %v531_v15 = vld [vmem:[%s865_s1 + $0x10] sm:$0xff]  ;;  %v525_v17 = vld [vmem:[%s866_s0 + $0x64] sm:$0xf] }
   0x6   :  { %505 = vmatmul.msk.bf16.vlgmr.msra.gmra.mxu1 %vm182_vm0, %v412_v4  ;;  %208 = vmatpush.bf16.msra.mxu0 %v535_v5  ;;  %v420_v14 = vor.u32 %v515_v12, %v417_v13  ;;  %v457_v18 = vld [vmem:[%s866_s0 + $0x68] sm:$0xf0]  ;;  %v529_v20 = vld [vmem:[%s865_s1] sm:$0xff]  ;;  %v514_v22 = vld [vmem:[%s866_s0 + $0x4] sm:$0xf0] }
   0x7   :  { %625 = vmatpush.bf16.msra.mxu2 %v535_v5  ;;  %510 = vmatmul.msk.bf16.vlgmr.msra.gmra.mxu3 %vm182_vm0, %v452_v9  ;;  %v460_v19 = vor.u32 %v525_v17, %v457_v18  ;;  %v407_v21 = vld [vmem:[%s866_s0] sm:$0xf]  ;;  %v522_v24 = vld [vmem:[%s866_s0 + $0x44] sm:$0xf0]  ;;  %v517_v27 = vld [vmem:[%s866_s0 + $0x24] sm:$0xf] }
   0x8   :  { %v439_v23 = vld [vmem:[%s866_s0 + $0x40] sm:$0xf]  ;;  %v408_v25 = vor.u32 %v514_v22, %v407_v21  ;;  %v425_v28 = vld [vmem:[%s866_s0 + $0x28] sm:$0xf0]  ;;  %v527_v30 = vld [vmem:[%s866_s0 + $0x74] sm:$0xf] }
   0x9   :  { %v440_v26 = vor.u32 %v522_v24, %v439_v23  ;;  %v428_v29 = vor.u32 %v517_v27, %v425_v28  ;;  %v465_v31 = vld [vmem:[%s866_s0 + $0x78] sm:$0xf0]  ;;  %v415_v33 = vld [vmem:[%s866_s0 + $0x10] sm:$0xf]  ;;  %v516_v34 = vld [vmem:[%s866_s0 + $0x14] sm:$0xf0] }
   0xa   :  { %209 = vmatpush.bf16.msra.mxu0 %v534_v6  ;;  %v468_v32 = vor.u32 %v527_v30, %v465_v31  ;;  %v447_v35 = vld [vmem:[%s866_s0 + $0x50] sm:$0xf]  ;;  %v524_v36 = vld [vmem:[%s866_s0 + $0x54] sm:$0xf0]  ;;  %v416_v37 = vor.u32 %v516_v34, %v415_v33  ;;  %v519_v39 = vld [vmem:[%s866_s0 + $0x34] sm:$0xf] }
   0xb   :  { %626 = vmatpush.bf16.msra.mxu2 %v534_v6  ;;  %v448_v38 = vor.u32 %v524_v36, %v447_v35  ;;  %v433_v40 = vld [vmem:[%s866_s0 + $0x38] sm:$0xf0]  ;;  %v423_v42 = vld [vmem:[%s866_s0 + $0x20] sm:$0xf]  ;;  %v518_v43 = vld [vmem:[%s866_s0 + $0x24] sm:$0xf0] }
   0xc   :  { %v436_v41 = vor.u32 %v519_v39, %v433_v40  ;;  %v455_v44 = vld [vmem:[%s866_s0 + $0x60] sm:$0xf]  ;;  %v526_v45 = vld [vmem:[%s866_s0 + $0x64] sm:$0xf0]  ;;  %v424_v46 = vor.u32 %v518_v43, %v423_v42  ;;  %v521_v48 = vld [vmem:[%s866_s0 + $0x44] sm:$0xf] }
   0xd   :  { %v456_v47 = vor.u32 %v526_v45, %v455_v44  ;;  %v441_v49 = vld [vmem:[%s866_s0 + $0x48] sm:$0xf0]  ;;  %v431_v51 = vld [vmem:[%s866_s0 + $0x30] sm:$0xf]  ;;  %v520_v52 = vld [vmem:[%s866_s0 + $0x34] sm:$0xf0] }
   0xe   :  { %210 = vmatpush.bf16.msra.mxu0 %v533_v10  ;;  %v444_v50 = vor.u32 %v521_v48, %v441_v49  ;;  %v463_v53 = vld [vmem:[%s866_s0 + $0x70] sm:$0xf]  ;;  %v528_v54 = vld [vmem:[%s866_s0 + $0x74] sm:$0xf0]  ;;  %v432_v55 = vor.u32 %v520_v52, %v431_v51  ;;  %v793_v61 = vld [vmem:[%s867_s2] ss:$0 sm:$0xff] }
   0xf   :  { %627 = vmatpush.bf16.msra.mxu2 %v533_v10  ;;  %v464_v56 = vor.u32 %v528_v54, %v463_v53  ;;  %v539_v0 = vld [vmem:[%s868_s3] sm:$0xff]   ;;  %v614_v30 = vld [vmem:[%s868_s3 + $0x28] sm:$0xff]   ;;  %v611_v48 = vld [vmem:[%s868_s3 + $0x10] sm:$0xff]  }
  0x10   :  { %v540_v3 = vunpack.c.l.bf16 %v539_v0  ;;  %v541_v7 = vunpack.c.h.bf16 %v539_v0  ;;  %v560_v35 = vunpack.c.l.bf16 %v614_v30  ;;  %v561_v40 = vunpack.c.h.bf16 %v614_v30  ;;  %v613_v54 = vld [vmem:[%s868_s3 + $0x20] sm:$0xff]  }
  0x11   :  { %v548_v53 = vunpack.c.l.bf16 %v611_v48 }
  0x12   :  { %211 = vmatpush.bf16.msra.mxu0 %v532_v11 }
  0x13   :  { %628 = vmatpush.bf16.msra.mxu2 %v532_v11 }
  0x16   :  { %506 = vmatmul.msk.bf16.gmra.mxu1 %vm182_vm0, %v420_v14  ;;  %212 = vmatpush.bf16.msra.mxu0 %v531_v15 }
  0x17   :  { %629 = vmatpush.bf16.msra.mxu2 %v531_v15  ;;  %511 = vmatmul.msk.bf16.gmra.mxu3 %vm182_vm0, %v460_v19  ;;  %v610_v19 = vld [vmem:[%s868_s3 + $0x8] sm:$0xff]  }
  0x18   :  { %v544_v22 = vunpack.c.l.bf16 %v610_v19 }
  0x1a   :  { %213 = vmatpush.bf16.msra.mxu0 %v530_v16 }
  0x1b   :  { %630 = vmatpush.bf16.msra.mxu2 %v530_v16 }
  0x1e   :  { %214 = vmatpush.bf16.msra.mxu0 %v529_v20 }
  0x1f   :  { %631 = vmatpush.bf16.msra.mxu2 %v529_v20 }
  0x21   :  { %215 = vmatmul.bf16.vlgmr.msra.gmra.mxu0 %v408_v25 }
  0x22   :  { %235 = vmatmul.bf16.vlgmr.msra.gmra.mxu2 %v440_v26  ;;  %v545_v26 = vunpack.c.h.bf16 %v610_v19 }
  0x26   :  { %507 = vmatmul.msk.bf16.gmra.mxu1 %vm182_vm0, %v428_v29 }
  0x27   :  { %512 = vmatmul.msk.bf16.gmra.mxu3 %vm182_vm0, %v468_v32 }
  0x31   :  { %220 = vmatmul.bf16.gmra.mxu0 %v416_v37 }
  0x32   :  { %240 = vmatmul.bf16.gmra.mxu2 %v448_v38 }
  0x36   :  { %508 = vmatmul.msk.bf16.gmra.mxu1 %vm182_vm0, %v436_v41 }
  0x41   :  { %225 = vmatmul.bf16.gmra.mxu0 %v424_v46 }
  0x42   :  { %245 = vmatmul.bf16.gmra.mxu2 %v456_v47 }
  0x46   :  { %509 = vmatmul.msk.bf16.gmra.mxu1 %vm182_vm0, %v444_v50 }
  0x51   :  { %230 = vmatmul.bf16.gmra.mxu0 %v432_v55 }
  0x52   :  { %250 = vmatmul.bf16.gmra.mxu2 %v464_v56 }
  0x83   :  { %v265_v57 = vpop.f32.mrf.mxu1 }
  0x8a   :  { %v290_v15 = vpop.f32.mrf.mxu3 }
  0x8b   :  { %v267_v58 = vpop.f32.mrf.mxu1 }
  0x92   :  { %v292_v27 = vpop.f32.mrf.mxu3 }
  0x93   :  { %v270_v59 = vpop.f32.mrf.mxu1 }
  0x9a   :  { %v295_v46 = vpop.f32.mrf.mxu3 }
  0x9b   :  { %v272_v60 = vpop.f32.mrf.mxu1 }
  0x9e   :  { %v216_v62 = vpop.f32.mrf.mxu0 }
  0x9f   :  { %v217_v63 = vadd.f32 %v793_v61, %v216_v62 }
  0xa1   :  { %v266_v2 = vadd.f32 %v265_v57, %v217_v63  ;;  %v556_v63 = vunpack.c.l.bf16 %v613_v54 }
  0xa3   :  { %v275_v1 = vpop.f32.mrf.mxu1  ;;  %v337_v8 = vadd.f32 %v540_v3, %v266_v2  ;;  %v615_v2 = vld [vmem:[%s868_s3 + $0x30] sm:$0xff]  }
  0xa5   :  { %v236_v4 = vpop.f32.mrf.mxu2  ;;  %v353_v12 = vmax.f32 %v337_v8, 0.0 }
  0xa6   :  { %v218_v5 = vpop.f32.mrf.mxu0  ;;  %v237_v56 = vadd.f32 %v793_v61, %v236_v4 }
  0xa7   :  { %v219_v6 = vadd.f32 %v793_v61, %v218_v5  ;;  %v557_v5 = vunpack.c.h.bf16 %v613_v54 }
  0xa9   :  { %v268_v9 = vadd.f32 %v267_v58, %v219_v6 }
  0xab   :  { %v338_v10 = vadd.f32 %v541_v7, %v268_v9  ;;  %v277_v11 = vpop.f32.mrf.mxu1  ;;  %v297_v7 = vpop.f32.mrf.mxu3 }
  0xad   :  { %v354_v13 = vmax.f32 %v338_v10, 0.0  ;;  %v238_v14 = vpop.f32.mrf.mxu2 }
  0xae   :  { %v221_v16 = vpop.f32.mrf.mxu0  ;;  %v239_v4 = vadd.f32 %v793_v61, %v238_v14 }
  0xaf   :  { %v573_v17 = vpack.c.bf16 %v354_v13, %v353_v12  ;;  %v222_v18 = vadd.f32 %v793_v61, %v221_v16  ;;  %v564_v12 = vunpack.c.l.bf16 %v615_v2 }
  0xb1   :  { %574 = vst [vmem:[%s869_s4] sm:$0xff] %v573_v17   ;;  %v271_v21 = vadd.f32 %v270_v59, %v222_v18 }
  0xb3   :  { %v807_v20 = vpop.f32.mrf.mxu1  ;;  %v339_v29 = vadd.f32 %v544_v22, %v271_v21  ;;  %v565_v21 = vunpack.c.h.bf16 %v615_v2 }
  0xb5   :  { %v241_v23 = vpop.f32.mrf.mxu2  ;;  %v355_v36 = vmax.f32 %v339_v29, 0.0  ;;  %v612_v29 = vld [vmem:[%s868_s3 + $0x18] sm:$0xff]  }
  0xb6   :  { %v223_v24 = vpop.f32.mrf.mxu0  ;;  %v242_v28 = vadd.f32 %v793_v61, %v241_v23 }
  0xb7   :  { %v224_v25 = vadd.f32 %v793_v61, %v223_v24 }
  0xb8   :  { %v291_v34 = vadd.f32 %v290_v15, %v242_v28 }
  0xb9   :  { %v273_v31 = vadd.f32 %v272_v60, %v224_v25  ;;  %v549_v60 = vunpack.c.h.bf16 %v611_v48 }
  0xba   :  { %v347_v43 = vadd.f32 %v560_v35, %v291_v34  ;;  %v552_v34 = vunpack.c.l.bf16 %v612_v29  ;;  %v300_v35 = vpop.f32.mrf.mxu3 }
  0xbb   :  { %v340_v32 = vadd.f32 %v545_v26, %v273_v31  ;;  %v814_v33 = vpop.f32.mrf.mxu1 }
  0xbc   :  { %v363_v50 = vmax.f32 %v347_v43, 0.0  ;;  %v616_v43 = vld [vmem:[%s868_s3 + $0x38] sm:$0xff]  }
  0xbd   :  { %v356_v37 = vmax.f32 %v340_v32, 0.0  ;;  %v243_v38 = vpop.f32.mrf.mxu2 }
  0xbe   :  { %v244_v39 = vadd.f32 %v793_v61, %v243_v38  ;;  %v226_v41 = vpop.f32.mrf.mxu0 }
  0xbf   :  { %v578_v42 = vpack.c.bf16 %v356_v37, %v355_v36  ;;  %v227_v45 = vadd.f32 %v793_v61, %v226_v41 }
  0xc0   :  { %v293_v44 = vadd.f32 %v292_v27, %v244_v39 }
  0xc1   :  { %617 = vst [vmem:[%s869_s4 + $0x8] sm:$0xff] %v578_v42   ;;  %v276_v52 = vadd.f32 %v275_v1, %v227_v45 }
  0xc2   :  { %v348_v47 = vadd.f32 %v561_v40, %v293_v44  ;;  %v553_v40 = vunpack.c.h.bf16 %v612_v29 }
  0xc3   :  { %v285_v49 = vpop.f32.mrf.mxu1  ;;  %v341_v1 = vadd.f32 %v548_v53, %v276_v52  ;;  %v302_v53 = vpop.f32.mrf.mxu3 }
  0xc4   :  { %v364_v51 = vmax.f32 %v348_v47, 0.0  ;;  %v286_v62 = vadd.f32 %v285_v49, %v237_v56 }
  0xc5   :  { %v246_v55 = vpop.f32.mrf.mxu2  ;;  %v357_v15 = vmax.f32 %v341_v1, 0.0 }
  0xc6   :  { %v598_v57 = vpack.c.bf16 %v364_v51, %v363_v50  ;;  %v228_v58 = vpop.f32.mrf.mxu0  ;;  %v247_v0 = vadd.f32 %v793_v61, %v246_v55  ;;  %v345_v9 = vadd.f32 %v556_v63, %v286_v62  ;;  %v569_v51 = vunpack.c.h.bf16 %v616_v43 }
  0xc7   :  { %v229_v59 = vadd.f32 %v793_v61, %v228_v58 }
  0xc8   :  { %621 = vst [vmem:[%s869_s4 + $0x28] sm:$0xff] %v598_v57   ;;  %v296_v10 = vadd.f32 %v295_v46, %v247_v0  ;;  %v568_v46 = vunpack.c.l.bf16 %v616_v43 }
  0xc9   :  { %v278_v3 = vadd.f32 %v277_v11, %v229_v59  ;;  %v361_v11 = vmax.f32 %v345_v9, 0.0 }
  0xca   :  { %v349_v24 = vadd.f32 %v564_v12, %v296_v10 }
  0xcb   :  { %v342_v6 = vadd.f32 %v549_v60, %v278_v3  ;;  %v287_v8 = vpop.f32.mrf.mxu1 }
  0xcc   :  { %v288_v13 = vadd.f32 %v287_v8, %v239_v4  ;;  %v365_v30 = vmax.f32 %v349_v24, 0.0 }
  0xcd   :  { %v358_v16 = vmax.f32 %v342_v6, 0.0  ;;  %v248_v17 = vpop.f32.mrf.mxu2 }
  0xce   :  { %v346_v18 = vadd.f32 %v557_v5, %v288_v13  ;;  %v249_v19 = vadd.f32 %v793_v61, %v248_v17  ;;  %v231_v22 = vpop.f32.mrf.mxu0 }
  0xcf   :  { %v583_v23 = vpack.c.bf16 %v358_v16, %v357_v15  ;;  %v232_v26 = vadd.f32 %v793_v61, %v231_v22 }
  0xd0   :  { %v362_v14 = vmax.f32 %v346_v18, 0.0  ;;  %v298_v25 = vadd.f32 %v297_v7, %v249_v19 }
  0xd1   :  { %618 = vst [vmem:[%s869_s4 + $0x10] sm:$0xff] %v583_v23   ;;  %v281_v32 = vadd.f32 %v807_v20, %v232_v26 }
  0xd2   :  { %v593_v27 = vpack.c.bf16 %v362_v14, %v361_v11  ;;  %v350_v28 = vadd.f32 %v565_v21, %v298_v25 }
  0xd3   :  { %v343_v42 = vadd.f32 %v552_v34, %v281_v32 }
  0xd4   :  { %620 = vst [vmem:[%s869_s4 + $0x20] sm:$0xff] %v593_v27   ;;  %v366_v31 = vmax.f32 %v350_v28, 0.0 }
  0xd5   :  { %v251_v36 = vpop.f32.mrf.mxu2  ;;  %v359_v47 = vmax.f32 %v343_v42, 0.0 }
  0xd6   :  { %v603_v37 = vpack.c.bf16 %v366_v31, %v365_v30  ;;  %v233_v38 = vpop.f32.mrf.mxu0  ;;  %v252_v41 = vadd.f32 %v793_v61, %v251_v36 }
  0xd7   :  { %v234_v39 = vadd.f32 %v793_v61, %v233_v38 }
  0xd8   :  { %622 = vst [vmem:[%s869_s4 + $0x30] sm:$0xff] %v603_v37   ;;  %v301_v45 = vadd.f32 %v300_v35, %v252_v41 }
  0xd9   :  { %v283_v20 = vadd.f32 %v814_v33, %v234_v39 }
  0xda   :  { %v351_v54 = vadd.f32 %v568_v46, %v301_v45 }
  0xdb   :  { %v344_v44 = vadd.f32 %v553_v40, %v283_v20 }
  0xdc   :  { %v367_v57 = vmax.f32 %v351_v54, 0.0 }
  0xdd   :  { %v360_v48 = vmax.f32 %v344_v44, 0.0  ;;  %v253_v49 = vpop.f32.mrf.mxu2 }
  0xde   :  { %v254_v50 = vadd.f32 %v793_v61, %v253_v49 }
  0xdf   :  { %v588_v52 = vpack.c.bf16 %v360_v48, %v359_v47 }
  0xe0   :  { %v303_v55 = vadd.f32 %v302_v53, %v254_v50 }
  0xe1   :  { %619 = vst [vmem:[%s869_s4 + $0x18] sm:$0xff] %v588_v52  }
  0xe2   :  { %v352_v56 = vadd.f32 %v569_v51, %v303_v55 }
  0xe4   :  { %v368_v33 = vmax.f32 %v352_v56, 0.0 }
  0xe6   :  { %v608_v58 = vpack.c.bf16 %v368_v33, %v367_v57 }
  0xe8   :  { %623 = vst [vmem:[%s869_s4 + $0x38] sm:$0xff] %v608_v58  }

// kernel: resnet_forward.11
= control target key start
LH: loop header
LB: loop body
LE: loop exit
PB: predicated region body
PF: predicated region fallthrough
CT: control target
= control target key end

     0   :  { %vm153_vm0 = vcmask 130048   ;;  %s576_s1 = inlined_call_operand.vmem [shape: bf16[144,256], index: 1, kind: input, shape index: {}]   ;;  %s577_s0 = inlined_call_operand.vmem [shape: bf16[32,144], index: 0, kind: input, shape index: {}]   ;;  %s578_s2 = inlined_call_operand.vmem [shape: f32[1,256], index: 2, kind: input, shape index: {}]   ;;  %s579_s3 = inlined_call_operand.vmem [shape: bf16[32,128], index: 3, kind: output, shape index: {0}]   ;;  %s580_s4 = inlined_call_operand.vmem [shape: bf16[32,128], index: 4, kind: output, shape index: {1}]  }
   0x1   :  { %v338_v0 = vld [vmem:[%s576_s1 + $0x70] sm:$0xf]  ;;  %v375_v1 = vld [vmem:[%s576_s1 + $0x74] sm:$0xf0]  ;;  %v374_v2 = vld [vmem:[%s576_s1 + $0x74] sm:$0xf] }
   0x2   :  { %v339_v3 = vor.u32 %v375_v1, %v338_v0  ;;  %v340_v4 = vld [vmem:[%s576_s1 + $0x78] sm:$0xf0]  ;;  %v330_v5 = vld [vmem:[%s576_s1 + $0x60] sm:$0xf]  ;;  %v373_v6 = vld [vmem:[%s576_s1 + $0x64] sm:$0xf0] }
   0x3   :  { %v343_v7 = vor.u32 %v374_v2, %v340_v4  ;;  %v372_v8 = vld [vmem:[%s576_s1 + $0x64] sm:$0xf]  ;;  %v332_v9 = vld [vmem:[%s576_s1 + $0x68] sm:$0xf0]  ;;  %v331_v10 = vor.u32 %v373_v6, %v330_v5  ;;  %v322_v12 = vld [vmem:[%s576_s1 + $0x50] sm:$0xf] }
   0x4   :  { %160 = vmatpush.bf16.msra.mxu0 %v339_v3  ;;  %v335_v11 = vor.u32 %v372_v8, %v332_v9  ;;  %v371_v13 = vld [vmem:[%s576_s1 + $0x54] sm:$0xf0]  ;;  %v370_v14 = vld [vmem:[%s576_s1 + $0x54] sm:$0xf]  ;;  %v324_v15 = vld [vmem:[%s576_s1 + $0x58] sm:$0xf0] }
   0x5   :  { %198 = vmatpush.bf16.msra.mxu2 %v343_v7  ;;  %v323_v16 = vor.u32 %v371_v13, %v322_v12  ;;  %v314_v17 = vld [vmem:[%s576_s1 + $0x40] sm:$0xf]  ;;  %v327_v18 = vor.u32 %v370_v14, %v324_v15  ;;  %v369_v19 = vld [vmem:[%s576_s1 + $0x44] sm:$0xf0]  ;;  %v376_v20 = vld [vmem:[%s576_s1 + $0x84] sm:$0xf] }
   0x6   :  { %v348_v21 = vld [vmem:[%s576_s1 + $0x88] sm:$0xf0]  ;;  %v368_v22 = vld [vmem:[%s576_s1 + $0x44] sm:$0xf]  ;;  %v346_v27 = vld [vmem:[%s576_s1 + $0x80] sm:$0xf]  ;;  %v315_v28 = vor.u32 %v369_v19, %v314_v17 }
   0x7   :  { %v316_v23 = vld [vmem:[%s576_s1 + $0x48] sm:$0xf0]  ;;  %v351_v24 = vor.u32 %v376_v20, %v348_v21  ;;  %v356_v25 = vld [vmem:[%s577_s0 + $0x4] sm:$0xf]  ;;  %v377_v30 = vld [vmem:[%s576_s1 + $0x84] sm:$0xf0] }
   0x8   :  { %161 = vmatpush.bf16.msra.mxu0 %v331_v10  ;;  %v268_v26 = vld [vmem:[%s577_s0 + $0x8] sm:$0xf0]  ;;  %v319_v31 = vor.u32 %v368_v22, %v316_v23  ;;  %v306_v32 = vld [vmem:[%s576_s1 + $0x30] sm:$0xf]  ;;  %v367_v33 = vld [vmem:[%s576_s1 + $0x34] sm:$0xf0]  ;;  %v347_v34 = vor.u32 %v377_v30, %v346_v27 }
   0x9   :  { %199 = vmatpush.bf16.msra.mxu2 %v335_v11  ;;  %224 = vmatpush.bf16.msra.mxu3 %v351_v24  ;;  %v271_v29 = vor.u32 %v356_v25, %v268_v26  ;;  %v366_v35 = vld [vmem:[%s576_s1 + $0x34] sm:$0xf]  ;;  %v308_v36 = vld [vmem:[%s576_s1 + $0x38] sm:$0xf0]  ;;  %v307_v37 = vor.u32 %v367_v33, %v306_v32  ;;  %v298_v39 = vld [vmem:[%s576_s1 + $0x20] sm:$0xf] }
   0xa   :  { %186 = vmatpush.bf16.msra.mxu1 %v347_v34  ;;  %v311_v38 = vor.u32 %v366_v35, %v308_v36  ;;  %v365_v40 = vld [vmem:[%s576_s1 + $0x24] sm:$0xf0]  ;;  %v364_v41 = vld [vmem:[%s576_s1 + $0x24] sm:$0xf]  ;;  %v300_v42 = vld [vmem:[%s576_s1 + $0x28] sm:$0xf0] }
   0xb   :  { %v299_v43 = vor.u32 %v365_v40, %v298_v39  ;;  %v303_v44 = vor.u32 %v364_v41, %v300_v42  ;;  %v290_v45 = vld [vmem:[%s576_s1 + $0x10] sm:$0xf]  ;;  %v363_v46 = vld [vmem:[%s576_s1 + $0x14] sm:$0xf0]  ;;  %v362_v47 = vld [vmem:[%s576_s1 + $0x14] sm:$0xf] }
   0xc   :  { %162 = vmatpush.bf16.msra.mxu0 %v323_v16  ;;  %354 = vmatmul.msk.bf16.vlgmr.msra.gmra.mxu3 %vm153_vm0, %v271_v29  ;;  %v292_v48 = vld [vmem:[%s576_s1 + $0x18] sm:$0xf0]  ;;  %v291_v49 = vor.u32 %v363_v46, %v290_v45  ;;  %v358_v50 = vld [vmem:[%s577_s0 + $0x14] sm:$0xf]  ;;  %v282_v53 = vld [vmem:[%s576_s1] sm:$0xf] }
   0xd   :  { %200 = vmatpush.bf16.msra.mxu2 %v327_v18  ;;  %352 = vmatmul.msk.bf16.vlgmr.msra.gmra.mxu1 %vm153_vm0, %v271_v29  ;;  %v276_v51 = vld [vmem:[%s577_s0 + $0x18] sm:$0xf0]  ;;  %v295_v52 = vor.u32 %v362_v47, %v292_v48  ;;  %v361_v54 = vld [vmem:[%s576_s1 + $0x4] sm:$0xf0]  ;;  %v360_v55 = vld [vmem:[%s576_s1 + $0x4] sm:$0xf] }
   0xe   :  { %v284_v56 = vld [vmem:[%s576_s1 + $0x8] sm:$0xf0]  ;;  %v279_v57 = vor.u32 %v358_v50, %v276_v51  ;;  %v283_v58 = vor.u32 %v361_v54, %v282_v53  ;;  %v266_v59 = vld [vmem:[%s577_s0] sm:$0xf]  ;;  %v357_v60 = vld [vmem:[%s577_s0 + $0x4] sm:$0xf0] }
   0xf   :  { %v287_v61 = vor.u32 %v360_v55, %v284_v56  ;;  %v267_v62 = vor.u32 %v357_v60, %v266_v59  ;;  %v274_v63 = vld [vmem:[%s577_s0 + $0x10] sm:$0xf]  ;;  %v359_v0 = vld [vmem:[%s577_s0 + $0x14] sm:$0xf0]  ;;  %v39_v3 = vld [vmem:[%s578_s2] sm:$0x3] }
  0x10   :  { %163 = vmatpush.bf16.msra.mxu0 %v315_v28  ;;  %v275_v1 = vor.u32 %v359_v0, %v274_v63  ;;  %v41_v5 = vperm.slane %v39_v3, 0  ;;  %v42_v13 = vperm.slane %v39_v3, 1 }
  0x11   :  { %201 = vmatpush.bf16.msra.mxu2 %v319_v31 }
  0x14   :  { %164 = vmatpush.bf16.msra.mxu0 %v307_v37 }
  0x15   :  { %202 = vmatpush.bf16.msra.mxu2 %v311_v38 }
  0x18   :  { %165 = vmatpush.bf16.msra.mxu0 %v299_v43 }
  0x19   :  { %203 = vmatpush.bf16.msra.mxu2 %v303_v44 }
  0x1c   :  { %166 = vmatpush.bf16.msra.mxu0 %v291_v49  ;;  %355 = vmatmul.msk.bf16.gmra.mxu3 %vm153_vm0, %v279_v57 }
  0x1d   :  { %204 = vmatpush.bf16.msra.mxu2 %v295_v52  ;;  %353 = vmatmul.msk.bf16.gmra.mxu1 %vm153_vm0, %v279_v57 }
  0x20   :  { %167 = vmatpush.bf16.msra.mxu0 %v283_v58 }
  0x21   :  { %205 = vmatpush.bf16.msra.mxu2 %v287_v61 }
  0x23   :  { %168 = vmatmul.bf16.vlgmr.msra.gmra.mxu0 %v267_v62 }
  0x24   :  { %206 = vmatmul.bf16.vlgmr.msra.gmra.mxu2 %v267_v62 }
  0x33   :  { %173 = vmatmul.bf16.gmra.mxu0 %v275_v1 }
  0x34   :  { %211 = vmatmul.bf16.gmra.mxu2 %v275_v1 }
  0x8a   :  { %v188_v2 = vpop.f32.mrf.mxu1 }
  0x8f   :  { %v226_v6 = vpop.f32.mrf.mxu3 }
  0x92   :  { %v190_v8 = vpop.f32.mrf.mxu1 }
  0x97   :  { %v228_v17 = vpop.f32.mrf.mxu3 }
  0x9a   :  { %v193_v21 = vpop.f32.mrf.mxu1 }
  0x9f   :  { %v231_v28 = vpop.f32.mrf.mxu3 }
  0xa0   :  { %v169_v4 = vpop.f32.mrf.mxu0 }
  0xa1   :  { %v170_v7 = vadd.f32 %v169_v4, %v41_v5 }
  0xa2   :  { %v195_v33 = vpop.f32.mrf.mxu1 }
  0xa3   :  { %v189_v11 = vadd.f32 %v188_v2, %v170_v7 }
  0xa5   :  { %v236_v15 = vmax.f32 %v189_v11, 0.0 }
  0xa7   :  { %v207_v9 = vpop.f32.mrf.mxu2  ;;  %v233_v41 = vpop.f32.mrf.mxu3 }
  0xa8   :  { %v171_v10 = vpop.f32.mrf.mxu0  ;;  %v208_v18 = vadd.f32 %v207_v9, %v42_v13 }
  0xa9   :  { %v172_v12 = vadd.f32 %v171_v10, %v41_v5 }
  0xaa   :  { %v227_v24 = vadd.f32 %v226_v6, %v208_v18 }
  0xab   :  { %v191_v14 = vadd.f32 %v190_v8, %v172_v12 }
  0xad   :  { %v237_v16 = vmax.f32 %v191_v14, 0.0 }
  0xaf   :  { %v381_v19 = vpack.c.bf16 %v237_v16, %v236_v15  ;;  %v209_v20 = vpop.f32.mrf.mxu2 }
  0xb0   :  { %v210_v22 = vadd.f32 %v209_v20, %v42_v13  ;;  %v174_v23 = vpop.f32.mrf.mxu0 }
  0xb1   :  { %382 = vst [vmem:[%s579_s3] sm:$0xff] %v381_v19   ;;  %v175_v27 = vadd.f32 %v174_v23, %v41_v5 }
  0xb2   :  { %v229_v25 = vadd.f32 %v228_v17, %v210_v22 }
  0xb3   :  { %v194_v31 = vadd.f32 %v193_v21, %v175_v27 }
  0xb4   :  { %v391_v26 = vpack.c.bf16 %v229_v25, %v227_v24 }
  0xb5   :  { %v238_v35 = vmax.f32 %v194_v31, 0.0 }
  0xb6   :  { %392 = vst [vmem:[%s580_s4] sm:$0xff] %v391_v26  }
  0xb7   :  { %v212_v29 = vpop.f32.mrf.mxu2 }
  0xb8   :  { %v176_v30 = vpop.f32.mrf.mxu0  ;;  %v213_v37 = vadd.f32 %v212_v29, %v42_v13 }
  0xb9   :  { %v177_v32 = vadd.f32 %v176_v30, %v41_v5 }
  0xba   :  { %v232_v42 = vadd.f32 %v231_v28, %v213_v37 }
  0xbb   :  { %v196_v34 = vadd.f32 %v195_v33, %v177_v32 }
  0xbd   :  { %v239_v36 = vmax.f32 %v196_v34, 0.0 }
  0xbf   :  { %v386_v38 = vpack.c.bf16 %v239_v36, %v238_v35  ;;  %v214_v39 = vpop.f32.mrf.mxu2 }
  0xc0   :  { %v215_v40 = vadd.f32 %v214_v39, %v42_v13 }
  0xc1   :  { %398 = vst [vmem:[%s579_s3 + $0x8] sm:$0xff] %v386_v38  }
  0xc2   :  { %v234_v43 = vadd.f32 %v233_v41, %v215_v40 }
  0xc4   :  { %v396_v44 = vpack.c.bf16 %v234_v43, %v232_v42 }
  0xc6   :  { %399 = vst [vmem:[%s580_s4 + $0x8] sm:$0xff] %v396_v44  }

// kernel: resnet_forward.12
= control target key start
LH: loop header
LB: loop body
LE: loop exit
PB: predicated region body
PF: predicated region fallthrough
CT: control target
= control target key end

     0   :  { %vm116_vm0 = vcmask 130048   ;;  %s378_s1 = inlined_call_operand.vmem [shape: bf16[144,128], index: 1, kind: input, shape index: {}]   ;;  %s379_s0 = inlined_call_operand.vmem [shape: bf16[32,144], index: 0, kind: input, shape index: {}]   ;;  %s380_s2 = inlined_call_operand.vmem [shape: f32[1,128], index: 2, kind: input, shape index: {}]   ;;  %s381_s3 = inlined_call_operand.vmem [shape: bf16[32,128], index: 3, kind: input, shape index: {}]   ;;  %s382_s4 = inlined_call_operand.vmem [shape: bf16[32,128], index: 4, kind: output, shape index: {}]  }
   0x1   :  { %v254_v0 = vld [vmem:[%s378_s1 + $0x38] sm:$0xff]  ;;  %v255_v1 = vld [vmem:[%s378_s1 + $0x40] sm:$0xff]  ;;  %v253_v3 = vld [vmem:[%s378_s1 + $0x30] sm:$0xff] }
   0x2   :  { %v243_v2 = vld [vmem:[%s379_s0 + $0x4] sm:$0xf]  ;;  %123 = vmatpush.bf16.msra.mxu0 %v254_v0  ;;  %276 = vmatpush.bf16.msra.mxu2 %v254_v0  ;;  %v193_v4 = vld [vmem:[%s379_s0 + $0x8] sm:$0xf0]  ;;  %v250_v8 = vld [vmem:[%s378_s1 + $0x18] sm:$0xff] }
   0x3   :  { %149 = vmatpush.bf16.msra.mxu1 %v255_v1  ;;  %v196_v5 = vor.u32 %v243_v2, %v193_v4  ;;  %v252_v6 = vld [vmem:[%s378_s1 + $0x28] sm:$0xff]  ;;  %v251_v7 = vld [vmem:[%s378_s1 + $0x20] sm:$0xff]  ;;  %v245_v9 = vld [vmem:[%s379_s0 + $0x14] sm:$0xf] }
   0x4   :  { %v201_v10 = vld [vmem:[%s379_s0 + $0x18] sm:$0xf0]  ;;  %v249_v11 = vld [vmem:[%s378_s1 + $0x10] sm:$0xff]  ;;  %v248_v13 = vld [vmem:[%s378_s1 + $0x8] sm:$0xff] }
   0x5   :  { %v204_v12 = vor.u32 %v245_v9, %v201_v10  ;;  %v247_v14 = vld [vmem:[%s378_s1] sm:$0xff]  ;;  %v244_v16 = vld [vmem:[%s379_s0 + $0x4] sm:$0xf0]  ;;  %v199_v17 = vld [vmem:[%s379_s0 + $0x10] sm:$0xf] }
   0x6   :  { %124 = vmatpush.bf16.msra.mxu0 %v253_v3  ;;  %277 = vmatpush.bf16.msra.mxu2 %v253_v3  ;;  %v191_v15 = vld [vmem:[%s379_s0] sm:$0xf]  ;;  %v246_v18 = vld [vmem:[%s379_s0 + $0x14] sm:$0xf0]  ;;  %v274_v35 = vld [vmem:[%s381_s3 + $0x8] sm:$0xff]  }
   0x7   :  { %241 = vmatmul.msk.bf16.vlgmr.msra.gmra.mxu1 %vm116_vm0, %v196_v5  ;;  %v192_v19 = vor.u32 %v244_v16, %v191_v15  ;;  %v200_v20 = vor.u32 %v246_v18, %v199_v17  ;;  %v284_v23 = vld [vmem:[%s380_s2] ss:$0 sm:$0xff]  ;;  %v262_v39 = vunpack.c.l.bf16 %v274_v35  ;;  %v263_v45 = vunpack.c.h.bf16 %v274_v35 }
   0x8   :  { %v257_v26 = vld [vmem:[%s381_s3] sm:$0xff]  }
   0x9   :  { %v258_v30 = vunpack.c.l.bf16 %v257_v26  ;;  %v259_v34 = vunpack.c.h.bf16 %v257_v26 }
   0xa   :  { %125 = vmatpush.bf16.msra.mxu0 %v252_v6  ;;  %278 = vmatpush.bf16.msra.mxu2 %v252_v6 }
   0xe   :  { %126 = vmatpush.bf16.msra.mxu0 %v251_v7  ;;  %279 = vmatpush.bf16.msra.mxu2 %v251_v7 }
  0x12   :  { %127 = vmatpush.bf16.msra.mxu0 %v250_v8  ;;  %280 = vmatpush.bf16.msra.mxu2 %v250_v8 }
  0x16   :  { %128 = vmatpush.bf16.msra.mxu0 %v249_v11  ;;  %281 = vmatpush.bf16.msra.mxu2 %v249_v11 }
  0x17   :  { %242 = vmatmul.msk.bf16.gmra.mxu1 %vm116_vm0, %v204_v12 }
  0x1a   :  { %129 = vmatpush.bf16.msra.mxu0 %v248_v13  ;;  %282 = vmatpush.bf16.msra.mxu2 %v248_v13 }
  0x1e   :  { %130 = vmatpush.bf16.msra.mxu0 %v247_v14  ;;  %283 = vmatpush.bf16.msra.mxu2 %v247_v14 }
  0x21   :  { %131 = vmatmul.bf16.vlgmr.msra.gmra.mxu0 %v192_v19  ;;  %136 = vmatmul.bf16.vlgmr.msra.gmra.mxu2 %v200_v20 }
  0x84   :  { %v151_v21 = vpop.f32.mrf.mxu1 }
  0x8c   :  { %v153_v22 = vpop.f32.mrf.mxu1 }
  0x94   :  { %v156_v27 = vpop.f32.mrf.mxu1 }
  0x9c   :  { %v158_v46 = vpop.f32.mrf.mxu1 }
  0x9e   :  { %v132_v24 = vpop.f32.mrf.mxu0 }
  0x9f   :  { %v133_v25 = vadd.f32 %v284_v23, %v132_v24 }
  0xa1   :  { %v152_v29 = vadd.f32 %v151_v21, %v133_v25 }
  0xa3   :  { %v169_v36 = vadd.f32 %v258_v30, %v152_v29 }
  0xa4   :  { %v137_v28 = vpop.f32.mrf.mxu2 }
  0xa5   :  { %v138_v32 = vadd.f32 %v284_v23, %v137_v28  ;;  %v173_v42 = vmax.f32 %v169_v36, 0.0 }
  0xa6   :  { %v134_v31 = vpop.f32.mrf.mxu0 }
  0xa7   :  { %v135_v33 = vadd.f32 %v284_v23, %v134_v31  ;;  %v157_v38 = vadd.f32 %v156_v27, %v138_v32 }
  0xa9   :  { %v154_v37 = vadd.f32 %v153_v22, %v135_v33  ;;  %v171_v47 = vadd.f32 %v262_v39, %v157_v38 }
  0xab   :  { %v170_v40 = vadd.f32 %v259_v34, %v154_v37  ;;  %v175_v51 = vmax.f32 %v171_v47, 0.0 }
  0xac   :  { %v139_v41 = vpop.f32.mrf.mxu2 }
  0xad   :  { %v174_v43 = vmax.f32 %v170_v40, 0.0  ;;  %v140_v44 = vadd.f32 %v284_v23, %v139_v41 }
  0xaf   :  { %v267_v48 = vpack.c.bf16 %v174_v43, %v173_v42  ;;  %v159_v49 = vadd.f32 %v158_v46, %v140_v44 }
  0xb1   :  { %268 = vst [vmem:[%s382_s4] sm:$0xff] %v267_v48   ;;  %v172_v50 = vadd.f32 %v263_v45, %v159_v49 }
  0xb3   :  { %v176_v52 = vmax.f32 %v172_v50, 0.0 }
  0xb5   :  { %v272_v53 = vpack.c.bf16 %v176_v52, %v175_v51 }
  0xb7   :  { %275 = vst [vmem:[%s382_s4 + $0x8] sm:$0xff] %v272_v53  }

// kernel: resnet_forward.13
= control target key start
LH: loop header
LB: loop body
LE: loop exit
PB: predicated region body
PF: predicated region fallthrough
CT: control target
= control target key end

     0   :  { %vm138_vm0 = vcmask 1041409   ;;  %vm140_vm1 = vcmask 1042434   ;;  %vm142_vm2 = vcmask 1043459   ;;  %vm144_vm3 = vcmask 1044484   ;;  %s318_s1 = inlined_call_operand.vmem [shape: f32[128,128], index: 1, kind: input, shape index: {}]   ;;  %s319_s0 = inlined_call_operand.vmem [shape: bf16[8,16,128], index: 0, kind: input, shape index: {}]   ;;  %s320_s2 = inlined_call_operand.vmem [shape: f32[1,128], index: 2, kind: input, shape index: {}]   ;;  %s321_s3 = inlined_call_operand.vmem [shape: f32[8,128], index: 3, kind: output, shape index: {}]  }
   0x1   :  { %v125_v0 = vld [vmem:[%s318_s1 + $0x78] sm:$0xff]  ;;  %v124_v1 = vld [vmem:[%s318_s1 + $0x70] sm:$0xff]  ;;  %v123_v2 = vld [vmem:[%s318_s1 + $0x68] sm:$0xff]  ;;  %vm146_vm4 = vcmask 1045509   ;;  %vm148_vm5 = vcmask 1046534   ;;  %vm150_vm6 = vcmask 1047559  }
   0x2   :  { %153 = vmatpush.msra.mxu0 %v125_v0  ;;  %v122_v3 = vld [vmem:[%s318_s1 + $0x60] sm:$0xff]  ;;  %v121_v4 = vld [vmem:[%s318_s1 + $0x58] sm:$0xff]  ;;  %v210_v6 = vld [vmem:[%s319_s0 + $0x8] sm:$0xff]  }
   0x3   :  { %v179_v5 = vld [vmem:[%s319_s0] sm:$0xff]   ;;  %v184_v9 = vunpack.c.l.bf16 %v210_v6  ;;  %v185_v10 = vunpack.c.h.bf16 %v210_v6  ;;  %v211_v11 = vld [vmem:[%s319_s0 + $0x10] sm:$0xff]   ;;  %v212_v12 = vld [vmem:[%s319_s0 + $0x18] sm:$0xff]  }
   0x4   :  { %154 = vmatpush.msra.mxu0 %v124_v1  ;;  %v180_v7 = vunpack.c.l.bf16 %v179_v5  ;;  %v181_v8 = vunpack.c.h.bf16 %v179_v5  ;;  %v213_v13 = vld [vmem:[%s319_s0 + $0x20] sm:$0xff]   ;;  %v188_v14 = vunpack.c.l.bf16 %v211_v11  ;;  %v189_v15 = vunpack.c.h.bf16 %v211_v11  ;;  %v214_v18 = vld [vmem:[%s319_s0 + $0x28] sm:$0xff]   ;;  %v215_v19 = vld [vmem:[%s319_s0 + $0x30] sm:$0xff]  }
   0x5   :  { %v192_v16 = vunpack.c.l.bf16 %v212_v12  ;;  %v193_v17 = vunpack.c.h.bf16 %v212_v12  ;;  %v216_v20 = vld [vmem:[%s319_s0 + $0x38] sm:$0xff]   ;;  %v120_v21 = vld [vmem:[%s318_s1 + $0x50] sm:$0xff]  ;;  %v196_v22 = vunpack.c.l.bf16 %v213_v13  ;;  %v197_v23 = vunpack.c.h.bf16 %v213_v13  ;;  %v119_v30 = vld [vmem:[%s318_s1 + $0x48] sm:$0xff] }
   0x6   :  { %155 = vmatpush.msra.mxu0 %v123_v2  ;;  %v200_v24 = vunpack.c.l.bf16 %v214_v18  ;;  %v201_v25 = vunpack.c.h.bf16 %v214_v18  ;;  %v204_v26 = vunpack.c.l.bf16 %v215_v19  ;;  %v205_v27 = vunpack.c.h.bf16 %v215_v19  ;;  %v118_v39 = vld [vmem:[%s318_s1 + $0x40] sm:$0xff]  ;;  %v117_v48 = vld [vmem:[%s318_s1 + $0x38] sm:$0xff]  ;;  %v116_v57 = vld [vmem:[%s318_s1 + $0x30] sm:$0xff] }
   0x7   :  { %v208_v28 = vunpack.c.l.bf16 %v216_v20  ;;  %v209_v29 = vunpack.c.h.bf16 %v216_v20  ;;  %v46_v31 = vadd.f32 %v181_v8, %v180_v7  ;;  %v53_v32 = vadd.f32 %v185_v10, %v184_v9  ;;  %v115_v2 = vld [vmem:[%s318_s1 + $0x28] sm:$0xff]  ;;  %v114_v11 = vld [vmem:[%s318_s1 + $0x20] sm:$0xff]  ;;  %v113_v20 = vld [vmem:[%s318_s1 + $0x18] sm:$0xff] }
   0x8   :  { %156 = vmatpush.msra.mxu0 %v122_v3  ;;  %v60_v33 = vadd.f32 %v189_v15, %v188_v14  ;;  %v67_v34 = vadd.f32 %v193_v17, %v192_v16  ;;  %v74_v35 = vadd.f32 %v197_v23, %v196_v22  ;;  %v81_v36 = vadd.f32 %v201_v25, %v200_v24 }
   0x9   :  { %v88_v37 = vadd.f32 %v205_v27, %v204_v26  ;;  %v95_v38 = vadd.f32 %v209_v29, %v208_v28  ;;  %v47_v40 = vrot.slane %v46_v31, 4  ;;  %v54_v41 = vrot.slane %v53_v32, 4  ;;  %v112_v29 = vld [vmem:[%s318_s1 + $0x10] sm:$0xff] }
   0xa   :  { %157 = vmatpush.msra.mxu0 %v121_v4  ;;  %v61_v42 = vrot.slane %v60_v33, 4  ;;  %v68_v43 = vrot.slane %v67_v34, 4  ;;  %v75_v44 = vrot.slane %v74_v35, 4  ;;  %v82_v45 = vrot.slane %v81_v36, 4 }
   0xb   :  { %v89_v46 = vrot.slane %v88_v37, 4  ;;  %v96_v47 = vrot.slane %v95_v38, 4  ;;  %v48_v49 = vadd.f32 %v47_v40, %v46_v31  ;;  %v55_v50 = vadd.f32 %v54_v41, %v53_v32  ;;  %v110_v40 = vld [vmem:[%s318_s1] sm:$0xff] }
   0xc   :  { %158 = vmatpush.msra.mxu0 %v120_v21  ;;  %v62_v51 = vadd.f32 %v61_v42, %v60_v33  ;;  %v69_v52 = vadd.f32 %v68_v43, %v67_v34  ;;  %v76_v53 = vadd.f32 %v75_v44, %v74_v35  ;;  %v83_v54 = vadd.f32 %v82_v45, %v81_v36  ;;  %v111_v35 = vld [vmem:[%s318_s1 + $0x8] sm:$0xff] }
   0xd   :  { %v90_v55 = vadd.f32 %v89_v46, %v88_v37  ;;  %v97_v56 = vadd.f32 %v96_v47, %v95_v38  ;;  %v49_v58 = vrot.slane %v48_v49, 2  ;;  %v56_v59 = vrot.slane %v55_v50, 2  ;;  %v217_v47 = vld [vmem:[%s320_s2] ss:$0 sm:$0xff] }
   0xe   :  { %159 = vmatpush.msra.mxu0 %v119_v30  ;;  %v63_v60 = vrot.slane %v62_v51, 2  ;;  %v70_v61 = vrot.slane %v69_v52, 2  ;;  %v77_v62 = vrot.slane %v76_v53, 2  ;;  %v84_v63 = vrot.slane %v83_v54, 2 }
   0xf   :  { %v91_v0 = vrot.slane %v90_v55, 2  ;;  %v98_v1 = vrot.slane %v97_v56, 2  ;;  %v50_v3 = vadd.f32 %v49_v58, %v48_v49  ;;  %v57_v4 = vadd.f32 %v56_v59, %v55_v50 }
  0x10   :  { %160 = vmatpush.msra.mxu0 %v118_v39  ;;  %v64_v5 = vadd.f32 %v63_v60, %v62_v51  ;;  %v71_v6 = vadd.f32 %v70_v61, %v69_v52  ;;  %v78_v7 = vadd.f32 %v77_v62, %v76_v53  ;;  %v85_v8 = vadd.f32 %v84_v63, %v83_v54 }
  0x11   :  { %v92_v9 = vadd.f32 %v91_v0, %v90_v55  ;;  %v99_v10 = vadd.f32 %v98_v1, %v97_v56  ;;  %v51_v12 = vrot.slane %v50_v3, 1  ;;  %v58_v13 = vrot.slane %v57_v4, 1 }
  0x12   :  { %161 = vmatpush.msra.mxu0 %v117_v48  ;;  %v65_v14 = vrot.slane %v64_v5, 1  ;;  %v72_v15 = vrot.slane %v71_v6, 1  ;;  %v79_v16 = vrot.slane %v78_v7, 1  ;;  %v86_v17 = vrot.slane %v85_v8, 1 }
  0x13   :  { %v93_v18 = vrot.slane %v92_v9, 1  ;;  %v100_v19 = vrot.slane %v99_v10, 1  ;;  %v52_v21 = vadd.f32 %v51_v12, %v50_v3  ;;  %v59_v22 = vadd.f32 %v58_v13, %v57_v4 }
  0x14   :  { %162 = vmatpush.msra.mxu0 %v116_v57  ;;  %v66_v23 = vadd.f32 %v65_v14, %v64_v5  ;;  %v73_v24 = vadd.f32 %v72_v15, %v71_v6  ;;  %v80_v25 = vadd.f32 %v79_v16, %v78_v7  ;;  %v87_v26 = vadd.f32 %v86_v17, %v85_v8 }
  0x15   :  { %v94_v27 = vadd.f32 %v93_v18, %v92_v9  ;;  %v101_v28 = vadd.f32 %v100_v19, %v99_v10  ;;  %v102_v30 = vmul.f32 0.0625, %v52_v21  ;;  %v103_v31 = vmul.f32 0.0625, %v59_v22 }
  0x16   :  { %163 = vmatpush.msra.mxu0 %v115_v2  ;;  %v104_v32 = vmul.f32 0.0625, %v66_v23  ;;  %v105_v33 = vmul.f32 0.0625, %v73_v24  ;;  %v106_v34 = vmul.f32 0.0625, %v80_v25  ;;  %v107_v36 = vmul.f32 0.0625, %v87_v26 }
  0x17   :  { %v139_v37 = vsel %vm138_vm0, %v103_v31, %v102_v30  ;;  %v108_v38 = vmul.f32 0.0625, %v94_v27  ;;  %v109_v41 = vmul.f32 0.0625, %v101_v28 }
  0x18   :  { %164 = vmatpush.msra.mxu0 %v114_v11  ;;  %v141_v39 = vsel %vm140_vm1, %v104_v32, %v139_v37 }
  0x19   :  { %v143_v42 = vsel %vm142_vm2, %v105_v33, %v141_v39 }
  0x1a   :  { %165 = vmatpush.msra.mxu0 %v113_v20  ;;  %v145_v43 = vsel %vm144_vm3, %v106_v34, %v143_v42 }
  0x1b   :  { %v147_v44 = vsel %vm146_vm4, %v107_v36, %v145_v43 }
  0x1c   :  { %166 = vmatpush.msra.mxu0 %v112_v29  ;;  %v149_v45 = vsel %vm148_vm5, %v108_v38, %v147_v44 }
  0x1d   :  { %v151_v46 = vsel %vm150_vm6, %v109_v41, %v149_v45 }
  0x1e   :  { %167 = vmatpush.msra.mxu0 %v111_v35 }
  0x20   :  { %168 = vmatpush.msra.mxu0 %v110_v40 }
  0x21   :  { %169 = vmatmul.f32.vlgmr.msra.gmra.mxu0 %v151_v46 }
  0x9e   :  { %v170_v48 = vpop.f32.mrf.mxu0 }
  0x9f   :  { %v171_v49 = vadd.f32 %v217_v47, %v170_v48 }
  0xa1   :  { %173 = vst [vmem:[%s321_s3] sm:$0xff] %v171_v49 }

</bundles_post_ra>
